<compile_context>
chip_gen: v7x
topology: tpu7x:2x2x1
jax: 0.10.0
libtpu: 0.0.40
codegen_flags: <defaults>
</compile_context>

<pallas_src>
import functools

import jax
import jax.numpy as jnp
import numpy as np
from jax import lax
from jax.experimental import pallas as pl
from jax.experimental.pallas import tpu as pltpu

_UNROLL_MAX = 64     # fully unroll the chain when H-1 <= this
_LANE = 128
_TILE_CAP = 512


def _round_up(x, m):
    return (int(x) + m - 1) // m * m


def _freenet_kernel(x2_ref, w1_ref, b1_ref, wbt_ref, bb_ref, wot_ref, bo_ref,
                    o_ref, hb_scr, *, nsub):
    """One batch tile of the FreeNetTrig forward.

    x2_ref : [TB, 2*Din] f32      sin||cos features (batch-blocked)
    w1_ref : [2*Din, H]  bf16     input_to_hidden, pre-transposed
    b1_ref : [1, H]      f32
    wbt_ref: [max(H-1,1), H, H] bf16  zero-padded hidden_to_hidden weights
    bb_ref : [max(H-1,1), H]    f32   zero-padded biases
    wot_ref: [H, OP]     bf16     hidden_to_output, pre-transposed, lane-padded
    bo_ref : [1, OP]     f32
    o_ref  : [TB, OP]    f32
    hb_scr : [TB, H]     bf16     VMEM scratch: bf16 shadow of h
    """
    cdt = wbt_ref.dtype            # MXU input dtype (bf16); accumulation f32
    H = b1_ref.shape[1]
    TB = x2_ref.shape[0]
    sb = TB // nsub
    n_layers = H - 1

    # ---- input_to_hidden + SquareReLU, per batch sub-tile ------------------
    hf = []                                        # f32 accumulators (regs)
    for s in range(nsub):
        rows = pl.ds(s * sb, sb)
        x2 = x2_ref[rows, :].astype(cdt)
        h0 = (jnp.dot(x2, w1_ref[...], preferred_element_type=jnp.float32)
              + b1_ref[...])
        h0 = jnp.maximum(h0, 0.0)
        h0 = h0 * h0                               # SquareReLU on the VPU, f32
        hf.append(h0)
        hb_scr[rows, :] = h0.astype(cdt)           # one full-width cast only

    # ---- triangular hidden_to_hidden chain ----------------------------------
    # Layer i reads only columns 0..i of h (rows i+1.. of wbt[i] are exact
    # zeros, so stale bf16 shadow columns never contribute) and finalizes
    # column i+1, which is the only value the next dot newly depends on.
    if n_layers <= _UNROLL_MAX:
        for i in range(n_layers):
            zs = []
            for s in range(nsub):                  # nsub independent MXU dots
                rows = pl.ds(s * sb, sb)
                zs.append(jnp.dot(hb_scr[rows, :], wbt_ref[i],
                                  preferred_element_type=jnp.float32)
                          + bb_ref[pl.ds(i, 1), :])
            for s in range(nsub):                  # VPU work fills MXU bubbles
                rows = pl.ds(s * sb, sb)
                z = zs[s]
                # Narrow critical path: only column i+1 feeds the next dot.
                zc = z[:, i + 1:i + 2]
                ac = jnp.maximum(zc, 0.0)
                col = (hf[s][:, i + 1:i + 2] + ac * ac).astype(cdt)
                hb_scr[rows, pl.ds(i + 1, 1)] = col
                # Full-width f32 accumulation (off the chain's critical path).
                a = jnp.maximum(z, 0.0)
                hf[s] = hf[s] + a * a
    elif n_layers > 0:
        # Large H: bound program size / vreg live ranges with a lightly
        # unrolled dynamic loop (full-width bf16 recast per step; no dynamic
        # single-lane stores for robustness).
        # TODO(synk): combine with column-blocked wbt streaming at H >= 256.
        def body(i, carry):
            new = []
            for s in range(nsub):
                rows = pl.ds(s * sb, sb)
                z = (jnp.dot(hb_scr[rows, :], wbt_ref[i],
                             preferred_element_type=jnp.float32)
                     + bb_ref[pl.ds(i, 1), :])
                a = jnp.maximum(z, 0.0)
                hn = carry[s] + a * a
                hb_scr[rows, :] = hn.astype(cdt)
                new.append(hn)
            return tuple(new)
        hf = list(lax.fori_loop(0, n_layers, body, tuple(hf), unroll=2))

    # ---- hidden_to_output (lane-padded -> dense 128-lane stores) ------------
    for s in range(nsub):
        rows = pl.ds(s * sb, sb)
        out = (jnp.dot(hf[s].astype(cdt), wot_ref[...],
                       preferred_element_type=jnp.float32) + bo_ref[...])
        o_ref[rows, :] = out.astype(o_ref.dtype)


def _pick_block_batch(batch):
    # >=2 grid steps when the batch allows (v7x megacore), tiles capped at 512.
    target = max(32, _round_up(pl.cdiv(batch, 2), 32))
    return int(min(_TILE_CAP, target))


def _pick_nsub(block_batch, hidden_dim):
    if block_batch % 128 == 0 and block_batch >= 256 and hidden_dim <= 64:
        return 4
    if block_batch % 32 == 0:
        return 2
    return 1


def freenet_trig_forward(x, packed_params, *, out_dim, block_batch=None):
    w1t, b1, wbt, bb, wot, bo = packed_params
    batch, input_dim = x.shape
    hidden_dim = w1t.shape[1]
    out_pad = wot.shape[1]

    if block_batch is None:
        block_batch = _pick_block_batch(batch)
    block_batch = max(8, _round_up(block_batch, 8))
    nsub = _pick_nsub(block_batch, hidden_dim)

    # Ragged batches: zero-pad to a tile multiple (no hard assert), slice back.
    padded_batch = _round_up(batch, block_batch)
    if padded_batch != batch:
        x = jnp.pad(x, ((0, padded_batch - batch), (0, 0)))
    grid = (padded_batch // block_batch,)

    # Trig featurization stays in cheap XLA glue; a single concatenated
    # operand makes the first layer one K=2*Din dot in the kernel.
    x2 = jnp.concatenate([jnp.sin(x), jnp.cos(x)], axis=1)

    # Advisory cost + explicit VMEM budget (clamped to the chip, v7x = 64 MiB).
    flops = 2 * padded_batch * (2 * input_dim * hidden_dim
                                + max(hidden_dim - 1, 0) * hidden_dim * hidden_dim
                                + hidden_dim * out_pad)
    weight_bytes = sum(int(np.prod(a.shape)) * a.dtype.itemsize
                       for a in (w1t, b1, wbt, bb, wot, bo))
    io_bytes = padded_batch * (2 * input_dim + out_pad) * 4
    cost = pl.CostEstimate(flops=flops, transcendentals=0,
                           bytes_accessed=weight_bytes + io_bytes)

    try:
        chip_vmem = int(getattr(pltpu.get_tpu_info(), "vmem_capacity_bytes",
                                64 << 20))
    except Exception:
        chip_vmem = 64 << 20
    tile_bytes = 4 * block_batch * (2 * input_dim + out_pad)   # f32 in/out tile
    scratch_bytes = 2 * block_batch * hidden_dim               # bf16 shadow
    need = weight_bytes + 2 * tile_bytes + scratch_bytes + (8 << 20)
    vmem_limit = int(min(chip_vmem - (8 << 20), max(32 << 20, need)))

    # Constant weights: whole-array VMEM-resident operands (single copy, not
    # double-buffered across grid steps).
    resident = pl.BlockSpec(memory_space=pltpu.MemorySpace.VMEM)

    out_padded = pl.pallas_call(
        functools.partial(_freenet_kernel, nsub=nsub),
        out_shape=jax.ShapeDtypeStruct((padded_batch, out_pad), jnp.float32),
        grid=grid,
        in_specs=[
            pl.BlockSpec((block_batch, 2 * input_dim), lambda i: (i, 0)),
            resident,   # w1t
            resident,   # b1
            resident,   # wbt
            resident,   # bb
            resident,   # wot
            resident,   # bo
        ],
        out_specs=pl.BlockSpec((block_batch, out_pad), lambda i: (i, 0)),
        scratch_shapes=[pltpu.VMEM((block_batch, hidden_dim), wbt.dtype)],
        compiler_params=pltpu.CompilerParams(
            dimension_semantics=("parallel",),
            vmem_limit_bytes=vmem_limit,
        ),
        cost_estimate=cost,
    )(x2, w1t, b1, wbt, bb, wot, bo)

    return out_padded[:batch, :out_dim]


def init_params(key, input_dim, hidden_dim, output_dim):
    """Deterministic synthetic init mirroring the PyTorch module's shapes."""
    def uniform(k, shape, bound):
        return jax.random.uniform(k, shape, jnp.float32, -bound, bound)

    ks = jax.random.split(key, 4 + 2 * max(hidden_dim - 1, 0))
    b_in = 1.0 / float(np.sqrt(2.0 * input_dim))
    w1 = uniform(ks[0], (hidden_dim, 2 * input_dim), b_in)     # torch [out, in]
    b1 = uniform(ks[1], (hidden_dim,), b_in)

    w_list, b_list = [], []
    for i in range(hidden_dim - 1):
        fan_in = i + 1
        out_f = hidden_dim - i - 1
        bnd = 0.3 / float(np.sqrt(float(fan_in)))  # keeps SquareReLU stable
        w_list.append(uniform(ks[2 + 2 * i], (out_f, fan_in), bnd))
        b_list.append(uniform(ks[3 + 2 * i], (out_f,), bnd))

    b_out = 1.0 / float(np.sqrt(float(hidden_dim)))
    wo = uniform(ks[-2], (output_dim, hidden_dim), b_out)
    bo = uniform(ks[-1], (output_dim,), b_out)
    return w1, b1, w_list, b_list, wo, bo


def pack_params(w1, b1, w_list, b_list, wo, bo, input_dim, hidden_dim,
                output_dim, weight_dtype=jnp.bfloat16):
    """One-time host-side (numpy) packing of the ragged triangular layers."""
    H = hidden_dim
    w1t = np.ascontiguousarray(np.asarray(w1, np.float32).T)   # [2*Din, H]
    b1p = np.asarray(b1, np.float32).reshape(1, H)

    n_chain = max(H - 1, 1)
    wbt = np.zeros((n_chain, H, H), np.float32)
    bb = np.zeros((n_chain, H), np.float32)
    for i in range(H - 1):
        # wbt[i, k, i+1+j] = W_i[j, k]   (input col k<=i -> output col i+1+j)
        wbt[i, : i + 1, i + 1:] = np.asarray(w_list[i], np.float32).T
        bb[i, i + 1:] = np.asarray(b_list[i], np.float32)

    # Lane-pad the output projection to 128 (dense stores); extra cols are 0.
    out_pad = max(_LANE, _round_up(output_dim, _LANE))
    wotp = np.zeros((H, out_pad), np.float32)
    wotp[:, :output_dim] = np.asarray(wo, np.float32).T
    bop = np.zeros((1, out_pad), np.float32)
    bop[0, :output_dim] = np.asarray(bo, np.float32)

    wd = weight_dtype
    # bb / biases stay f32 and the wbt zeros survive the bf16 cast exactly,
    # which the zero-padding trick relies on.
    return (jnp.asarray(w1t, wd), jnp.asarray(b1p),
            jnp.asarray(wbt, wd), jnp.asarray(bb),
            jnp.asarray(wotp, wd), jnp.asarray(bop))


def reference_forward_f32(x, w1, b1, w_list, b_list, wo, bo):
    """Pure-JAX full-f32 transcription of the PyTorch forward."""
    def sq_relu(v):
        r = jnp.maximum(v, 0.0)
        return r * r

    x2 = jnp.concatenate([jnp.sin(x), jnp.cos(x)], axis=1)
    h = sq_relu(x2 @ w1.T + b1)
    H = h.shape[1]
    for i in range(H - 1):
        out = sq_relu(h[:, : i + 1] @ w_list[i].T + b_list[i])
        h = jnp.concatenate([h[:, : i + 1], h[:, i + 1:] + out], axis=1)
    return h @ wo.T + bo


def reference_forward_mixed(x, w1, b1, w_list, b_list, wo, bo, compute_dtype):
    """Same forward, mimicking the kernel's precision: matmul inputs rounded
    to `compute_dtype`, f32 accumulation, f32 biases / SquareReLU."""
    f32 = jnp.float32
    q = lambda a: jnp.asarray(a, f32).astype(compute_dtype).astype(f32)

    def sq_relu(v):
        r = jnp.maximum(v, 0.0)
        return r * r

    x2 = jnp.concatenate([jnp.sin(x), jnp.cos(x)], axis=1)
    h = sq_relu(q(x2) @ q(w1).T + b1)
    H = h.shape[1]
    for i in range(H - 1):
        out = sq_relu(q(h)[:, : i + 1] @ q(w_list[i]).T + b_list[i])
        h = jnp.concatenate([h[:, : i + 1], h[:, i + 1:] + out], axis=1)
    return q(h) @ q(wo).T + bo


if __name__ == "__main__":
    input_dim, hidden_dim, output_dim = 8, 32, 4
    batch = 64   # default tiling -> block_batch=32, grid of 2, 2 sub-tiles

    key = jax.random.PRNGKey(0)
    kx, kp = jax.random.split(key)
    x = jax.random.normal(kx, (batch, input_dim), jnp.float32)

    w1, b1, w_list, b_list, wo, bo = init_params(kp, input_dim, hidden_dim,
                                                 output_dim)
    packed = pack_params(w1, b1, w_list, b_list, wo, bo, input_dim, hidden_dim,
                         output_dim, weight_dtype=jnp.bfloat16)

    fwd = jax.jit(lambda xx, pp: freenet_trig_forward(xx, pp,
                                                      out_dim=output_dim))
    out = jax.block_until_ready(fwd(x, packed))

    ref_mixed = reference_forward_mixed(x, w1, b1, w_list, b_list, wo, bo,
                                        jnp.bfloat16)
    ref_f32 = reference_forward_f32(x, w1, b1, w_list, b_list, wo, bo)

    assert out.shape == (batch, output_dim)
    assert bool(jnp.all(jnp.isfinite(out)))
    # Check vs a reference mimicking the kernel's bf16-in / f32-acc math.
    assert bool(jnp.allclose(out, ref_mixed, rtol=1e-2, atol=1e-2))
    # Loose sanity check vs the full-f32 PyTorch-faithful reference
    # (bounds the bf16 weight/activation quantization drift).
    assert bool(jnp.allclose(out, ref_f32, rtol=1e-1, atol=1e-1))

    print("KERNEL_OK")
</pallas_src>

<mosaic_0001>
module attributes {stable_mosaic.version = 11 : i64} {
  func.func @_freenet_kernel(%arg0: i32, %arg1: memref<32x16xf32, #tpu.memory_space<vmem>>, %arg2: memref<16x32xbf16, #tpu.memory_space<vmem>>, %arg3: memref<1x32xf32, #tpu.memory_space<vmem>>, %arg4: memref<31x32x32xbf16, #tpu.memory_space<vmem>>, %arg5: memref<31x32xf32, #tpu.memory_space<vmem>>, %arg6: memref<32x128xbf16, #tpu.memory_space<vmem>>, %arg7: memref<1x128xf32, #tpu.memory_space<vmem>>, %arg8: memref<32x128xf32, #tpu.memory_space<vmem>>, %arg9: memref<32x32xbf16, #tpu.memory_space<vmem>>) attributes {dimension_semantics = [#tpu.dimension_semantics<parallel>], iteration_bounds = array<i64: 2>, scalar_prefetch = 0 : i64, scratch_operands = 1 : i64, tpu.core_type = #tpu.core_type<tc>, window_params = [{transform_indices = @transform_0, window_bounds = array<i64: 32, 16>}, {pipeline_mode = #tpu.pipeline_mode<synchronous>, transform_indices = @transform_1, window_bounds = array<i64: 16, 32>}, {pipeline_mode = #tpu.pipeline_mode<synchronous>, transform_indices = @transform_2, window_bounds = array<i64: 1, 32>}, {pipeline_mode = #tpu.pipeline_mode<synchronous>, transform_indices = @transform_3, window_bounds = array<i64: 31, 32, 32>}, {pipeline_mode = #tpu.pipeline_mode<synchronous>, transform_indices = @transform_4, window_bounds = array<i64: 31, 32>}, {pipeline_mode = #tpu.pipeline_mode<synchronous>, transform_indices = @transform_5, window_bounds = array<i64: 32, 128>}, {pipeline_mode = #tpu.pipeline_mode<synchronous>, transform_indices = @transform_6, window_bounds = array<i64: 1, 128>}, {transform_indices = @transform_7, window_bounds = array<i64: 32, 128>}]} {
    %c0 = arith.constant 0 : index
    %c0_0 = arith.constant 0 : index
    %0 = vector.load %arg1[%c0, %c0_0] : memref<32x16xf32, #tpu.memory_space<vmem>>, vector<16x16xf32>
    %1 = arith.truncf %0 : vector<16x16xf32> to vector<16x16xbf16>
    %c0_1 = arith.constant 0 : index
    %c0_2 = arith.constant 0 : index
    %2 = vector.load %arg2[%c0_1, %c0_2] : memref<16x32xbf16, #tpu.memory_space<vmem>>, vector<16x32xbf16>
    %cst = arith.constant dense<0.000000e+00> : vector<16x32xf32>
    %3 = tpu.matmul %1, %2, %cst {dimension_numbers = #tpu.dot_dimension_numbers<[1], [0], [0], [1], [0, 0, 1, 1], [], []>} : vector<16x16xbf16>, vector<16x32xbf16>, vector<16x32xf32> -> vector<16x32xf32>
    %c0_3 = arith.constant 0 : index
    %c0_4 = arith.constant 0 : index
    %4 = vector.load %arg3[%c0_3, %c0_4] : memref<1x32xf32, #tpu.memory_space<vmem>>, vector<1x32xf32>
    %5 = vector.broadcast %4 : vector<1x32xf32> to vector<16x32xf32>
    %6 = arith.addf %3, %5 : vector<16x32xf32>
    %cst_5 = arith.constant 0.000000e+00 : f32
    %7 = vector.broadcast %cst_5 : f32 to vector<16x32xf32>
    %8 = arith.maximumf %6, %7 : vector<16x32xf32>
    %9 = arith.mulf %8, %8 : vector<16x32xf32>
    %10 = arith.truncf %9 : vector<16x32xf32> to vector<16x32xbf16>
    %c0_6 = arith.constant 0 : index
    %c0_7 = arith.constant 0 : index
    %11 = vector.load %arg9[%c0_6, %c0_7] : memref<32x32xbf16, #tpu.memory_space<vmem>>, vector<16x32xbf16>
    tpu.vector_store %arg9[%c0_6, %c0_7], %10 {strides = array<i32>} : memref<32x32xbf16, #tpu.memory_space<vmem>>, vector<16x32xbf16>,
    %c16 = arith.constant 16 : index
    %c0_8 = arith.constant 0 : index
    %12 = vector.load %arg1[%c16, %c0_8] : memref<32x16xf32, #tpu.memory_space<vmem>>, vector<16x16xf32>
    %13 = arith.truncf %12 : vector<16x16xf32> to vector<16x16xbf16>
    %c0_9 = arith.constant 0 : index
    %c0_10 = arith.constant 0 : index
    %14 = vector.load %arg2[%c0_9, %c0_10] : memref<16x32xbf16, #tpu.memory_space<vmem>>, vector<16x32xbf16>
    %cst_11 = arith.constant dense<0.000000e+00> : vector<16x32xf32>
    %15 = tpu.matmul %13, %14, %cst_11 {dimension_numbers = #tpu.dot_dimension_numbers<[1], [0], [0], [1], [0, 0, 1, 1], [], []>} : vector<16x16xbf16>, vector<16x32xbf16>, vector<16x32xf32> -> vector<16x32xf32>
    %c0_12 = arith.constant 0 : index
    %c0_13 = arith.constant 0 : index
    %16 = vector.load %arg3[%c0_12, %c0_13] : memref<1x32xf32, #tpu.memory_space<vmem>>, vector<1x32xf32>
    %17 = vector.broadcast %16 : vector<1x32xf32> to vector<16x32xf32>
    %18 = arith.addf %15, %17 : vector<16x32xf32>
    %cst_14 = arith.constant 0.000000e+00 : f32
    %19 = vector.broadcast %cst_14 : f32 to vector<16x32xf32>
    %20 = arith.maximumf %18, %19 : vector<16x32xf32>
    %21 = arith.mulf %20, %20 : vector<16x32xf32>
    %22 = arith.truncf %21 : vector<16x32xf32> to vector<16x32xbf16>
    %c16_15 = arith.constant 16 : index
    %c0_16 = arith.constant 0 : index
    %23 = vector.load %arg9[%c16_15, %c0_16] : memref<32x32xbf16, #tpu.memory_space<vmem>>, vector<16x32xbf16>
    tpu.vector_store %arg9[%c16_15, %c0_16], %22 {strides = array<i32>} : memref<32x32xbf16, #tpu.memory_space<vmem>>, vector<16x32xbf16>,
    %c0_17 = arith.constant 0 : index
    %c0_18 = arith.constant 0 : index
    %24 = vector.load %arg9[%c0_17, %c0_18] : memref<32x32xbf16, #tpu.memory_space<vmem>>, vector<16x32xbf16>
    %c0_19 = arith.constant 0 : index
    %c0_20 = arith.constant 0 : index
    %c0_21 = arith.constant 0 : index
    %25 = vector.load %arg4[%c0_19, %c0_20, %c0_21] : memref<31x32x32xbf16, #tpu.memory_space<vmem>>, vector<1x32x32xbf16>
    %26 = vector.shape_cast %25 : vector<1x32x32xbf16> to vector<32x32xbf16>
    %cst_22 = arith.constant dense<0.000000e+00> : vector<16x32xf32>
    %27 = tpu.matmul %24, %26, %cst_22 {dimension_numbers = #tpu.dot_dimension_numbers<[1], [0], [0], [1], [0, 0, 1, 1], [], []>} : vector<16x32xbf16>, vector<32x32xbf16>, vector<16x32xf32> -> vector<16x32xf32>
    %c0_23 = arith.constant 0 : index
    %c0_24 = arith.constant 0 : index
    %28 = vector.load %arg5[%c0_23, %c0_24] : memref<31x32xf32, #tpu.memory_space<vmem>>, vector<1x32xf32>
    %29 = vector.broadcast %28 : vector<1x32xf32> to vector<16x32xf32>
    %30 = arith.addf %27, %29 : vector<16x32xf32>
    %c16_25 = arith.constant 16 : index
    %c0_26 = arith.constant 0 : index
    %31 = vector.load %arg9[%c16_25, %c0_26] : memref<32x32xbf16, #tpu.memory_space<vmem>>, vector<16x32xbf16>
    %c0_27 = arith.constant 0 : index
    %c0_28 = arith.constant 0 : index
    %c0_29 = arith.constant 0 : index
    %32 = vector.load %arg4[%c0_27, %c0_28, %c0_29] : memref<31x32x32xbf16, #tpu.memory_space<vmem>>, vector<1x32x32xbf16>
    %33 = vector.shape_cast %32 : vector<1x32x32xbf16> to vector<32x32xbf16>
    %cst_30 = arith.constant dense<0.000000e+00> : vector<16x32xf32>
    %34 = tpu.matmul %31, %33, %cst_30 {dimension_numbers = #tpu.dot_dimension_numbers<[1], [0], [0], [1], [0, 0, 1, 1], [], []>} : vector<16x32xbf16>, vector<32x32xbf16>, vector<16x32xf32> -> vector<16x32xf32>
    %c0_31 = arith.constant 0 : index
    %c0_32 = arith.constant 0 : index
    %35 = vector.load %arg5[%c0_31, %c0_32] : memref<31x32xf32, #tpu.memory_space<vmem>>, vector<1x32xf32>
    %36 = vector.broadcast %35 : vector<1x32xf32> to vector<16x32xf32>
    %37 = arith.addf %34, %36 : vector<16x32xf32>
    %38 = vector.extract_strided_slice %30 {offsets = [0, 1], sizes = [16, 1], strides = [1, 1]} : vector<16x32xf32> to vector<16x1xf32>
    %cst_33 = arith.constant 0.000000e+00 : f32
    %39 = vector.broadcast %cst_33 : f32 to vector<16x1xf32>
    %40 = arith.maximumf %38, %39 : vector<16x1xf32>
    %41 = vector.extract_strided_slice %9 {offsets = [0, 1], sizes = [16, 1], strides = [1, 1]} : vector<16x32xf32> to vector<16x1xf32>
    %42 = arith.mulf %40, %40 : vector<16x1xf32>
    %43 = arith.addf %41, %42 : vector<16x1xf32>
    %44 = arith.truncf %43 : vector<16x1xf32> to vector<16x1xbf16>
    %c0_34 = arith.constant 0 : index
    %c1 = arith.constant 1 : index
    %45 = vector.load %arg9[%c0_34, %c1] : memref<32x32xbf16, #tpu.memory_space<vmem>>, vector<16x1xbf16>
    tpu.vector_store %arg9[%c0_34, %c1], %44 {strides = array<i32>} : memref<32x32xbf16, #tpu.memory_space<vmem>>, vector<16x1xbf16>,
    %cst_35 = arith.constant 0.000000e+00 : f32
    %46 = vector.broadcast %cst_35 : f32 to vector<16x32xf32>
    %47 = arith.maximumf %30, %46 : vector<16x32xf32>
    %48 = arith.mulf %47, %47 : vector<16x32xf32>
    %49 = arith.addf %9, %48 : vector<16x32xf32>
    %50 = vector.extract_strided_slice %37 {offsets = [0, 1], sizes = [16, 1], strides = [1, 1]} : vector<16x32xf32> to vector<16x1xf32>
    %cst_36 = arith.constant 0.000000e+00 : f32
    %51 = vector.broadcast %cst_36 : f32 to vector<16x1xf32>
    %52 = arith.maximumf %50, %51 : vector<16x1xf32>
    %53 = vector.extract_strided_slice %21 {offsets = [0, 1], sizes = [16, 1], strides = [1, 1]} : vector<16x32xf32> to vector<16x1xf32>
    %54 = arith.mulf %52, %52 : vector<16x1xf32>
    %55 = arith.addf %53, %54 : vector<16x1xf32>
    %56 = arith.truncf %55 : vector<16x1xf32> to vector<16x1xbf16>
    %c16_37 = arith.constant 16 : index
    %c1_38 = arith.constant 1 : index
    %57 = vector.load %arg9[%c16_37, %c1_38] : memref<32x32xbf16, #tpu.memory_space<vmem>>, vector<16x1xbf16>
    tpu.vector_store %arg9[%c16_37, %c1_38], %56 {strides = array<i32>} : memref<32x32xbf16, #tpu.memory_space<vmem>>, vector<16x1xbf16>,
    %cst_39 = arith.constant 0.000000e+00 : f32
    %58 = vector.broadcast %cst_39 : f32 to vector<16x32xf32>
    %59 = arith.maximumf %37, %58 : vector<16x32xf32>
    %60 = arith.mulf %59, %59 : vector<16x32xf32>
    %61 = arith.addf %21, %60 : vector<16x32xf32>
    %c0_40 = arith.constant 0 : index
    %c0_41 = arith.constant 0 : index
    %62 = vector.load %arg9[%c0_40, %c0_41] : memref<32x32xbf16, #tpu.memory_space<vmem>>, vector<16x32xbf16>
    %c1_42 = arith.constant 1 : index
    %c0_43 = arith.constant 0 : index
    %c0_44 = arith.constant 0 : index
    %63 = vector.load %arg4[%c1_42, %c0_43, %c0_44] : memref<31x32x32xbf16, #tpu.memory_space<vmem>>, vector<1x32x32xbf16>
    %64 = vector.shape_cast %63 : vector<1x32x32xbf16> to vector<32x32xbf16>
    %cst_45 = arith.constant dense<0.000000e+00> : vector<16x32xf32>
    %65 = tpu.matmul %62, %64, %cst_45 {dimension_numbers = #tpu.dot_dimension_numbers<[1], [0], [0], [1], [0, 0, 1, 1], [], []>} : vector<16x32xbf16>, vector<32x32xbf16>, vector<16x32xf32> -> vector<16x32xf32>
    %c1_46 = arith.constant 1 : index
    %c0_47 = arith.constant 0 : index
    %66 = vector.load %arg5[%c1_46, %c0_47] : memref<31x32xf32, #tpu.memory_space<vmem>>, vector<1x32xf32>
    %67 = vector.broadcast %66 : vector<1x32xf32> to vector<16x32xf32>
    %68 = arith.addf %65, %67 : vector<16x32xf32>
    %c16_48 = arith.constant 16 : index
    %c0_49 = arith.constant 0 : index
    %69 = vector.load %arg9[%c16_48, %c0_49] : memref<32x32xbf16, #tpu.memory_space<vmem>>, vector<16x32xbf16>
    %c1_50 = arith.constant 1 : index
    %c0_51 = arith.constant 0 : index
    %c0_52 = arith.constant 0 : index
    %70 = vector.load %arg4[%c1_50, %c0_51, %c0_52] : memref<31x32x32xbf16, #tpu.memory_space<vmem>>, vector<1x32x32xbf16>
    %71 = vector.shape_cast %70 : vector<1x32x32xbf16> to vector<32x32xbf16>
    %cst_53 = arith.constant dense<0.000000e+00> : vector<16x32xf32>
    %72 = tpu.matmul %69, %71, %cst_53 {dimension_numbers = #tpu.dot_dimension_numbers<[1], [0], [0], [1], [0, 0, 1, 1], [], []>} : vector<16x32xbf16>, vector<32x32xbf16>, vector<16x32xf32> -> vector<16x32xf32>
    %c1_54 = arith.constant 1 : index
    %c0_55 = arith.constant 0 : index
    %73 = vector.load %arg5[%c1_54, %c0_55] : memref<31x32xf32, #tpu.memory_space<vmem>>, vector<1x32xf32>
    %74 = vector.broadcast %73 : vector<1x32xf32> to vector<16x32xf32>
    %75 = arith.addf %72, %74 : vector<16x32xf32>
    %76 = vector.extract_strided_slice %68 {offsets = [0, 2], sizes = [16, 1], strides = [1, 1]} : vector<16x32xf32> to vector<16x1xf32>
    %cst_56 = arith.constant 0.000000e+00 : f32
    %77 = vector.broadcast %cst_56 : f32 to vector<16x1xf32>
    %78 = arith.maximumf %76, %77 : vector<16x1xf32>
    %79 = vector.extract_strided_slice %49 {offsets = [0, 2], sizes = [16, 1], strides = [1, 1]} : vector<16x32xf32> to vector<16x1xf32>
    %80 = arith.mulf %78, %78 : vector<16x1xf32>
    %81 = arith.addf %79, %80 : vector<16x1xf32>
    %82 = arith.truncf %81 : vector<16x1xf32> to vector<16x1xbf16>
    %c0_57 = arith.constant 0 : index
    %c2 = arith.constant 2 : index
    %83 = vector.load %arg9[%c0_57, %c2] : memref<32x32xbf16, #tpu.memory_space<vmem>>, vector<16x1xbf16>
    tpu.vector_store %arg9[%c0_57, %c2], %82 {strides = array<i32>} : memref<32x32xbf16, #tpu.memory_space<vmem>>, vector<16x1xbf16>,
    %cst_58 = arith.constant 0.000000e+00 : f32
    %84 = vector.broadcast %cst_58 : f32 to vector<16x32xf32>
    %85 = arith.maximumf %68, %84 : vector<16x32xf32>
    %86 = arith.mulf %85, %85 : vector<16x32xf32>
    %87 = arith.addf %49, %86 : vector<16x32xf32>
    %88 = vector.extract_strided_slice %75 {offsets = [0, 2], sizes = [16, 1], strides = [1, 1]} : vector<16x32xf32> to vector<16x1xf32>
    %cst_59 = arith.constant 0.000000e+00 : f32
    %89 = vector.broadcast %cst_59 : f32 to vector<16x1xf32>
    %90 = arith.maximumf %88, %89 : vector<16x1xf32>
    %91 = vector.extract_strided_slice %61 {offsets = [0, 2], sizes = [16, 1], strides = [1, 1]} : vector<16x32xf32> to vector<16x1xf32>
    %92 = arith.mulf %90, %90 : vector<16x1xf32>
    %93 = arith.addf %91, %92 : vector<16x1xf32>
    %94 = arith.truncf %93 : vector<16x1xf32> to vector<16x1xbf16>
    %c16_60 = arith.constant 16 : index
    %c2_61 = arith.constant 2 : index
    %95 = vector.load %arg9[%c16_60, %c2_61] : memref<32x32xbf16, #tpu.memory_space<vmem>>, vector<16x1xbf16>
    tpu.vector_store %arg9[%c16_60, %c2_61], %94 {strides = array<i32>} : memref<32x32xbf16, #tpu.memory_space<vmem>>, vector<16x1xbf16>,
    %cst_62 = arith.constant 0.000000e+00 : f32
    %96 = vector.broadcast %cst_62 : f32 to vector<16x32xf32>
    %97 = arith.maximumf %75, %96 : vector<16x32xf32>
    %98 = arith.mulf %97, %97 : vector<16x32xf32>
    %99 = arith.addf %61, %98 : vector<16x32xf32>
    %c0_63 = arith.constant 0 : index
    %c0_64 = arith.constant 0 : index
    %100 = vector.load %arg9[%c0_63, %c0_64] : memref<32x32xbf16, #tpu.memory_space<vmem>>, vector<16x32xbf16>
    %c2_65 = arith.constant 2 : index
    %c0_66 = arith.constant 0 : index
    %c0_67 = arith.constant 0 : index
    %101 = vector.load %arg4[%c2_65, %c0_66, %c0_67] : memref<31x32x32xbf16, #tpu.memory_space<vmem>>, vector<1x32x32xbf16>
    %102 = vector.shape_cast %101 : vector<1x32x32xbf16> to vector<32x32xbf16>
    %cst_68 = arith.constant dense<0.000000e+00> : vector<16x32xf32>
    %103 = tpu.matmul %100, %102, %cst_68 {dimension_numbers = #tpu.dot_dimension_numbers<[1], [0], [0], [1], [0, 0, 1, 1], [], []>} : vector<16x32xbf16>, vector<32x32xbf16>, vector<16x32xf32> -> vector<16x32xf32>
    %c2_69 = arith.constant 2 : index
    %c0_70 = arith.constant 0 : index
    %104 = vector.load %arg5[%c2_69, %c0_70] : memref<31x32xf32, #tpu.memory_space<vmem>>, vector<1x32xf32>
    %105 = vector.broadcast %104 : vector<1x32xf32> to vector<16x32xf32>
    %106 = arith.addf %103, %105 : vector<16x32xf32>
    %c16_71 = arith.constant 16 : index
    %c0_72 = arith.constant 0 : index
    %107 = vector.load %arg9[%c16_71, %c0_72] : memref<32x32xbf16, #tpu.memory_space<vmem>>, vector<16x32xbf16>
    %c2_73 = arith.constant 2 : index
    %c0_74 = arith.constant 0 : index
    %c0_75 = arith.constant 0 : index
    %108 = vector.load %arg4[%c2_73, %c0_74, %c0_75] : memref<31x32x32xbf16, #tpu.memory_space<vmem>>, vector<1x32x32xbf16>
    %109 = vector.shape_cast %108 : vector<1x32x32xbf16> to vector<32x32xbf16>
    %cst_76 = arith.constant dense<0.000000e+00> : vector<16x32xf32>
    %110 = tpu.matmul %107, %109, %cst_76 {dimension_numbers = #tpu.dot_dimension_numbers<[1], [0], [0], [1], [0, 0, 1, 1], [], []>} : vector<16x32xbf16>, vector<32x32xbf16>, vector<16x32xf32> -> vector<16x32xf32>
    %c2_77 = arith.constant 2 : index
    %c0_78 = arith.constant 0 : index
    %111 = vector.load %arg5[%c2_77, %c0_78] : memref<31x32xf32, #tpu.memory_space<vmem>>, vector<1x32xf32>
    %112 = vector.broadcast %111 : vector<1x32xf32> to vector<16x32xf32>
    %113 = arith.addf %110, %112 : vector<16x32xf32>
    %114 = vector.extract_strided_slice %106 {offsets = [0, 3], sizes = [16, 1], strides = [1, 1]} : vector<16x32xf32> to vector<16x1xf32>
    %cst_79 = arith.constant 0.000000e+00 : f32
    %115 = vector.broadcast %cst_79 : f32 to vector<16x1xf32>
    %116 = arith.maximumf %114, %115 : vector<16x1xf32>
    %117 = vector.extract_strided_slice %87 {offsets = [0, 3], sizes = [16, 1], strides = [1, 1]} : vector<16x32xf32> to vector<16x1xf32>
    %118 = arith.mulf %116, %116 : vector<16x1xf32>
    %119 = arith.addf %117, %118 : vector<16x1xf32>
    %120 = arith.truncf %119 : vector<16x1xf32> to vector<16x1xbf16>
    %c0_80 = arith.constant 0 : index
    %c3 = arith.constant 3 : index
    %121 = vector.load %arg9[%c0_80, %c3] : memref<32x32xbf16, #tpu.memory_space<vmem>>, vector<16x1xbf16>
    tpu.vector_store %arg9[%c0_80, %c3], %120 {strides = array<i32>} : memref<32x32xbf16, #tpu.memory_space<vmem>>, vector<16x1xbf16>,
    %cst_81 = arith.constant 0.000000e+00 : f32
    %122 = vector.broadcast %cst_81 : f32 to vector<16x32xf32>
    %123 = arith.maximumf %106, %122 : vector<16x32xf32>
    %124 = arith.mulf %123, %123 : vector<16x32xf32>
    %125 = arith.addf %87, %124 : vector<16x32xf32>
    %126 = vector.extract_strided_slice %113 {offsets = [0, 3], sizes = [16, 1], strides = [1, 1]} : vector<16x32xf32> to vector<16x1xf32>
    %cst_82 = arith.constant 0.000000e+00 : f32
    %127 = vector.broadcast %cst_82 : f32 to vector<16x1xf32>
    %128 = arith.maximumf %126, %127 : vector<16x1xf32>
    %129 = vector.extract_strided_slice %99 {offsets = [0, 3], sizes = [16, 1], strides = [1, 1]} : vector<16x32xf32> to vector<16x1xf32>
    %130 = arith.mulf %128, %128 : vector<16x1xf32>
    %131 = arith.addf %129, %130 : vector<16x1xf32>
    %132 = arith.truncf %131 : vector<16x1xf32> to vector<16x1xbf16>
    %c16_83 = arith.constant 16 : index
    %c3_84 = arith.constant 3 : index
    %133 = vector.load %arg9[%c16_83, %c3_84] : memref<32x32xbf16, #tpu.memory_space<vmem>>, vector<16x1xbf16>
    tpu.vector_store %arg9[%c16_83, %c3_84], %132 {strides = array<i32>} : memref<32x32xbf16, #tpu.memory_space<vmem>>, vector<16x1xbf16>,
    %cst_85 = arith.constant 0.000000e+00 : f32
    %134 = vector.broadcast %cst_85 : f32 to vector<16x32xf32>
    %135 = arith.maximumf %113, %134 : vector<16x32xf32>
    %136 = arith.mulf %135, %135 : vector<16x32xf32>
    %137 = arith.addf %99, %136 : vector<16x32xf32>
    %c0_86 = arith.constant 0 : index
    %c0_87 = arith.constant 0 : index
    %138 = vector.load %arg9[%c0_86, %c0_87] : memref<32x32xbf16, #tpu.memory_space<vmem>>, vector<16x32xbf16>
    %c3_88 = arith.constant 3 : index
    %c0_89 = arith.constant 0 : index
    %c0_90 = arith.constant 0 : index
    %139 = vector.load %arg4[%c3_88, %c0_89, %c0_90] : memref<31x32x32xbf16, #tpu.memory_space<vmem>>, vector<1x32x32xbf16>
    %140 = vector.shape_cast %139 : vector<1x32x32xbf16> to vector<32x32xbf16>
    %cst_91 = arith.constant dense<0.000000e+00> : vector<16x32xf32>
    %141 = tpu.matmul %138, %140, %cst_91 {dimension_numbers = #tpu.dot_dimension_numbers<[1], [0], [0], [1], [0, 0, 1, 1], [], []>} : vector<16x32xbf16>, vector<32x32xbf16>, vector<16x32xf32> -> vector<16x32xf32>
    %c3_92 = arith.constant 3 : index
    %c0_93 = arith.constant 0 : index
    %142 = vector.load %arg5[%c3_92, %c0_93] : memref<31x32xf32, #tpu.memory_space<vmem>>, vector<1x32xf32>
    %143 = vector.broadcast %142 : vector<1x32xf32> to vector<16x32xf32>
    %144 = arith.addf %141, %143 : vector<16x32xf32>
    %c16_94 = arith.constant 16 : index
    %c0_95 = arith.constant 0 : index
    %145 = vector.load %arg9[%c16_94, %c0_95] : memref<32x32xbf16, #tpu.memory_space<vmem>>, vector<16x32xbf16>
    %c3_96 = arith.constant 3 : index
    %c0_97 = arith.constant 0 : index
    %c0_98 = arith.constant 0 : index
    %146 = vector.load %arg4[%c3_96, %c0_97, %c0_98] : memref<31x32x32xbf16, #tpu.memory_space<vmem>>, vector<1x32x32xbf16>
    %147 = vector.shape_cast %146 : vector<1x32x32xbf16> to vector<32x32xbf16>
    %cst_99 = arith.constant dense<0.000000e+00> : vector<16x32xf32>
    %148 = tpu.matmul %145, %147, %cst_99 {dimension_numbers = #tpu.dot_dimension_numbers<[1], [0], [0], [1], [0, 0, 1, 1], [], []>} : vector<16x32xbf16>, vector<32x32xbf16>, vector<16x32xf32> -> vector<16x32xf32>
    %c3_100 = arith.constant 3 : index
    %c0_101 = arith.constant 0 : index
    %149 = vector.load %arg5[%c3_100, %c0_101] : memref<31x32xf32, #tpu.memory_space<vmem>>, vector<1x32xf32>
    %150 = vector.broadcast %149 : vector<1x32xf32> to vector<16x32xf32>
    %151 = arith.addf %148, %150 : vector<16x32xf32>
    %152 = vector.extract_strided_slice %144 {offsets = [0, 4], sizes = [16, 1], strides = [1, 1]} : vector<16x32xf32> to vector<16x1xf32>
    %cst_102 = arith.constant 0.000000e+00 : f32
    %153 = vector.broadcast %cst_102 : f32 to vector<16x1xf32>
    %154 = arith.maximumf %152, %153 : vector<16x1xf32>
    %155 = vector.extract_strided_slice %125 {offsets = [0, 4], sizes = [16, 1], strides = [1, 1]} : vector<16x32xf32> to vector<16x1xf32>
    %156 = arith.mulf %154, %154 : vector<16x1xf32>
    %157 = arith.addf %155, %156 : vector<16x1xf32>
    %158 = arith.truncf %157 : vector<16x1xf32> to vector<16x1xbf16>
    %c0_103 = arith.constant 0 : index
    %c4 = arith.constant 4 : index
    %159 = vector.load %arg9[%c0_103, %c4] : memref<32x32xbf16, #tpu.memory_space<vmem>>, vector<16x1xbf16>
    tpu.vector_store %arg9[%c0_103, %c4], %158 {strides = array<i32>} : memref<32x32xbf16, #tpu.memory_space<vmem>>, vector<16x1xbf16>,
    %cst_104 = arith.constant 0.000000e+00 : f32
    %160 = vector.broadcast %cst_104 : f32 to vector<16x32xf32>
    %161 = arith.maximumf %144, %160 : vector<16x32xf32>
    %162 = arith.mulf %161, %161 : vector<16x32xf32>
    %163 = arith.addf %125, %162 : vector<16x32xf32>
    %164 = vector.extract_strided_slice %151 {offsets = [0, 4], sizes = [16, 1], strides = [1, 1]} : vector<16x32xf32> to vector<16x1xf32>
    %cst_105 = arith.constant 0.000000e+00 : f32
    %165 = vector.broadcast %cst_105 : f32 to vector<16x1xf32>
    %166 = arith.maximumf %164, %165 : vector<16x1xf32>
    %167 = vector.extract_strided_slice %137 {offsets = [0, 4], sizes = [16, 1], strides = [1, 1]} : vector<16x32xf32> to vector<16x1xf32>
    %168 = arith.mulf %166, %166 : vector<16x1xf32>
    %169 = arith.addf %167, %168 : vector<16x1xf32>
    %170 = arith.truncf %169 : vector<16x1xf32> to vector<16x1xbf16>
    %c16_106 = arith.constant 16 : index
    %c4_107 = arith.constant 4 : index
    %171 = vector.load %arg9[%c16_106, %c4_107] : memref<32x32xbf16, #tpu.memory_space<vmem>>, vector<16x1xbf16>
    tpu.vector_store %arg9[%c16_106, %c4_107], %170 {strides = array<i32>} : memref<32x32xbf16, #tpu.memory_space<vmem>>, vector<16x1xbf16>,
    %cst_108 = arith.constant 0.000000e+00 : f32
    %172 = vector.broadcast %cst_108 : f32 to vector<16x32xf32>
    %173 = arith.maximumf %151, %172 : vector<16x32xf32>
    %174 = arith.mulf %173, %173 : vector<16x32xf32>
    %175 = arith.addf %137, %174 : vector<16x32xf32>
    %c0_109 = arith.constant 0 : index
    %c0_110 = arith.constant 0 : index
    %176 = vector.load %arg9[%c0_109, %c0_110] : memref<32x32xbf16, #tpu.memory_space<vmem>>, vector<16x32xbf16>
    %c4_111 = arith.constant 4 : index
    %c0_112 = arith.constant 0 : index
    %c0_113 = arith.constant 0 : index
    %177 = vector.load %arg4[%c4_111, %c0_112, %c0_113] : memref<31x32x32xbf16, #tpu.memory_space<vmem>>, vector<1x32x32xbf16>
    %178 = vector.shape_cast %177 : vector<1x32x32xbf16> to vector<32x32xbf16>
    %cst_114 = arith.constant dense<0.000000e+00> : vector<16x32xf32>
    %179 = tpu.matmul %176, %178, %cst_114 {dimension_numbers = #tpu.dot_dimension_numbers<[1], [0], [0], [1], [0, 0, 1, 1], [], []>} : vector<16x32xbf16>, vector<32x32xbf16>, vector<16x32xf32> -> vector<16x32xf32>
    %c4_115 = arith.constant 4 : index
    %c0_116 = arith.constant 0 : index
    %180 = vector.load %arg5[%c4_115, %c0_116] : memref<31x32xf32, #tpu.memory_space<vmem>>, vector<1x32xf32>
    %181 = vector.broadcast %180 : vector<1x32xf32> to vector<16x32xf32>
    %182 = arith.addf %179, %181 : vector<16x32xf32>
    %c16_117 = arith.constant 16 : index
    %c0_118 = arith.constant 0 : index
    %183 = vector.load %arg9[%c16_117, %c0_118] : memref<32x32xbf16, #tpu.memory_space<vmem>>, vector<16x32xbf16>
    %c4_119 = arith.constant 4 : index
    %c0_120 = arith.constant 0 : index
    %c0_121 = arith.constant 0 : index
    %184 = vector.load %arg4[%c4_119, %c0_120, %c0_121] : memref<31x32x32xbf16, #tpu.memory_space<vmem>>, vector<1x32x32xbf16>
    %185 = vector.shape_cast %184 : vector<1x32x32xbf16> to vector<32x32xbf16>
    %cst_122 = arith.constant dense<0.000000e+00> : vector<16x32xf32>
    %186 = tpu.matmul %183, %185, %cst_122 {dimension_numbers = #tpu.dot_dimension_numbers<[1], [0], [0], [1], [0, 0, 1, 1], [], []>} : vector<16x32xbf16>, vector<32x32xbf16>, vector<16x32xf32> -> vector<16x32xf32>
    %c4_123 = arith.constant 4 : index
    %c0_124 = arith.constant 0 : index
    %187 = vector.load %arg5[%c4_123, %c0_124] : memref<31x32xf32, #tpu.memory_space<vmem>>, vector<1x32xf32>
    %188 = vector.broadcast %187 : vector<1x32xf32> to vector<16x32xf32>
    %189 = arith.addf %186, %188 : vector<16x32xf32>
    %190 = vector.extract_strided_slice %182 {offsets = [0, 5], sizes = [16, 1], strides = [1, 1]} : vector<16x32xf32> to vector<16x1xf32>
    %cst_125 = arith.constant 0.000000e+00 : f32
    %191 = vector.broadcast %cst_125 : f32 to vector<16x1xf32>
    %192 = arith.maximumf %190, %191 : vector<16x1xf32>
    %193 = vector.extract_strided_slice %163 {offsets = [0, 5], sizes = [16, 1], strides = [1, 1]} : vector<16x32xf32> to vector<16x1xf32>
    %194 = arith.mulf %192, %192 : vector<16x1xf32>
    %195 = arith.addf %193, %194 : vector<16x1xf32>
    %196 = arith.truncf %195 : vector<16x1xf32> to vector<16x1xbf16>
    %c0_126 = arith.constant 0 : index
    %c5 = arith.constant 5 : index
    %197 = vector.load %arg9[%c0_126, %c5] : memref<32x32xbf16, #tpu.memory_space<vmem>>, vector<16x1xbf16>
    tpu.vector_store %arg9[%c0_126, %c5], %196 {strides = array<i32>} : memref<32x32xbf16, #tpu.memory_space<vmem>>, vector<16x1xbf16>,
    %cst_127 = arith.constant 0.000000e+00 : f32
    %198 = vector.broadcast %cst_127 : f32 to vector<16x32xf32>
    %199 = arith.maximumf %182, %198 : vector<16x32xf32>
    %200 = arith.mulf %199, %199 : vector<16x32xf32>
    %201 = arith.addf %163, %200 : vector<16x32xf32>
    %202 = vector.extract_strided_slice %189 {offsets = [0, 5], sizes = [16, 1], strides = [1, 1]} : vector<16x32xf32> to vector<16x1xf32>
    %cst_128 = arith.constant 0.000000e+00 : f32
    %203 = vector.broadcast %cst_128 : f32 to vector<16x1xf32>
    %204 = arith.maximumf %202, %203 : vector<16x1xf32>
    %205 = vector.extract_strided_slice %175 {offsets = [0, 5], sizes = [16, 1], strides = [1, 1]} : vector<16x32xf32> to vector<16x1xf32>
    %206 = arith.mulf %204, %204 : vector<16x1xf32>
    %207 = arith.addf %205, %206 : vector<16x1xf32>
    %208 = arith.truncf %207 : vector<16x1xf32> to vector<16x1xbf16>
    %c16_129 = arith.constant 16 : index
    %c5_130 = arith.constant 5 : index
    %209 = vector.load %arg9[%c16_129, %c5_130] : memref<32x32xbf16, #tpu.memory_space<vmem>>, vector<16x1xbf16>
    tpu.vector_store %arg9[%c16_129, %c5_130], %208 {strides = array<i32>} : memref<32x32xbf16, #tpu.memory_space<vmem>>, vector<16x1xbf16>,
    %cst_131 = arith.constant 0.000000e+00 : f32
    %210 = vector.broadcast %cst_131 : f32 to vector<16x32xf32>
    %211 = arith.maximumf %189, %210 : vector<16x32xf32>
    %212 = arith.mulf %211, %211 : vector<16x32xf32>
    %213 = arith.addf %175, %212 : vector<16x32xf32>
    %c0_132 = arith.constant 0 : index
    %c0_133 = arith.constant 0 : index
    %214 = vector.load %arg9[%c0_132, %c0_133] : memref<32x32xbf16, #tpu.memory_space<vmem>>, vector<16x32xbf16>
    %c5_134 = arith.constant 5 : index
    %c0_135 = arith.constant 0 : index
    %c0_136 = arith.constant 0 : index
    %215 = vector.load %arg4[%c5_134, %c0_135, %c0_136] : memref<31x32x32xbf16, #tpu.memory_space<vmem>>, vector<1x32x32xbf16>
    %216 = vector.shape_cast %215 : vector<1x32x32xbf16> to vector<32x32xbf16>
    %cst_137 = arith.constant dense<0.000000e+00> : vector<16x32xf32>
    %217 = tpu.matmul %214, %216, %cst_137 {dimension_numbers = #tpu.dot_dimension_numbers<[1], [0], [0], [1], [0, 0, 1, 1], [], []>} : vector<16x32xbf16>, vector<32x32xbf16>, vector<16x32xf32> -> vector<16x32xf32>
    %c5_138 = arith.constant 5 : index
    %c0_139 = arith.constant 0 : index
    %218 = vector.load %arg5[%c5_138, %c0_139] : memref<31x32xf32, #tpu.memory_space<vmem>>, vector<1x32xf32>
    %219 = vector.broadcast %218 : vector<1x32xf32> to vector<16x32xf32>
    %220 = arith.addf %217, %219 : vector<16x32xf32>
    %c16_140 = arith.constant 16 : index
    %c0_141 = arith.constant 0 : index
    %221 = vector.load %arg9[%c16_140, %c0_141] : memref<32x32xbf16, #tpu.memory_space<vmem>>, vector<16x32xbf16>
    %c5_142 = arith.constant 5 : index
    %c0_143 = arith.constant 0 : index
    %c0_144 = arith.constant 0 : index
    %222 = vector.load %arg4[%c5_142, %c0_143, %c0_144] : memref<31x32x32xbf16, #tpu.memory_space<vmem>>, vector<1x32x32xbf16>
    %223 = vector.shape_cast %222 : vector<1x32x32xbf16> to vector<32x32xbf16>
    %cst_145 = arith.constant dense<0.000000e+00> : vector<16x32xf32>
    %224 = tpu.matmul %221, %223, %cst_145 {dimension_numbers = #tpu.dot_dimension_numbers<[1], [0], [0], [1], [0, 0, 1, 1], [], []>} : vector<16x32xbf16>, vector<32x32xbf16>, vector<16x32xf32> -> vector<16x32xf32>
    %c5_146 = arith.constant 5 : index
    %c0_147 = arith.constant 0 : index
    %225 = vector.load %arg5[%c5_146, %c0_147] : memref<31x32xf32, #tpu.memory_space<vmem>>, vector<1x32xf32>
    %226 = vector.broadcast %225 : vector<1x32xf32> to vector<16x32xf32>
    %227 = arith.addf %224, %226 : vector<16x32xf32>
    %228 = vector.extract_strided_slice %220 {offsets = [0, 6], sizes = [16, 1], strides = [1, 1]} : vector<16x32xf32> to vector<16x1xf32>
    %cst_148 = arith.constant 0.000000e+00 : f32
    %229 = vector.broadcast %cst_148 : f32 to vector<16x1xf32>
    %230 = arith.maximumf %228, %229 : vector<16x1xf32>
    %231 = vector.extract_strided_slice %201 {offsets = [0, 6], sizes = [16, 1], strides = [1, 1]} : vector<16x32xf32> to vector<16x1xf32>
    %232 = arith.mulf %230, %230 : vector<16x1xf32>
    %233 = arith.addf %231, %232 : vector<16x1xf32>
    %234 = arith.truncf %233 : vector<16x1xf32> to vector<16x1xbf16>
    %c0_149 = arith.constant 0 : index
    %c6 = arith.constant 6 : index
    %235 = vector.load %arg9[%c0_149, %c6] : memref<32x32xbf16, #tpu.memory_space<vmem>>, vector<16x1xbf16>
    tpu.vector_store %arg9[%c0_149, %c6], %234 {strides = array<i32>} : memref<32x32xbf16, #tpu.memory_space<vmem>>, vector<16x1xbf16>,
    %cst_150 = arith.constant 0.000000e+00 : f32
    %236 = vector.broadcast %cst_150 : f32 to vector<16x32xf32>
    %237 = arith.maximumf %220, %236 : vector<16x32xf32>
    %238 = arith.mulf %237, %237 : vector<16x32xf32>
    %239 = arith.addf %201, %238 : vector<16x32xf32>
    %240 = vector.extract_strided_slice %227 {offsets = [0, 6], sizes = [16, 1], strides = [1, 1]} : vector<16x32xf32> to vector<16x1xf32>
    %cst_151 = arith.constant 0.000000e+00 : f32
    %241 = vector.broadcast %cst_151 : f32 to vector<16x1xf32>
    %242 = arith.maximumf %240, %241 : vector<16x1xf32>
    %243 = vector.extract_strided_slice %213 {offsets = [0, 6], sizes = [16, 1], strides = [1, 1]} : vector<16x32xf32> to vector<16x1xf32>
    %244 = arith.mulf %242, %242 : vector<16x1xf32>
    %245 = arith.addf %243, %244 : vector<16x1xf32>
    %246 = arith.truncf %245 : vector<16x1xf32> to vector<16x1xbf16>
    %c16_152 = arith.constant 16 : index
    %c6_153 = arith.constant 6 : index
    %247 = vector.load %arg9[%c16_152, %c6_153] : memref<32x32xbf16, #tpu.memory_space<vmem>>, vector<16x1xbf16>
    tpu.vector_store %arg9[%c16_152, %c6_153], %246 {strides = array<i32>} : memref<32x32xbf16, #tpu.memory_space<vmem>>, vector<16x1xbf16>,
    %cst_154 = arith.constant 0.000000e+00 : f32
    %248 = vector.broadcast %cst_154 : f32 to vector<16x32xf32>
    %249 = arith.maximumf %227, %248 : vector<16x32xf32>
    %250 = arith.mulf %249, %249 : vector<16x32xf32>
    %251 = arith.addf %213, %250 : vector<16x32xf32>
    %c0_155 = arith.constant 0 : index
    %c0_156 = arith.constant 0 : index
    %252 = vector.load %arg9[%c0_155, %c0_156] : memref<32x32xbf16, #tpu.memory_space<vmem>>, vector<16x32xbf16>
    %c6_157 = arith.constant 6 : index
    %c0_158 = arith.constant 0 : index
    %c0_159 = arith.constant 0 : index
    %253 = vector.load %arg4[%c6_157, %c0_158, %c0_159] : memref<31x32x32xbf16, #tpu.memory_space<vmem>>, vector<1x32x32xbf16>
    %254 = vector.shape_cast %253 : vector<1x32x32xbf16> to vector<32x32xbf16>
    %cst_160 = arith.constant dense<0.000000e+00> : vector<16x32xf32>
    %255 = tpu.matmul %252, %254, %cst_160 {dimension_numbers = #tpu.dot_dimension_numbers<[1], [0], [0], [1], [0, 0, 1, 1], [], []>} : vector<16x32xbf16>, vector<32x32xbf16>, vector<16x32xf32> -> vector<16x32xf32>
    %c6_161 = arith.constant 6 : index
    %c0_162 = arith.constant 0 : index
    %256 = vector.load %arg5[%c6_161, %c0_162] : memref<31x32xf32, #tpu.memory_space<vmem>>, vector<1x32xf32>
    %257 = vector.broadcast %256 : vector<1x32xf32> to vector<16x32xf32>
    %258 = arith.addf %255, %257 : vector<16x32xf32>
    %c16_163 = arith.constant 16 : index
    %c0_164 = arith.constant 0 : index
    %259 = vector.load %arg9[%c16_163, %c0_164] : memref<32x32xbf16, #tpu.memory_space<vmem>>, vector<16x32xbf16>
    %c6_165 = arith.constant 6 : index
    %c0_166 = arith.constant 0 : index
    %c0_167 = arith.constant 0 : index
    %260 = vector.load %arg4[%c6_165, %c0_166, %c0_167] : memref<31x32x32xbf16, #tpu.memory_space<vmem>>, vector<1x32x32xbf16>
    %261 = vector.shape_cast %260 : vector<1x32x32xbf16> to vector<32x32xbf16>
    %cst_168 = arith.constant dense<0.000000e+00> : vector<16x32xf32>
    %262 = tpu.matmul %259, %261, %cst_168 {dimension_numbers = #tpu.dot_dimension_numbers<[1], [0], [0], [1], [0, 0, 1, 1], [], []>} : vector<16x32xbf16>, vector<32x32xbf16>, vector<16x32xf32> -> vector<16x32xf32>
    %c6_169 = arith.constant 6 : index
    %c0_170 = arith.constant 0 : index
    %263 = vector.load %arg5[%c6_169, %c0_170] : memref<31x32xf32, #tpu.memory_space<vmem>>, vector<1x32xf32>
    %264 = vector.broadcast %263 : vector<1x32xf32> to vector<16x32xf32>
    %265 = arith.addf %262, %264 : vector<16x32xf32>
    %266 = vector.extract_strided_slice %258 {offsets = [0, 7], sizes = [16, 1], strides = [1, 1]} : vector<16x32xf32> to vector<16x1xf32>
    %cst_171 = arith.constant 0.000000e+00 : f32
    %267 = vector.broadcast %cst_171 : f32 to vector<16x1xf32>
    %268 = arith.maximumf %266, %267 : vector<16x1xf32>
    %269 = vector.extract_strided_slice %239 {offsets = [0, 7], sizes = [16, 1], strides = [1, 1]} : vector<16x32xf32> to vector<16x1xf32>
    %270 = arith.mulf %268, %268 : vector<16x1xf32>
    %271 = arith.addf %269, %270 : vector<16x1xf32>
    %272 = arith.truncf %271 : vector<16x1xf32> to vector<16x1xbf16>
    %c0_172 = arith.constant 0 : index
    %c7 = arith.constant 7 : index
    %273 = vector.load %arg9[%c0_172, %c7] : memref<32x32xbf16, #tpu.memory_space<vmem>>, vector<16x1xbf16>
    tpu.vector_store %arg9[%c0_172, %c7], %272 {strides = array<i32>} : memref<32x32xbf16, #tpu.memory_space<vmem>>, vector<16x1xbf16>,
    %cst_173 = arith.constant 0.000000e+00 : f32
    %274 = vector.broadcast %cst_173 : f32 to vector<16x32xf32>
    %275 = arith.maximumf %258, %274 : vector<16x32xf32>
    %276 = arith.mulf %275, %275 : vector<16x32xf32>
    %277 = arith.addf %239, %276 : vector<16x32xf32>
    %278 = vector.extract_strided_slice %265 {offsets = [0, 7], sizes = [16, 1], strides = [1, 1]} : vector<16x32xf32> to vector<16x1xf32>
    %cst_174 = arith.constant 0.000000e+00 : f32
    %279 = vector.broadcast %cst_174 : f32 to vector<16x1xf32>
    %280 = arith.maximumf %278, %279 : vector<16x1xf32>
    %281 = vector.extract_strided_slice %251 {offsets = [0, 7], sizes = [16, 1], strides = [1, 1]} : vector<16x32xf32> to vector<16x1xf32>
    %282 = arith.mulf %280, %280 : vector<16x1xf32>
    %283 = arith.addf %281, %282 : vector<16x1xf32>
    %284 = arith.truncf %283 : vector<16x1xf32> to vector<16x1xbf16>
    %c16_175 = arith.constant 16 : index
    %c7_176 = arith.constant 7 : index
    %285 = vector.load %arg9[%c16_175, %c7_176] : memref<32x32xbf16, #tpu.memory_space<vmem>>, vector<16x1xbf16>
    tpu.vector_store %arg9[%c16_175, %c7_176], %284 {strides = array<i32>} : memref<32x32xbf16, #tpu.memory_space<vmem>>, vector<16x1xbf16>,
    %cst_177 = arith.constant 0.000000e+00 : f32
    %286 = vector.broadcast %cst_177 : f32 to vector<16x32xf32>
    %287 = arith.maximumf %265, %286 : vector<16x32xf32>
    %288 = arith.mulf %287, %287 : vector<16x32xf32>
    %289 = arith.addf %251, %288 : vector<16x32xf32>
    %c0_178 = arith.constant 0 : index
    %c0_179 = arith.constant 0 : index
    %290 = vector.load %arg9[%c0_178, %c0_179] : memref<32x32xbf16, #tpu.memory_space<vmem>>, vector<16x32xbf16>
    %c7_180 = arith.constant 7 : index
    %c0_181 = arith.constant 0 : index
    %c0_182 = arith.constant 0 : index
    %291 = vector.load %arg4[%c7_180, %c0_181, %c0_182] : memref<31x32x32xbf16, #tpu.memory_space<vmem>>, vector<1x32x32xbf16>
    %292 = vector.shape_cast %291 : vector<1x32x32xbf16> to vector<32x32xbf16>
    %cst_183 = arith.constant dense<0.000000e+00> : vector<16x32xf32>
    %293 = tpu.matmul %290, %292, %cst_183 {dimension_numbers = #tpu.dot_dimension_numbers<[1], [0], [0], [1], [0, 0, 1, 1], [], []>} : vector<16x32xbf16>, vector<32x32xbf16>, vector<16x32xf32> -> vector<16x32xf32>
    %c7_184 = arith.constant 7 : index
    %c0_185 = arith.constant 0 : index
    %294 = vector.load %arg5[%c7_184, %c0_185] : memref<31x32xf32, #tpu.memory_space<vmem>>, vector<1x32xf32>
    %295 = vector.broadcast %294 : vector<1x32xf32> to vector<16x32xf32>
    %296 = arith.addf %293, %295 : vector<16x32xf32>
    %c16_186 = arith.constant 16 : index
    %c0_187 = arith.constant 0 : index
    %297 = vector.load %arg9[%c16_186, %c0_187] : memref<32x32xbf16, #tpu.memory_space<vmem>>, vector<16x32xbf16>
    %c7_188 = arith.constant 7 : index
    %c0_189 = arith.constant 0 : index
    %c0_190 = arith.constant 0 : index
    %298 = vector.load %arg4[%c7_188, %c0_189, %c0_190] : memref<31x32x32xbf16, #tpu.memory_space<vmem>>, vector<1x32x32xbf16>
    %299 = vector.shape_cast %298 : vector<1x32x32xbf16> to vector<32x32xbf16>
    %cst_191 = arith.constant dense<0.000000e+00> : vector<16x32xf32>
    %300 = tpu.matmul %297, %299, %cst_191 {dimension_numbers = #tpu.dot_dimension_numbers<[1], [0], [0], [1], [0, 0, 1, 1], [], []>} : vector<16x32xbf16>, vector<32x32xbf16>, vector<16x32xf32> -> vector<16x32xf32>
    %c7_192 = arith.constant 7 : index
    %c0_193 = arith.constant 0 : index
    %301 = vector.load %arg5[%c7_192, %c0_193] : memref<31x32xf32, #tpu.memory_space<vmem>>, vector<1x32xf32>
    %302 = vector.broadcast %301 : vector<1x32xf32> to vector<16x32xf32>
    %303 = arith.addf %300, %302 : vector<16x32xf32>
    %304 = vector.extract_strided_slice %296 {offsets = [0, 8], sizes = [16, 1], strides = [1, 1]} : vector<16x32xf32> to vector<16x1xf32>
    %cst_194 = arith.constant 0.000000e+00 : f32
    %305 = vector.broadcast %cst_194 : f32 to vector<16x1xf32>
    %306 = arith.maximumf %304, %305 : vector<16x1xf32>
    %307 = vector.extract_strided_slice %277 {offsets = [0, 8], sizes = [16, 1], strides = [1, 1]} : vector<16x32xf32> to vector<16x1xf32>
    %308 = arith.mulf %306, %306 : vector<16x1xf32>
    %309 = arith.addf %307, %308 : vector<16x1xf32>
    %310 = arith.truncf %309 : vector<16x1xf32> to vector<16x1xbf16>
    %c0_195 = arith.constant 0 : index
    %c8 = arith.constant 8 : index
    %311 = vector.load %arg9[%c0_195, %c8] : memref<32x32xbf16, #tpu.memory_space<vmem>>, vector<16x1xbf16>
    tpu.vector_store %arg9[%c0_195, %c8], %310 {strides = array<i32>} : memref<32x32xbf16, #tpu.memory_space<vmem>>, vector<16x1xbf16>,
    %cst_196 = arith.constant 0.000000e+00 : f32
    %312 = vector.broadcast %cst_196 : f32 to vector<16x32xf32>
    %313 = arith.maximumf %296, %312 : vector<16x32xf32>
    %314 = arith.mulf %313, %313 : vector<16x32xf32>
    %315 = arith.addf %277, %314 : vector<16x32xf32>
    %316 = vector.extract_strided_slice %303 {offsets = [0, 8], sizes = [16, 1], strides = [1, 1]} : vector<16x32xf32> to vector<16x1xf32>
    %cst_197 = arith.constant 0.000000e+00 : f32
    %317 = vector.broadcast %cst_197 : f32 to vector<16x1xf32>
    %318 = arith.maximumf %316, %317 : vector<16x1xf32>
    %319 = vector.extract_strided_slice %289 {offsets = [0, 8], sizes = [16, 1], strides = [1, 1]} : vector<16x32xf32> to vector<16x1xf32>
    %320 = arith.mulf %318, %318 : vector<16x1xf32>
    %321 = arith.addf %319, %320 : vector<16x1xf32>
    %322 = arith.truncf %321 : vector<16x1xf32> to vector<16x1xbf16>
    %c16_198 = arith.constant 16 : index
    %c8_199 = arith.constant 8 : index
    %323 = vector.load %arg9[%c16_198, %c8_199] : memref<32x32xbf16, #tpu.memory_space<vmem>>, vector<16x1xbf16>
    tpu.vector_store %arg9[%c16_198, %c8_199], %322 {strides = array<i32>} : memref<32x32xbf16, #tpu.memory_space<vmem>>, vector<16x1xbf16>,
    %cst_200 = arith.constant 0.000000e+00 : f32
    %324 = vector.broadcast %cst_200 : f32 to vector<16x32xf32>
    %325 = arith.maximumf %303, %324 : vector<16x32xf32>
    %326 = arith.mulf %325, %325 : vector<16x32xf32>
    %327 = arith.addf %289, %326 : vector<16x32xf32>
    %c0_201 = arith.constant 0 : index
    %c0_202 = arith.constant 0 : index
    %328 = vector.load %arg9[%c0_201, %c0_202] : memref<32x32xbf16, #tpu.memory_space<vmem>>, vector<16x32xbf16>
    %c8_203 = arith.constant 8 : index
    %c0_204 = arith.constant 0 : index
    %c0_205 = arith.constant 0 : index
    %329 = vector.load %arg4[%c8_203, %c0_204, %c0_205] : memref<31x32x32xbf16, #tpu.memory_space<vmem>>, vector<1x32x32xbf16>
    %330 = vector.shape_cast %329 : vector<1x32x32xbf16> to vector<32x32xbf16>
    %cst_206 = arith.constant dense<0.000000e+00> : vector<16x32xf32>
    %331 = tpu.matmul %328, %330, %cst_206 {dimension_numbers = #tpu.dot_dimension_numbers<[1], [0], [0], [1], [0, 0, 1, 1], [], []>} : vector<16x32xbf16>, vector<32x32xbf16>, vector<16x32xf32> -> vector<16x32xf32>
    %c8_207 = arith.constant 8 : index
    %c0_208 = arith.constant 0 : index
    %332 = vector.load %arg5[%c8_207, %c0_208] : memref<31x32xf32, #tpu.memory_space<vmem>>, vector<1x32xf32>
    %333 = vector.broadcast %332 : vector<1x32xf32> to vector<16x32xf32>
    %334 = arith.addf %331, %333 : vector<16x32xf32>
    %c16_209 = arith.constant 16 : index
    %c0_210 = arith.constant 0 : index
    %335 = vector.load %arg9[%c16_209, %c0_210] : memref<32x32xbf16, #tpu.memory_space<vmem>>, vector<16x32xbf16>
    %c8_211 = arith.constant 8 : index
    %c0_212 = arith.constant 0 : index
    %c0_213 = arith.constant 0 : index
    %336 = vector.load %arg4[%c8_211, %c0_212, %c0_213] : memref<31x32x32xbf16, #tpu.memory_space<vmem>>, vector<1x32x32xbf16>
    %337 = vector.shape_cast %336 : vector<1x32x32xbf16> to vector<32x32xbf16>
    %cst_214 = arith.constant dense<0.000000e+00> : vector<16x32xf32>
    %338 = tpu.matmul %335, %337, %cst_214 {dimension_numbers = #tpu.dot_dimension_numbers<[1], [0], [0], [1], [0, 0, 1, 1], [], []>} : vector<16x32xbf16>, vector<32x32xbf16>, vector<16x32xf32> -> vector<16x32xf32>
    %c8_215 = arith.constant 8 : index
    %c0_216 = arith.constant 0 : index
    %339 = vector.load %arg5[%c8_215, %c0_216] : memref<31x32xf32, #tpu.memory_space<vmem>>, vector<1x32xf32>
    %340 = vector.broadcast %339 : vector<1x32xf32> to vector<16x32xf32>
    %341 = arith.addf %338, %340 : vector<16x32xf32>
    %342 = vector.extract_strided_slice %334 {offsets = [0, 9], sizes = [16, 1], strides = [1, 1]} : vector<16x32xf32> to vector<16x1xf32>
    %cst_217 = arith.constant 0.000000e+00 : f32
    %343 = vector.broadcast %cst_217 : f32 to vector<16x1xf32>
    %344 = arith.maximumf %342, %343 : vector<16x1xf32>
    %345 = vector.extract_strided_slice %315 {offsets = [0, 9], sizes = [16, 1], strides = [1, 1]} : vector<16x32xf32> to vector<16x1xf32>
    %346 = arith.mulf %344, %344 : vector<16x1xf32>
    %347 = arith.addf %345, %346 : vector<16x1xf32>
    %348 = arith.truncf %347 : vector<16x1xf32> to vector<16x1xbf16>
    %c0_218 = arith.constant 0 : index
    %c9 = arith.constant 9 : index
    %349 = vector.load %arg9[%c0_218, %c9] : memref<32x32xbf16, #tpu.memory_space<vmem>>, vector<16x1xbf16>
    tpu.vector_store %arg9[%c0_218, %c9], %348 {strides = array<i32>} : memref<32x32xbf16, #tpu.memory_space<vmem>>, vector<16x1xbf16>,
    %cst_219 = arith.constant 0.000000e+00 : f32
    %350 = vector.broadcast %cst_219 : f32 to vector<16x32xf32>
    %351 = arith.maximumf %334, %350 : vector<16x32xf32>
    %352 = arith.mulf %351, %351 : vector<16x32xf32>
    %353 = arith.addf %315, %352 : vector<16x32xf32>
    %354 = vector.extract_strided_slice %341 {offsets = [0, 9], sizes = [16, 1], strides = [1, 1]} : vector<16x32xf32> to vector<16x1xf32>
    %cst_220 = arith.constant 0.000000e+00 : f32
    %355 = vector.broadcast %cst_220 : f32 to vector<16x1xf32>
    %356 = arith.maximumf %354, %355 : vector<16x1xf32>
    %357 = vector.extract_strided_slice %327 {offsets = [0, 9], sizes = [16, 1], strides = [1, 1]} : vector<16x32xf32> to vector<16x1xf32>
    %358 = arith.mulf %356, %356 : vector<16x1xf32>
    %359 = arith.addf %357, %358 : vector<16x1xf32>
    %360 = arith.truncf %359 : vector<16x1xf32> to vector<16x1xbf16>
    %c16_221 = arith.constant 16 : index
    %c9_222 = arith.constant 9 : index
    %361 = vector.load %arg9[%c16_221, %c9_222] : memref<32x32xbf16, #tpu.memory_space<vmem>>, vector<16x1xbf16>
    tpu.vector_store %arg9[%c16_221, %c9_222], %360 {strides = array<i32>} : memref<32x32xbf16, #tpu.memory_space<vmem>>, vector<16x1xbf16>,
    %cst_223 = arith.constant 0.000000e+00 : f32
    %362 = vector.broadcast %cst_223 : f32 to vector<16x32xf32>
    %363 = arith.maximumf %341, %362 : vector<16x32xf32>
    %364 = arith.mulf %363, %363 : vector<16x32xf32>
    %365 = arith.addf %327, %364 : vector<16x32xf32>
    %c0_224 = arith.constant 0 : index
    %c0_225 = arith.constant 0 : index
    %366 = vector.load %arg9[%c0_224, %c0_225] : memref<32x32xbf16, #tpu.memory_space<vmem>>, vector<16x32xbf16>
    %c9_226 = arith.constant 9 : index
    %c0_227 = arith.constant 0 : index
    %c0_228 = arith.constant 0 : index
    %367 = vector.load %arg4[%c9_226, %c0_227, %c0_228] : memref<31x32x32xbf16, #tpu.memory_space<vmem>>, vector<1x32x32xbf16>
    %368 = vector.shape_cast %367 : vector<1x32x32xbf16> to vector<32x32xbf16>
    %cst_229 = arith.constant dense<0.000000e+00> : vector<16x32xf32>
    %369 = tpu.matmul %366, %368, %cst_229 {dimension_numbers = #tpu.dot_dimension_numbers<[1], [0], [0], [1], [0, 0, 1, 1], [], []>} : vector<16x32xbf16>, vector<32x32xbf16>, vector<16x32xf32> -> vector<16x32xf32>
    %c9_230 = arith.constant 9 : index
    %c0_231 = arith.constant 0 : index
    %370 = vector.load %arg5[%c9_230, %c0_231] : memref<31x32xf32, #tpu.memory_space<vmem>>, vector<1x32xf32>
    %371 = vector.broadcast %370 : vector<1x32xf32> to vector<16x32xf32>
    %372 = arith.addf %369, %371 : vector<16x32xf32>
    %c16_232 = arith.constant 16 : index
    %c0_233 = arith.constant 0 : index
    %373 = vector.load %arg9[%c16_232, %c0_233] : memref<32x32xbf16, #tpu.memory_space<vmem>>, vector<16x32xbf16>
    %c9_234 = arith.constant 9 : index
    %c0_235 = arith.constant 0 : index
    %c0_236 = arith.constant 0 : index
    %374 = vector.load %arg4[%c9_234, %c0_235, %c0_236] : memref<31x32x32xbf16, #tpu.memory_space<vmem>>, vector<1x32x32xbf16>
    %375 = vector.shape_cast %374 : vector<1x32x32xbf16> to vector<32x32xbf16>
    %cst_237 = arith.constant dense<0.000000e+00> : vector<16x32xf32>
    %376 = tpu.matmul %373, %375, %cst_237 {dimension_numbers = #tpu.dot_dimension_numbers<[1], [0], [0], [1], [0, 0, 1, 1], [], []>} : vector<16x32xbf16>, vector<32x32xbf16>, vector<16x32xf32> -> vector<16x32xf32>
    %c9_238 = arith.constant 9 : index
    %c0_239 = arith.constant 0 : index
    %377 = vector.load %arg5[%c9_238, %c0_239] : memref<31x32xf32, #tpu.memory_space<vmem>>, vector<1x32xf32>
    %378 = vector.broadcast %377 : vector<1x32xf32> to vector<16x32xf32>
    %379 = arith.addf %376, %378 : vector<16x32xf32>
    %380 = vector.extract_strided_slice %372 {offsets = [0, 10], sizes = [16, 1], strides = [1, 1]} : vector<16x32xf32> to vector<16x1xf32>
    %cst_240 = arith.constant 0.000000e+00 : f32
    %381 = vector.broadcast %cst_240 : f32 to vector<16x1xf32>
    %382 = arith.maximumf %380, %381 : vector<16x1xf32>
    %383 = vector.extract_strided_slice %353 {offsets = [0, 10], sizes = [16, 1], strides = [1, 1]} : vector<16x32xf32> to vector<16x1xf32>
    %384 = arith.mulf %382, %382 : vector<16x1xf32>
    %385 = arith.addf %383, %384 : vector<16x1xf32>
    %386 = arith.truncf %385 : vector<16x1xf32> to vector<16x1xbf16>
    %c0_241 = arith.constant 0 : index
    %c10 = arith.constant 10 : index
    %387 = vector.load %arg9[%c0_241, %c10] : memref<32x32xbf16, #tpu.memory_space<vmem>>, vector<16x1xbf16>
    tpu.vector_store %arg9[%c0_241, %c10], %386 {strides = array<i32>} : memref<32x32xbf16, #tpu.memory_space<vmem>>, vector<16x1xbf16>,
    %cst_242 = arith.constant 0.000000e+00 : f32
    %388 = vector.broadcast %cst_242 : f32 to vector<16x32xf32>
    %389 = arith.maximumf %372, %388 : vector<16x32xf32>
    %390 = arith.mulf %389, %389 : vector<16x32xf32>
    %391 = arith.addf %353, %390 : vector<16x32xf32>
    %392 = vector.extract_strided_slice %379 {offsets = [0, 10], sizes = [16, 1], strides = [1, 1]} : vector<16x32xf32> to vector<16x1xf32>
    %cst_243 = arith.constant 0.000000e+00 : f32
    %393 = vector.broadcast %cst_243 : f32 to vector<16x1xf32>
    %394 = arith.maximumf %392, %393 : vector<16x1xf32>
    %395 = vector.extract_strided_slice %365 {offsets = [0, 10], sizes = [16, 1], strides = [1, 1]} : vector<16x32xf32> to vector<16x1xf32>
    %396 = arith.mulf %394, %394 : vector<16x1xf32>
    %397 = arith.addf %395, %396 : vector<16x1xf32>
    %398 = arith.truncf %397 : vector<16x1xf32> to vector<16x1xbf16>
    %c16_244 = arith.constant 16 : index
    %c10_245 = arith.constant 10 : index
    %399 = vector.load %arg9[%c16_244, %c10_245] : memref<32x32xbf16, #tpu.memory_space<vmem>>, vector<16x1xbf16>
    tpu.vector_store %arg9[%c16_244, %c10_245], %398 {strides = array<i32>} : memref<32x32xbf16, #tpu.memory_space<vmem>>, vector<16x1xbf16>,
    %cst_246 = arith.constant 0.000000e+00 : f32
    %400 = vector.broadcast %cst_246 : f32 to vector<16x32xf32>
    %401 = arith.maximumf %379, %400 : vector<16x32xf32>
    %402 = arith.mulf %401, %401 : vector<16x32xf32>
    %403 = arith.addf %365, %402 : vector<16x32xf32>
    %c0_247 = arith.constant 0 : index
    %c0_248 = arith.constant 0 : index
    %404 = vector.load %arg9[%c0_247, %c0_248] : memref<32x32xbf16, #tpu.memory_space<vmem>>, vector<16x32xbf16>
    %c10_249 = arith.constant 10 : index
    %c0_250 = arith.constant 0 : index
    %c0_251 = arith.constant 0 : index
    %405 = vector.load %arg4[%c10_249, %c0_250, %c0_251] : memref<31x32x32xbf16, #tpu.memory_space<vmem>>, vector<1x32x32xbf16>
    %406 = vector.shape_cast %405 : vector<1x32x32xbf16> to vector<32x32xbf16>
    %cst_252 = arith.constant dense<0.000000e+00> : vector<16x32xf32>
    %407 = tpu.matmul %404, %406, %cst_252 {dimension_numbers = #tpu.dot_dimension_numbers<[1], [0], [0], [1], [0, 0, 1, 1], [], []>} : vector<16x32xbf16>, vector<32x32xbf16>, vector<16x32xf32> -> vector<16x32xf32>
    %c10_253 = arith.constant 10 : index
    %c0_254 = arith.constant 0 : index
    %408 = vector.load %arg5[%c10_253, %c0_254] : memref<31x32xf32, #tpu.memory_space<vmem>>, vector<1x32xf32>
    %409 = vector.broadcast %408 : vector<1x32xf32> to vector<16x32xf32>
    %410 = arith.addf %407, %409 : vector<16x32xf32>
    %c16_255 = arith.constant 16 : index
    %c0_256 = arith.constant 0 : index
    %411 = vector.load %arg9[%c16_255, %c0_256] : memref<32x32xbf16, #tpu.memory_space<vmem>>, vector<16x32xbf16>
    %c10_257 = arith.constant 10 : index
    %c0_258 = arith.constant 0 : index
    %c0_259 = arith.constant 0 : index
    %412 = vector.load %arg4[%c10_257, %c0_258, %c0_259] : memref<31x32x32xbf16, #tpu.memory_space<vmem>>, vector<1x32x32xbf16>
    %413 = vector.shape_cast %412 : vector<1x32x32xbf16> to vector<32x32xbf16>
    %cst_260 = arith.constant dense<0.000000e+00> : vector<16x32xf32>
    %414 = tpu.matmul %411, %413, %cst_260 {dimension_numbers = #tpu.dot_dimension_numbers<[1], [0], [0], [1], [0, 0, 1, 1], [], []>} : vector<16x32xbf16>, vector<32x32xbf16>, vector<16x32xf32> -> vector<16x32xf32>
    %c10_261 = arith.constant 10 : index
    %c0_262 = arith.constant 0 : index
    %415 = vector.load %arg5[%c10_261, %c0_262] : memref<31x32xf32, #tpu.memory_space<vmem>>, vector<1x32xf32>
    %416 = vector.broadcast %415 : vector<1x32xf32> to vector<16x32xf32>
    %417 = arith.addf %414, %416 : vector<16x32xf32>
    %418 = vector.extract_strided_slice %410 {offsets = [0, 11], sizes = [16, 1], strides = [1, 1]} : vector<16x32xf32> to vector<16x1xf32>
    %cst_263 = arith.constant 0.000000e+00 : f32
    %419 = vector.broadcast %cst_263 : f32 to vector<16x1xf32>
    %420 = arith.maximumf %418, %419 : vector<16x1xf32>
    %421 = vector.extract_strided_slice %391 {offsets = [0, 11], sizes = [16, 1], strides = [1, 1]} : vector<16x32xf32> to vector<16x1xf32>
    %422 = arith.mulf %420, %420 : vector<16x1xf32>
    %423 = arith.addf %421, %422 : vector<16x1xf32>
    %424 = arith.truncf %423 : vector<16x1xf32> to vector<16x1xbf16>
    %c0_264 = arith.constant 0 : index
    %c11 = arith.constant 11 : index
    %425 = vector.load %arg9[%c0_264, %c11] : memref<32x32xbf16, #tpu.memory_space<vmem>>, vector<16x1xbf16>
    tpu.vector_store %arg9[%c0_264, %c11], %424 {strides = array<i32>} : memref<32x32xbf16, #tpu.memory_space<vmem>>, vector<16x1xbf16>,
    %cst_265 = arith.constant 0.000000e+00 : f32
    %426 = vector.broadcast %cst_265 : f32 to vector<16x32xf32>
    %427 = arith.maximumf %410, %426 : vector<16x32xf32>
    %428 = arith.mulf %427, %427 : vector<16x32xf32>
    %429 = arith.addf %391, %428 : vector<16x32xf32>
    %430 = vector.extract_strided_slice %417 {offsets = [0, 11], sizes = [16, 1], strides = [1, 1]} : vector<16x32xf32> to vector<16x1xf32>
    %cst_266 = arith.constant 0.000000e+00 : f32
    %431 = vector.broadcast %cst_266 : f32 to vector<16x1xf32>
    %432 = arith.maximumf %430, %431 : vector<16x1xf32>
    %433 = vector.extract_strided_slice %403 {offsets = [0, 11], sizes = [16, 1], strides = [1, 1]} : vector<16x32xf32> to vector<16x1xf32>
    %434 = arith.mulf %432, %432 : vector<16x1xf32>
    %435 = arith.addf %433, %434 : vector<16x1xf32>
    %436 = arith.truncf %435 : vector<16x1xf32> to vector<16x1xbf16>
    %c16_267 = arith.constant 16 : index
    %c11_268 = arith.constant 11 : index
    %437 = vector.load %arg9[%c16_267, %c11_268] : memref<32x32xbf16, #tpu.memory_space<vmem>>, vector<16x1xbf16>
    tpu.vector_store %arg9[%c16_267, %c11_268], %436 {strides = array<i32>} : memref<32x32xbf16, #tpu.memory_space<vmem>>, vector<16x1xbf16>,
    %cst_269 = arith.constant 0.000000e+00 : f32
    %438 = vector.broadcast %cst_269 : f32 to vector<16x32xf32>
    %439 = arith.maximumf %417, %438 : vector<16x32xf32>
    %440 = arith.mulf %439, %439 : vector<16x32xf32>
    %441 = arith.addf %403, %440 : vector<16x32xf32>
    %c0_270 = arith.constant 0 : index
    %c0_271 = arith.constant 0 : index
    %442 = vector.load %arg9[%c0_270, %c0_271] : memref<32x32xbf16, #tpu.memory_space<vmem>>, vector<16x32xbf16>
    %c11_272 = arith.constant 11 : index
    %c0_273 = arith.constant 0 : index
    %c0_274 = arith.constant 0 : index
    %443 = vector.load %arg4[%c11_272, %c0_273, %c0_274] : memref<31x32x32xbf16, #tpu.memory_space<vmem>>, vector<1x32x32xbf16>
    %444 = vector.shape_cast %443 : vector<1x32x32xbf16> to vector<32x32xbf16>
    %cst_275 = arith.constant dense<0.000000e+00> : vector<16x32xf32>
    %445 = tpu.matmul %442, %444, %cst_275 {dimension_numbers = #tpu.dot_dimension_numbers<[1], [0], [0], [1], [0, 0, 1, 1], [], []>} : vector<16x32xbf16>, vector<32x32xbf16>, vector<16x32xf32> -> vector<16x32xf32>
    %c11_276 = arith.constant 11 : index
    %c0_277 = arith.constant 0 : index
    %446 = vector.load %arg5[%c11_276, %c0_277] : memref<31x32xf32, #tpu.memory_space<vmem>>, vector<1x32xf32>
    %447 = vector.broadcast %446 : vector<1x32xf32> to vector<16x32xf32>
    %448 = arith.addf %445, %447 : vector<16x32xf32>
    %c16_278 = arith.constant 16 : index
    %c0_279 = arith.constant 0 : index
    %449 = vector.load %arg9[%c16_278, %c0_279] : memref<32x32xbf16, #tpu.memory_space<vmem>>, vector<16x32xbf16>
    %c11_280 = arith.constant 11 : index
    %c0_281 = arith.constant 0 : index
    %c0_282 = arith.constant 0 : index
    %450 = vector.load %arg4[%c11_280, %c0_281, %c0_282] : memref<31x32x32xbf16, #tpu.memory_space<vmem>>, vector<1x32x32xbf16>
    %451 = vector.shape_cast %450 : vector<1x32x32xbf16> to vector<32x32xbf16>
    %cst_283 = arith.constant dense<0.000000e+00> : vector<16x32xf32>
    %452 = tpu.matmul %449, %451, %cst_283 {dimension_numbers = #tpu.dot_dimension_numbers<[1], [0], [0], [1], [0, 0, 1, 1], [], []>} : vector<16x32xbf16>, vector<32x32xbf16>, vector<16x32xf32> -> vector<16x32xf32>
    %c11_284 = arith.constant 11 : index
    %c0_285 = arith.constant 0 : index
    %453 = vector.load %arg5[%c11_284, %c0_285] : memref<31x32xf32, #tpu.memory_space<vmem>>, vector<1x32xf32>
    %454 = vector.broadcast %453 : vector<1x32xf32> to vector<16x32xf32>
    %455 = arith.addf %452, %454 : vector<16x32xf32>
    %456 = vector.extract_strided_slice %448 {offsets = [0, 12], sizes = [16, 1], strides = [1, 1]} : vector<16x32xf32> to vector<16x1xf32>
    %cst_286 = arith.constant 0.000000e+00 : f32
    %457 = vector.broadcast %cst_286 : f32 to vector<16x1xf32>
    %458 = arith.maximumf %456, %457 : vector<16x1xf32>
    %459 = vector.extract_strided_slice %429 {offsets = [0, 12], sizes = [16, 1], strides = [1, 1]} : vector<16x32xf32> to vector<16x1xf32>
    %460 = arith.mulf %458, %458 : vector<16x1xf32>
    %461 = arith.addf %459, %460 : vector<16x1xf32>
    %462 = arith.truncf %461 : vector<16x1xf32> to vector<16x1xbf16>
    %c0_287 = arith.constant 0 : index
    %c12 = arith.constant 12 : index
    %463 = vector.load %arg9[%c0_287, %c12] : memref<32x32xbf16, #tpu.memory_space<vmem>>, vector<16x1xbf16>
    tpu.vector_store %arg9[%c0_287, %c12], %462 {strides = array<i32>} : memref<32x32xbf16, #tpu.memory_space<vmem>>, vector<16x1xbf16>,
    %cst_288 = arith.constant 0.000000e+00 : f32
    %464 = vector.broadcast %cst_288 : f32 to vector<16x32xf32>
    %465 = arith.maximumf %448, %464 : vector<16x32xf32>
    %466 = arith.mulf %465, %465 : vector<16x32xf32>
    %467 = arith.addf %429, %466 : vector<16x32xf32>
    %468 = vector.extract_strided_slice %455 {offsets = [0, 12], sizes = [16, 1], strides = [1, 1]} : vector<16x32xf32> to vector<16x1xf32>
    %cst_289 = arith.constant 0.000000e+00 : f32
    %469 = vector.broadcast %cst_289 : f32 to vector<16x1xf32>
    %470 = arith.maximumf %468, %469 : vector<16x1xf32>
    %471 = vector.extract_strided_slice %441 {offsets = [0, 12], sizes = [16, 1], strides = [1, 1]} : vector<16x32xf32> to vector<16x1xf32>
    %472 = arith.mulf %470, %470 : vector<16x1xf32>
    %473 = arith.addf %471, %472 : vector<16x1xf32>
    %474 = arith.truncf %473 : vector<16x1xf32> to vector<16x1xbf16>
    %c16_290 = arith.constant 16 : index
    %c12_291 = arith.constant 12 : index
    %475 = vector.load %arg9[%c16_290, %c12_291] : memref<32x32xbf16, #tpu.memory_space<vmem>>, vector<16x1xbf16>
    tpu.vector_store %arg9[%c16_290, %c12_291], %474 {strides = array<i32>} : memref<32x32xbf16, #tpu.memory_space<vmem>>, vector<16x1xbf16>,
    %cst_292 = arith.constant 0.000000e+00 : f32
    %476 = vector.broadcast %cst_292 : f32 to vector<16x32xf32>
    %477 = arith.maximumf %455, %476 : vector<16x32xf32>
    %478 = arith.mulf %477, %477 : vector<16x32xf32>
    %479 = arith.addf %441, %478 : vector<16x32xf32>
    %c0_293 = arith.constant 0 : index
    %c0_294 = arith.constant 0 : index
    %480 = vector.load %arg9[%c0_293, %c0_294] : memref<32x32xbf16, #tpu.memory_space<vmem>>, vector<16x32xbf16>
    %c12_295 = arith.constant 12 : index
    %c0_296 = arith.constant 0 : index
    %c0_297 = arith.constant 0 : index
    %481 = vector.load %arg4[%c12_295, %c0_296, %c0_297] : memref<31x32x32xbf16, #tpu.memory_space<vmem>>, vector<1x32x32xbf16>
    %482 = vector.shape_cast %481 : vector<1x32x32xbf16> to vector<32x32xbf16>
    %cst_298 = arith.constant dense<0.000000e+00> : vector<16x32xf32>
    %483 = tpu.matmul %480, %482, %cst_298 {dimension_numbers = #tpu.dot_dimension_numbers<[1], [0], [0], [1], [0, 0, 1, 1], [], []>} : vector<16x32xbf16>, vector<32x32xbf16>, vector<16x32xf32> -> vector<16x32xf32>
    %c12_299 = arith.constant 12 : index
    %c0_300 = arith.constant 0 : index
    %484 = vector.load %arg5[%c12_299, %c0_300] : memref<31x32xf32, #tpu.memory_space<vmem>>, vector<1x32xf32>
    %485 = vector.broadcast %484 : vector<1x32xf32> to vector<16x32xf32>
    %486 = arith.addf %483, %485 : vector<16x32xf32>
    %c16_301 = arith.constant 16 : index
    %c0_302 = arith.constant 0 : index
    %487 = vector.load %arg9[%c16_301, %c0_302] : memref<32x32xbf16, #tpu.memory_space<vmem>>, vector<16x32xbf16>
    %c12_303 = arith.constant 12 : index
    %c0_304 = arith.constant 0 : index
    %c0_305 = arith.constant 0 : index
    %488 = vector.load %arg4[%c12_303, %c0_304, %c0_305] : memref<31x32x32xbf16, #tpu.memory_space<vmem>>, vector<1x32x32xbf16>
    %489 = vector.shape_cast %488 : vector<1x32x32xbf16> to vector<32x32xbf16>
    %cst_306 = arith.constant dense<0.000000e+00> : vector<16x32xf32>
    %490 = tpu.matmul %487, %489, %cst_306 {dimension_numbers = #tpu.dot_dimension_numbers<[1], [0], [0], [1], [0, 0, 1, 1], [], []>} : vector<16x32xbf16>, vector<32x32xbf16>, vector<16x32xf32> -> vector<16x32xf32>
    %c12_307 = arith.constant 12 : index
    %c0_308 = arith.constant 0 : index
    %491 = vector.load %arg5[%c12_307, %c0_308] : memref<31x32xf32, #tpu.memory_space<vmem>>, vector<1x32xf32>
    %492 = vector.broadcast %491 : vector<1x32xf32> to vector<16x32xf32>
    %493 = arith.addf %490, %492 : vector<16x32xf32>
    %494 = vector.extract_strided_slice %486 {offsets = [0, 13], sizes = [16, 1], strides = [1, 1]} : vector<16x32xf32> to vector<16x1xf32>
    %cst_309 = arith.constant 0.000000e+00 : f32
    %495 = vector.broadcast %cst_309 : f32 to vector<16x1xf32>
    %496 = arith.maximumf %494, %495 : vector<16x1xf32>
    %497 = vector.extract_strided_slice %467 {offsets = [0, 13], sizes = [16, 1], strides = [1, 1]} : vector<16x32xf32> to vector<16x1xf32>
    %498 = arith.mulf %496, %496 : vector<16x1xf32>
    %499 = arith.addf %497, %498 : vector<16x1xf32>
    %500 = arith.truncf %499 : vector<16x1xf32> to vector<16x1xbf16>
    %c0_310 = arith.constant 0 : index
    %c13 = arith.constant 13 : index
    %501 = vector.load %arg9[%c0_310, %c13] : memref<32x32xbf16, #tpu.memory_space<vmem>>, vector<16x1xbf16>
    tpu.vector_store %arg9[%c0_310, %c13], %500 {strides = array<i32>} : memref<32x32xbf16, #tpu.memory_space<vmem>>, vector<16x1xbf16>,
    %cst_311 = arith.constant 0.000000e+00 : f32
    %502 = vector.broadcast %cst_311 : f32 to vector<16x32xf32>
    %503 = arith.maximumf %486, %502 : vector<16x32xf32>
    %504 = arith.mulf %503, %503 : vector<16x32xf32>
    %505 = arith.addf %467, %504 : vector<16x32xf32>
    %506 = vector.extract_strided_slice %493 {offsets = [0, 13], sizes = [16, 1], strides = [1, 1]} : vector<16x32xf32> to vector<16x1xf32>
    %cst_312 = arith.constant 0.000000e+00 : f32
    %507 = vector.broadcast %cst_312 : f32 to vector<16x1xf32>
    %508 = arith.maximumf %506, %507 : vector<16x1xf32>
    %509 = vector.extract_strided_slice %479 {offsets = [0, 13], sizes = [16, 1], strides = [1, 1]} : vector<16x32xf32> to vector<16x1xf32>
    %510 = arith.mulf %508, %508 : vector<16x1xf32>
    %511 = arith.addf %509, %510 : vector<16x1xf32>
    %512 = arith.truncf %511 : vector<16x1xf32> to vector<16x1xbf16>
    %c16_313 = arith.constant 16 : index
    %c13_314 = arith.constant 13 : index
    %513 = vector.load %arg9[%c16_313, %c13_314] : memref<32x32xbf16, #tpu.memory_space<vmem>>, vector<16x1xbf16>
    tpu.vector_store %arg9[%c16_313, %c13_314], %512 {strides = array<i32>} : memref<32x32xbf16, #tpu.memory_space<vmem>>, vector<16x1xbf16>,
    %cst_315 = arith.constant 0.000000e+00 : f32
    %514 = vector.broadcast %cst_315 : f32 to vector<16x32xf32>
    %515 = arith.maximumf %493, %514 : vector<16x32xf32>
    %516 = arith.mulf %515, %515 : vector<16x32xf32>
    %517 = arith.addf %479, %516 : vector<16x32xf32>
    %c0_316 = arith.constant 0 : index
    %c0_317 = arith.constant 0 : index
    %518 = vector.load %arg9[%c0_316, %c0_317] : memref<32x32xbf16, #tpu.memory_space<vmem>>, vector<16x32xbf16>
    %c13_318 = arith.constant 13 : index
    %c0_319 = arith.constant 0 : index
    %c0_320 = arith.constant 0 : index
    %519 = vector.load %arg4[%c13_318, %c0_319, %c0_320] : memref<31x32x32xbf16, #tpu.memory_space<vmem>>, vector<1x32x32xbf16>
    %520 = vector.shape_cast %519 : vector<1x32x32xbf16> to vector<32x32xbf16>
    %cst_321 = arith.constant dense<0.000000e+00> : vector<16x32xf32>
    %521 = tpu.matmul %518, %520, %cst_321 {dimension_numbers = #tpu.dot_dimension_numbers<[1], [0], [0], [1], [0, 0, 1, 1], [], []>} : vector<16x32xbf16>, vector<32x32xbf16>, vector<16x32xf32> -> vector<16x32xf32>
    %c13_322 = arith.constant 13 : index
    %c0_323 = arith.constant 0 : index
    %522 = vector.load %arg5[%c13_322, %c0_323] : memref<31x32xf32, #tpu.memory_space<vmem>>, vector<1x32xf32>
    %523 = vector.broadcast %522 : vector<1x32xf32> to vector<16x32xf32>
    %524 = arith.addf %521, %523 : vector<16x32xf32>
    %c16_324 = arith.constant 16 : index
    %c0_325 = arith.constant 0 : index
    %525 = vector.load %arg9[%c16_324, %c0_325] : memref<32x32xbf16, #tpu.memory_space<vmem>>, vector<16x32xbf16>
    %c13_326 = arith.constant 13 : index
    %c0_327 = arith.constant 0 : index
    %c0_328 = arith.constant 0 : index
    %526 = vector.load %arg4[%c13_326, %c0_327, %c0_328] : memref<31x32x32xbf16, #tpu.memory_space<vmem>>, vector<1x32x32xbf16>
    %527 = vector.shape_cast %526 : vector<1x32x32xbf16> to vector<32x32xbf16>
    %cst_329 = arith.constant dense<0.000000e+00> : vector<16x32xf32>
    %528 = tpu.matmul %525, %527, %cst_329 {dimension_numbers = #tpu.dot_dimension_numbers<[1], [0], [0], [1], [0, 0, 1, 1], [], []>} : vector<16x32xbf16>, vector<32x32xbf16>, vector<16x32xf32> -> vector<16x32xf32>
    %c13_330 = arith.constant 13 : index
    %c0_331 = arith.constant 0 : index
    %529 = vector.load %arg5[%c13_330, %c0_331] : memref<31x32xf32, #tpu.memory_space<vmem>>, vector<1x32xf32>
    %530 = vector.broadcast %529 : vector<1x32xf32> to vector<16x32xf32>
    %531 = arith.addf %528, %530 : vector<16x32xf32>
    %532 = vector.extract_strided_slice %524 {offsets = [0, 14], sizes = [16, 1], strides = [1, 1]} : vector<16x32xf32> to vector<16x1xf32>
    %cst_332 = arith.constant 0.000000e+00 : f32
    %533 = vector.broadcast %cst_332 : f32 to vector<16x1xf32>
    %534 = arith.maximumf %532, %533 : vector<16x1xf32>
    %535 = vector.extract_strided_slice %505 {offsets = [0, 14], sizes = [16, 1], strides = [1, 1]} : vector<16x32xf32> to vector<16x1xf32>
    %536 = arith.mulf %534, %534 : vector<16x1xf32>
    %537 = arith.addf %535, %536 : vector<16x1xf32>
    %538 = arith.truncf %537 : vector<16x1xf32> to vector<16x1xbf16>
    %c0_333 = arith.constant 0 : index
    %c14 = arith.constant 14 : index
    %539 = vector.load %arg9[%c0_333, %c14] : memref<32x32xbf16, #tpu.memory_space<vmem>>, vector<16x1xbf16>
    tpu.vector_store %arg9[%c0_333, %c14], %538 {strides = array<i32>} : memref<32x32xbf16, #tpu.memory_space<vmem>>, vector<16x1xbf16>,
    %cst_334 = arith.constant 0.000000e+00 : f32
    %540 = vector.broadcast %cst_334 : f32 to vector<16x32xf32>
    %541 = arith.maximumf %524, %540 : vector<16x32xf32>
    %542 = arith.mulf %541, %541 : vector<16x32xf32>
    %543 = arith.addf %505, %542 : vector<16x32xf32>
    %544 = vector.extract_strided_slice %531 {offsets = [0, 14], sizes = [16, 1], strides = [1, 1]} : vector<16x32xf32> to vector<16x1xf32>
    %cst_335 = arith.constant 0.000000e+00 : f32
    %545 = vector.broadcast %cst_335 : f32 to vector<16x1xf32>
    %546 = arith.maximumf %544, %545 : vector<16x1xf32>
    %547 = vector.extract_strided_slice %517 {offsets = [0, 14], sizes = [16, 1], strides = [1, 1]} : vector<16x32xf32> to vector<16x1xf32>
    %548 = arith.mulf %546, %546 : vector<16x1xf32>
    %549 = arith.addf %547, %548 : vector<16x1xf32>
    %550 = arith.truncf %549 : vector<16x1xf32> to vector<16x1xbf16>
    %c16_336 = arith.constant 16 : index
    %c14_337 = arith.constant 14 : index
    %551 = vector.load %arg9[%c16_336, %c14_337] : memref<32x32xbf16, #tpu.memory_space<vmem>>, vector<16x1xbf16>
    tpu.vector_store %arg9[%c16_336, %c14_337], %550 {strides = array<i32>} : memref<32x32xbf16, #tpu.memory_space<vmem>>, vector<16x1xbf16>,
    %cst_338 = arith.constant 0.000000e+00 : f32
    %552 = vector.broadcast %cst_338 : f32 to vector<16x32xf32>
    %553 = arith.maximumf %531, %552 : vector<16x32xf32>
    %554 = arith.mulf %553, %553 : vector<16x32xf32>
    %555 = arith.addf %517, %554 : vector<16x32xf32>
    %c0_339 = arith.constant 0 : index
    %c0_340 = arith.constant 0 : index
    %556 = vector.load %arg9[%c0_339, %c0_340] : memref<32x32xbf16, #tpu.memory_space<vmem>>, vector<16x32xbf16>
    %c14_341 = arith.constant 14 : index
    %c0_342 = arith.constant 0 : index
    %c0_343 = arith.constant 0 : index
    %557 = vector.load %arg4[%c14_341, %c0_342, %c0_343] : memref<31x32x32xbf16, #tpu.memory_space<vmem>>, vector<1x32x32xbf16>
    %558 = vector.shape_cast %557 : vector<1x32x32xbf16> to vector<32x32xbf16>
    %cst_344 = arith.constant dense<0.000000e+00> : vector<16x32xf32>
    %559 = tpu.matmul %556, %558, %cst_344 {dimension_numbers = #tpu.dot_dimension_numbers<[1], [0], [0], [1], [0, 0, 1, 1], [], []>} : vector<16x32xbf16>, vector<32x32xbf16>, vector<16x32xf32> -> vector<16x32xf32>
    %c14_345 = arith.constant 14 : index
    %c0_346 = arith.constant 0 : index
    %560 = vector.load %arg5[%c14_345, %c0_346] : memref<31x32xf32, #tpu.memory_space<vmem>>, vector<1x32xf32>
    %561 = vector.broadcast %560 : vector<1x32xf32> to vector<16x32xf32>
    %562 = arith.addf %559, %561 : vector<16x32xf32>
    %c16_347 = arith.constant 16 : index
    %c0_348 = arith.constant 0 : index
    %563 = vector.load %arg9[%c16_347, %c0_348] : memref<32x32xbf16, #tpu.memory_space<vmem>>, vector<16x32xbf16>
    %c14_349 = arith.constant 14 : index
    %c0_350 = arith.constant 0 : index
    %c0_351 = arith.constant 0 : index
    %564 = vector.load %arg4[%c14_349, %c0_350, %c0_351] : memref<31x32x32xbf16, #tpu.memory_space<vmem>>, vector<1x32x32xbf16>
    %565 = vector.shape_cast %564 : vector<1x32x32xbf16> to vector<32x32xbf16>
    %cst_352 = arith.constant dense<0.000000e+00> : vector<16x32xf32>
    %566 = tpu.matmul %563, %565, %cst_352 {dimension_numbers = #tpu.dot_dimension_numbers<[1], [0], [0], [1], [0, 0, 1, 1], [], []>} : vector<16x32xbf16>, vector<32x32xbf16>, vector<16x32xf32> -> vector<16x32xf32>
    %c14_353 = arith.constant 14 : index
    %c0_354 = arith.constant 0 : index
    %567 = vector.load %arg5[%c14_353, %c0_354] : memref<31x32xf32, #tpu.memory_space<vmem>>, vector<1x32xf32>
    %568 = vector.broadcast %567 : vector<1x32xf32> to vector<16x32xf32>
    %569 = arith.addf %566, %568 : vector<16x32xf32>
    %570 = vector.extract_strided_slice %562 {offsets = [0, 15], sizes = [16, 1], strides = [1, 1]} : vector<16x32xf32> to vector<16x1xf32>
    %cst_355 = arith.constant 0.000000e+00 : f32
    %571 = vector.broadcast %cst_355 : f32 to vector<16x1xf32>
    %572 = arith.maximumf %570, %571 : vector<16x1xf32>
    %573 = vector.extract_strided_slice %543 {offsets = [0, 15], sizes = [16, 1], strides = [1, 1]} : vector<16x32xf32> to vector<16x1xf32>
    %574 = arith.mulf %572, %572 : vector<16x1xf32>
    %575 = arith.addf %573, %574 : vector<16x1xf32>
    %576 = arith.truncf %575 : vector<16x1xf32> to vector<16x1xbf16>
    %c0_356 = arith.constant 0 : index
    %c15 = arith.constant 15 : index
    %577 = vector.load %arg9[%c0_356, %c15] : memref<32x32xbf16, #tpu.memory_space<vmem>>, vector<16x1xbf16>
    tpu.vector_store %arg9[%c0_356, %c15], %576 {strides = array<i32>} : memref<32x32xbf16, #tpu.memory_space<vmem>>, vector<16x1xbf16>,
    %cst_357 = arith.constant 0.000000e+00 : f32
    %578 = vector.broadcast %cst_357 : f32 to vector<16x32xf32>
    %579 = arith.maximumf %562, %578 : vector<16x32xf32>
    %580 = arith.mulf %579, %579 : vector<16x32xf32>
    %581 = arith.addf %543, %580 : vector<16x32xf32>
    %582 = vector.extract_strided_slice %569 {offsets = [0, 15], sizes = [16, 1], strides = [1, 1]} : vector<16x32xf32> to vector<16x1xf32>
    %cst_358 = arith.constant 0.000000e+00 : f32
    %583 = vector.broadcast %cst_358 : f32 to vector<16x1xf32>
    %584 = arith.maximumf %582, %583 : vector<16x1xf32>
    %585 = vector.extract_strided_slice %555 {offsets = [0, 15], sizes = [16, 1], strides = [1, 1]} : vector<16x32xf32> to vector<16x1xf32>
    %586 = arith.mulf %584, %584 : vector<16x1xf32>
    %587 = arith.addf %585, %586 : vector<16x1xf32>
    %588 = arith.truncf %587 : vector<16x1xf32> to vector<16x1xbf16>
    %c16_359 = arith.constant 16 : index
    %c15_360 = arith.constant 15 : index
    %589 = vector.load %arg9[%c16_359, %c15_360] : memref<32x32xbf16, #tpu.memory_space<vmem>>, vector<16x1xbf16>
    tpu.vector_store %arg9[%c16_359, %c15_360], %588 {strides = array<i32>} : memref<32x32xbf16, #tpu.memory_space<vmem>>, vector<16x1xbf16>,
    %cst_361 = arith.constant 0.000000e+00 : f32
    %590 = vector.broadcast %cst_361 : f32 to vector<16x32xf32>
    %591 = arith.maximumf %569, %590 : vector<16x32xf32>
    %592 = arith.mulf %591, %591 : vector<16x32xf32>
    %593 = arith.addf %555, %592 : vector<16x32xf32>
    %c0_362 = arith.constant 0 : index
    %c0_363 = arith.constant 0 : index
    %594 = vector.load %arg9[%c0_362, %c0_363] : memref<32x32xbf16, #tpu.memory_space<vmem>>, vector<16x32xbf16>
    %c15_364 = arith.constant 15 : index
    %c0_365 = arith.constant 0 : index
    %c0_366 = arith.constant 0 : index
    %595 = vector.load %arg4[%c15_364, %c0_365, %c0_366] : memref<31x32x32xbf16, #tpu.memory_space<vmem>>, vector<1x32x32xbf16>
    %596 = vector.shape_cast %595 : vector<1x32x32xbf16> to vector<32x32xbf16>
    %cst_367 = arith.constant dense<0.000000e+00> : vector<16x32xf32>
    %597 = tpu.matmul %594, %596, %cst_367 {dimension_numbers = #tpu.dot_dimension_numbers<[1], [0], [0], [1], [0, 0, 1, 1], [], []>} : vector<16x32xbf16>, vector<32x32xbf16>, vector<16x32xf32> -> vector<16x32xf32>
    %c15_368 = arith.constant 15 : index
    %c0_369 = arith.constant 0 : index
    %598 = vector.load %arg5[%c15_368, %c0_369] : memref<31x32xf32, #tpu.memory_space<vmem>>, vector<1x32xf32>
    %599 = vector.broadcast %598 : vector<1x32xf32> to vector<16x32xf32>
    %600 = arith.addf %597, %599 : vector<16x32xf32>
    %c16_370 = arith.constant 16 : index
    %c0_371 = arith.constant 0 : index
    %601 = vector.load %arg9[%c16_370, %c0_371] : memref<32x32xbf16, #tpu.memory_space<vmem>>, vector<16x32xbf16>
    %c15_372 = arith.constant 15 : index
    %c0_373 = arith.constant 0 : index
    %c0_374 = arith.constant 0 : index
    %602 = vector.load %arg4[%c15_372, %c0_373, %c0_374] : memref<31x32x32xbf16, #tpu.memory_space<vmem>>, vector<1x32x32xbf16>
    %603 = vector.shape_cast %602 : vector<1x32x32xbf16> to vector<32x32xbf16>
    %cst_375 = arith.constant dense<0.000000e+00> : vector<16x32xf32>
    %604 = tpu.matmul %601, %603, %cst_375 {dimension_numbers = #tpu.dot_dimension_numbers<[1], [0], [0], [1], [0, 0, 1, 1], [], []>} : vector<16x32xbf16>, vector<32x32xbf16>, vector<16x32xf32> -> vector<16x32xf32>
    %c15_376 = arith.constant 15 : index
    %c0_377 = arith.constant 0 : index
    %605 = vector.load %arg5[%c15_376, %c0_377] : memref<31x32xf32, #tpu.memory_space<vmem>>, vector<1x32xf32>
    %606 = vector.broadcast %605 : vector<1x32xf32> to vector<16x32xf32>
    %607 = arith.addf %604, %606 : vector<16x32xf32>
    %608 = vector.extract_strided_slice %600 {offsets = [0, 16], sizes = [16, 1], strides = [1, 1]} : vector<16x32xf32> to vector<16x1xf32>
    %cst_378 = arith.constant 0.000000e+00 : f32
    %609 = vector.broadcast %cst_378 : f32 to vector<16x1xf32>
    %610 = arith.maximumf %608, %609 : vector<16x1xf32>
    %611 = vector.extract_strided_slice %581 {offsets = [0, 16], sizes = [16, 1], strides = [1, 1]} : vector<16x32xf32> to vector<16x1xf32>
    %612 = arith.mulf %610, %610 : vector<16x1xf32>
    %613 = arith.addf %611, %612 : vector<16x1xf32>
    %614 = arith.truncf %613 : vector<16x1xf32> to vector<16x1xbf16>
    %c0_379 = arith.constant 0 : index
    %c16_380 = arith.constant 16 : index
    %615 = vector.load %arg9[%c0_379, %c16_380] : memref<32x32xbf16, #tpu.memory_space<vmem>>, vector<16x1xbf16>
    tpu.vector_store %arg9[%c0_379, %c16_380], %614 {strides = array<i32>} : memref<32x32xbf16, #tpu.memory_space<vmem>>, vector<16x1xbf16>,
    %cst_381 = arith.constant 0.000000e+00 : f32
    %616 = vector.broadcast %cst_381 : f32 to vector<16x32xf32>
    %617 = arith.maximumf %600, %616 : vector<16x32xf32>
    %618 = arith.mulf %617, %617 : vector<16x32xf32>
    %619 = arith.addf %581, %618 : vector<16x32xf32>
    %620 = vector.extract_strided_slice %607 {offsets = [0, 16], sizes = [16, 1], strides = [1, 1]} : vector<16x32xf32> to vector<16x1xf32>
    %cst_382 = arith.constant 0.000000e+00 : f32
    %621 = vector.broadcast %cst_382 : f32 to vector<16x1xf32>
    %622 = arith.maximumf %620, %621 : vector<16x1xf32>
    %623 = vector.extract_strided_slice %593 {offsets = [0, 16], sizes = [16, 1], strides = [1, 1]} : vector<16x32xf32> to vector<16x1xf32>
    %624 = arith.mulf %622, %622 : vector<16x1xf32>
    %625 = arith.addf %623, %624 : vector<16x1xf32>
    %626 = arith.truncf %625 : vector<16x1xf32> to vector<16x1xbf16>
    %c16_383 = arith.constant 16 : index
    %c16_384 = arith.constant 16 : index
    %627 = vector.load %arg9[%c16_383, %c16_384] : memref<32x32xbf16, #tpu.memory_space<vmem>>, vector<16x1xbf16>
    tpu.vector_store %arg9[%c16_383, %c16_384], %626 {strides = array<i32>} : memref<32x32xbf16, #tpu.memory_space<vmem>>, vector<16x1xbf16>,
    %cst_385 = arith.constant 0.000000e+00 : f32
    %628 = vector.broadcast %cst_385 : f32 to vector<16x32xf32>
    %629 = arith.maximumf %607, %628 : vector<16x32xf32>
    %630 = arith.mulf %629, %629 : vector<16x32xf32>
    %631 = arith.addf %593, %630 : vector<16x32xf32>
    %c0_386 = arith.constant 0 : index
    %c0_387 = arith.constant 0 : index
    %632 = vector.load %arg9[%c0_386, %c0_387] : memref<32x32xbf16, #tpu.memory_space<vmem>>, vector<16x32xbf16>
    %c16_388 = arith.constant 16 : index
    %c0_389 = arith.constant 0 : index
    %c0_390 = arith.constant 0 : index
    %633 = vector.load %arg4[%c16_388, %c0_389, %c0_390] : memref<31x32x32xbf16, #tpu.memory_space<vmem>>, vector<1x32x32xbf16>
    %634 = vector.shape_cast %633 : vector<1x32x32xbf16> to vector<32x32xbf16>
    %cst_391 = arith.constant dense<0.000000e+00> : vector<16x32xf32>
    %635 = tpu.matmul %632, %634, %cst_391 {dimension_numbers = #tpu.dot_dimension_numbers<[1], [0], [0], [1], [0, 0, 1, 1], [], []>} : vector<16x32xbf16>, vector<32x32xbf16>, vector<16x32xf32> -> vector<16x32xf32>
    %c16_392 = arith.constant 16 : index
    %c0_393 = arith.constant 0 : index
    %636 = vector.load %arg5[%c16_392, %c0_393] : memref<31x32xf32, #tpu.memory_space<vmem>>, vector<1x32xf32>
    %637 = vector.broadcast %636 : vector<1x32xf32> to vector<16x32xf32>
    %638 = arith.addf %635, %637 : vector<16x32xf32>
    %c16_394 = arith.constant 16 : index
    %c0_395 = arith.constant 0 : index
    %639 = vector.load %arg9[%c16_394, %c0_395] : memref<32x32xbf16, #tpu.memory_space<vmem>>, vector<16x32xbf16>
    %c16_396 = arith.constant 16 : index
    %c0_397 = arith.constant 0 : index
    %c0_398 = arith.constant 0 : index
    %640 = vector.load %arg4[%c16_396, %c0_397, %c0_398] : memref<31x32x32xbf16, #tpu.memory_space<vmem>>, vector<1x32x32xbf16>
    %641 = vector.shape_cast %640 : vector<1x32x32xbf16> to vector<32x32xbf16>
    %cst_399 = arith.constant dense<0.000000e+00> : vector<16x32xf32>
    %642 = tpu.matmul %639, %641, %cst_399 {dimension_numbers = #tpu.dot_dimension_numbers<[1], [0], [0], [1], [0, 0, 1, 1], [], []>} : vector<16x32xbf16>, vector<32x32xbf16>, vector<16x32xf32> -> vector<16x32xf32>
    %c16_400 = arith.constant 16 : index
    %c0_401 = arith.constant 0 : index
    %643 = vector.load %arg5[%c16_400, %c0_401] : memref<31x32xf32, #tpu.memory_space<vmem>>, vector<1x32xf32>
    %644 = vector.broadcast %643 : vector<1x32xf32> to vector<16x32xf32>
    %645 = arith.addf %642, %644 : vector<16x32xf32>
    %646 = vector.extract_strided_slice %638 {offsets = [0, 17], sizes = [16, 1], strides = [1, 1]} : vector<16x32xf32> to vector<16x1xf32>
    %cst_402 = arith.constant 0.000000e+00 : f32
    %647 = vector.broadcast %cst_402 : f32 to vector<16x1xf32>
    %648 = arith.maximumf %646, %647 : vector<16x1xf32>
    %649 = vector.extract_strided_slice %619 {offsets = [0, 17], sizes = [16, 1], strides = [1, 1]} : vector<16x32xf32> to vector<16x1xf32>
    %650 = arith.mulf %648, %648 : vector<16x1xf32>
    %651 = arith.addf %649, %650 : vector<16x1xf32>
    %652 = arith.truncf %651 : vector<16x1xf32> to vector<16x1xbf16>
    %c0_403 = arith.constant 0 : index
    %c17 = arith.constant 17 : index
    %653 = vector.load %arg9[%c0_403, %c17] : memref<32x32xbf16, #tpu.memory_space<vmem>>, vector<16x1xbf16>
    tpu.vector_store %arg9[%c0_403, %c17], %652 {strides = array<i32>} : memref<32x32xbf16, #tpu.memory_space<vmem>>, vector<16x1xbf16>,
    %cst_404 = arith.constant 0.000000e+00 : f32
    %654 = vector.broadcast %cst_404 : f32 to vector<16x32xf32>
    %655 = arith.maximumf %638, %654 : vector<16x32xf32>
    %656 = arith.mulf %655, %655 : vector<16x32xf32>
    %657 = arith.addf %619, %656 : vector<16x32xf32>
    %658 = vector.extract_strided_slice %645 {offsets = [0, 17], sizes = [16, 1], strides = [1, 1]} : vector<16x32xf32> to vector<16x1xf32>
    %cst_405 = arith.constant 0.000000e+00 : f32
    %659 = vector.broadcast %cst_405 : f32 to vector<16x1xf32>
    %660 = arith.maximumf %658, %659 : vector<16x1xf32>
    %661 = vector.extract_strided_slice %631 {offsets = [0, 17], sizes = [16, 1], strides = [1, 1]} : vector<16x32xf32> to vector<16x1xf32>
    %662 = arith.mulf %660, %660 : vector<16x1xf32>
    %663 = arith.addf %661, %662 : vector<16x1xf32>
    %664 = arith.truncf %663 : vector<16x1xf32> to vector<16x1xbf16>
    %c16_406 = arith.constant 16 : index
    %c17_407 = arith.constant 17 : index
    %665 = vector.load %arg9[%c16_406, %c17_407] : memref<32x32xbf16, #tpu.memory_space<vmem>>, vector<16x1xbf16>
    tpu.vector_store %arg9[%c16_406, %c17_407], %664 {strides = array<i32>} : memref<32x32xbf16, #tpu.memory_space<vmem>>, vector<16x1xbf16>,
    %cst_408 = arith.constant 0.000000e+00 : f32
    %666 = vector.broadcast %cst_408 : f32 to vector<16x32xf32>
    %667 = arith.maximumf %645, %666 : vector<16x32xf32>
    %668 = arith.mulf %667, %667 : vector<16x32xf32>
    %669 = arith.addf %631, %668 : vector<16x32xf32>
    %c0_409 = arith.constant 0 : index
    %c0_410 = arith.constant 0 : index
    %670 = vector.load %arg9[%c0_409, %c0_410] : memref<32x32xbf16, #tpu.memory_space<vmem>>, vector<16x32xbf16>
    %c17_411 = arith.constant 17 : index
    %c0_412 = arith.constant 0 : index
    %c0_413 = arith.constant 0 : index
    %671 = vector.load %arg4[%c17_411, %c0_412, %c0_413] : memref<31x32x32xbf16, #tpu.memory_space<vmem>>, vector<1x32x32xbf16>
    %672 = vector.shape_cast %671 : vector<1x32x32xbf16> to vector<32x32xbf16>
    %cst_414 = arith.constant dense<0.000000e+00> : vector<16x32xf32>
    %673 = tpu.matmul %670, %672, %cst_414 {dimension_numbers = #tpu.dot_dimension_numbers<[1], [0], [0], [1], [0, 0, 1, 1], [], []>} : vector<16x32xbf16>, vector<32x32xbf16>, vector<16x32xf32> -> vector<16x32xf32>
    %c17_415 = arith.constant 17 : index
    %c0_416 = arith.constant 0 : index
    %674 = vector.load %arg5[%c17_415, %c0_416] : memref<31x32xf32, #tpu.memory_space<vmem>>, vector<1x32xf32>
    %675 = vector.broadcast %674 : vector<1x32xf32> to vector<16x32xf32>
    %676 = arith.addf %673, %675 : vector<16x32xf32>
    %c16_417 = arith.constant 16 : index
    %c0_418 = arith.constant 0 : index
    %677 = vector.load %arg9[%c16_417, %c0_418] : memref<32x32xbf16, #tpu.memory_space<vmem>>, vector<16x32xbf16>
    %c17_419 = arith.constant 17 : index
    %c0_420 = arith.constant 0 : index
    %c0_421 = arith.constant 0 : index
    %678 = vector.load %arg4[%c17_419, %c0_420, %c0_421] : memref<31x32x32xbf16, #tpu.memory_space<vmem>>, vector<1x32x32xbf16>
    %679 = vector.shape_cast %678 : vector<1x32x32xbf16> to vector<32x32xbf16>
    %cst_422 = arith.constant dense<0.000000e+00> : vector<16x32xf32>
    %680 = tpu.matmul %677, %679, %cst_422 {dimension_numbers = #tpu.dot_dimension_numbers<[1], [0], [0], [1], [0, 0, 1, 1], [], []>} : vector<16x32xbf16>, vector<32x32xbf16>, vector<16x32xf32> -> vector<16x32xf32>
    %c17_423 = arith.constant 17 : index
    %c0_424 = arith.constant 0 : index
    %681 = vector.load %arg5[%c17_423, %c0_424] : memref<31x32xf32, #tpu.memory_space<vmem>>, vector<1x32xf32>
    %682 = vector.broadcast %681 : vector<1x32xf32> to vector<16x32xf32>
    %683 = arith.addf %680, %682 : vector<16x32xf32>
    %684 = vector.extract_strided_slice %676 {offsets = [0, 18], sizes = [16, 1], strides = [1, 1]} : vector<16x32xf32> to vector<16x1xf32>
    %cst_425 = arith.constant 0.000000e+00 : f32
    %685 = vector.broadcast %cst_425 : f32 to vector<16x1xf32>
    %686 = arith.maximumf %684, %685 : vector<16x1xf32>
    %687 = vector.extract_strided_slice %657 {offsets = [0, 18], sizes = [16, 1], strides = [1, 1]} : vector<16x32xf32> to vector<16x1xf32>
    %688 = arith.mulf %686, %686 : vector<16x1xf32>
    %689 = arith.addf %687, %688 : vector<16x1xf32>
    %690 = arith.truncf %689 : vector<16x1xf32> to vector<16x1xbf16>
    %c0_426 = arith.constant 0 : index
    %c18 = arith.constant 18 : index
    %691 = vector.load %arg9[%c0_426, %c18] : memref<32x32xbf16, #tpu.memory_space<vmem>>, vector<16x1xbf16>
    tpu.vector_store %arg9[%c0_426, %c18], %690 {strides = array<i32>} : memref<32x32xbf16, #tpu.memory_space<vmem>>, vector<16x1xbf16>,
    %cst_427 = arith.constant 0.000000e+00 : f32
    %692 = vector.broadcast %cst_427 : f32 to vector<16x32xf32>
    %693 = arith.maximumf %676, %692 : vector<16x32xf32>
    %694 = arith.mulf %693, %693 : vector<16x32xf32>
    %695 = arith.addf %657, %694 : vector<16x32xf32>
    %696 = vector.extract_strided_slice %683 {offsets = [0, 18], sizes = [16, 1], strides = [1, 1]} : vector<16x32xf32> to vector<16x1xf32>
    %cst_428 = arith.constant 0.000000e+00 : f32
    %697 = vector.broadcast %cst_428 : f32 to vector<16x1xf32>
    %698 = arith.maximumf %696, %697 : vector<16x1xf32>
    %699 = vector.extract_strided_slice %669 {offsets = [0, 18], sizes = [16, 1], strides = [1, 1]} : vector<16x32xf32> to vector<16x1xf32>
    %700 = arith.mulf %698, %698 : vector<16x1xf32>
    %701 = arith.addf %699, %700 : vector<16x1xf32>
    %702 = arith.truncf %701 : vector<16x1xf32> to vector<16x1xbf16>
    %c16_429 = arith.constant 16 : index
    %c18_430 = arith.constant 18 : index
    %703 = vector.load %arg9[%c16_429, %c18_430] : memref<32x32xbf16, #tpu.memory_space<vmem>>, vector<16x1xbf16>
    tpu.vector_store %arg9[%c16_429, %c18_430], %702 {strides = array<i32>} : memref<32x32xbf16, #tpu.memory_space<vmem>>, vector<16x1xbf16>,
    %cst_431 = arith.constant 0.000000e+00 : f32
    %704 = vector.broadcast %cst_431 : f32 to vector<16x32xf32>
    %705 = arith.maximumf %683, %704 : vector<16x32xf32>
    %706 = arith.mulf %705, %705 : vector<16x32xf32>
    %707 = arith.addf %669, %706 : vector<16x32xf32>
    %c0_432 = arith.constant 0 : index
    %c0_433 = arith.constant 0 : index
    %708 = vector.load %arg9[%c0_432, %c0_433] : memref<32x32xbf16, #tpu.memory_space<vmem>>, vector<16x32xbf16>
    %c18_434 = arith.constant 18 : index
    %c0_435 = arith.constant 0 : index
    %c0_436 = arith.constant 0 : index
    %709 = vector.load %arg4[%c18_434, %c0_435, %c0_436] : memref<31x32x32xbf16, #tpu.memory_space<vmem>>, vector<1x32x32xbf16>
    %710 = vector.shape_cast %709 : vector<1x32x32xbf16> to vector<32x32xbf16>
    %cst_437 = arith.constant dense<0.000000e+00> : vector<16x32xf32>
    %711 = tpu.matmul %708, %710, %cst_437 {dimension_numbers = #tpu.dot_dimension_numbers<[1], [0], [0], [1], [0, 0, 1, 1], [], []>} : vector<16x32xbf16>, vector<32x32xbf16>, vector<16x32xf32> -> vector<16x32xf32>
    %c18_438 = arith.constant 18 : index
    %c0_439 = arith.constant 0 : index
    %712 = vector.load %arg5[%c18_438, %c0_439] : memref<31x32xf32, #tpu.memory_space<vmem>>, vector<1x32xf32>
    %713 = vector.broadcast %712 : vector<1x32xf32> to vector<16x32xf32>
    %714 = arith.addf %711, %713 : vector<16x32xf32>
    %c16_440 = arith.constant 16 : index
    %c0_441 = arith.constant 0 : index
    %715 = vector.load %arg9[%c16_440, %c0_441] : memref<32x32xbf16, #tpu.memory_space<vmem>>, vector<16x32xbf16>
    %c18_442 = arith.constant 18 : index
    %c0_443 = arith.constant 0 : index
    %c0_444 = arith.constant 0 : index
    %716 = vector.load %arg4[%c18_442, %c0_443, %c0_444] : memref<31x32x32xbf16, #tpu.memory_space<vmem>>, vector<1x32x32xbf16>
    %717 = vector.shape_cast %716 : vector<1x32x32xbf16> to vector<32x32xbf16>
    %cst_445 = arith.constant dense<0.000000e+00> : vector<16x32xf32>
    %718 = tpu.matmul %715, %717, %cst_445 {dimension_numbers = #tpu.dot_dimension_numbers<[1], [0], [0], [1], [0, 0, 1, 1], [], []>} : vector<16x32xbf16>, vector<32x32xbf16>, vector<16x32xf32> -> vector<16x32xf32>
    %c18_446 = arith.constant 18 : index
    %c0_447 = arith.constant 0 : index
    %719 = vector.load %arg5[%c18_446, %c0_447] : memref<31x32xf32, #tpu.memory_space<vmem>>, vector<1x32xf32>
    %720 = vector.broadcast %719 : vector<1x32xf32> to vector<16x32xf32>
    %721 = arith.addf %718, %720 : vector<16x32xf32>
    %722 = vector.extract_strided_slice %714 {offsets = [0, 19], sizes = [16, 1], strides = [1, 1]} : vector<16x32xf32> to vector<16x1xf32>
    %cst_448 = arith.constant 0.000000e+00 : f32
    %723 = vector.broadcast %cst_448 : f32 to vector<16x1xf32>
    %724 = arith.maximumf %722, %723 : vector<16x1xf32>
    %725 = vector.extract_strided_slice %695 {offsets = [0, 19], sizes = [16, 1], strides = [1, 1]} : vector<16x32xf32> to vector<16x1xf32>
    %726 = arith.mulf %724, %724 : vector<16x1xf32>
    %727 = arith.addf %725, %726 : vector<16x1xf32>
    %728 = arith.truncf %727 : vector<16x1xf32> to vector<16x1xbf16>
    %c0_449 = arith.constant 0 : index
    %c19 = arith.constant 19 : index
    %729 = vector.load %arg9[%c0_449, %c19] : memref<32x32xbf16, #tpu.memory_space<vmem>>, vector<16x1xbf16>
    tpu.vector_store %arg9[%c0_449, %c19], %728 {strides = array<i32>} : memref<32x32xbf16, #tpu.memory_space<vmem>>, vector<16x1xbf16>,
    %cst_450 = arith.constant 0.000000e+00 : f32
    %730 = vector.broadcast %cst_450 : f32 to vector<16x32xf32>
    %731 = arith.maximumf %714, %730 : vector<16x32xf32>
    %732 = arith.mulf %731, %731 : vector<16x32xf32>
    %733 = arith.addf %695, %732 : vector<16x32xf32>
    %734 = vector.extract_strided_slice %721 {offsets = [0, 19], sizes = [16, 1], strides = [1, 1]} : vector<16x32xf32> to vector<16x1xf32>
    %cst_451 = arith.constant 0.000000e+00 : f32
    %735 = vector.broadcast %cst_451 : f32 to vector<16x1xf32>
    %736 = arith.maximumf %734, %735 : vector<16x1xf32>
    %737 = vector.extract_strided_slice %707 {offsets = [0, 19], sizes = [16, 1], strides = [1, 1]} : vector<16x32xf32> to vector<16x1xf32>
    %738 = arith.mulf %736, %736 : vector<16x1xf32>
    %739 = arith.addf %737, %738 : vector<16x1xf32>
    %740 = arith.truncf %739 : vector<16x1xf32> to vector<16x1xbf16>
    %c16_452 = arith.constant 16 : index
    %c19_453 = arith.constant 19 : index
    %741 = vector.load %arg9[%c16_452, %c19_453] : memref<32x32xbf16, #tpu.memory_space<vmem>>, vector<16x1xbf16>
    tpu.vector_store %arg9[%c16_452, %c19_453], %740 {strides = array<i32>} : memref<32x32xbf16, #tpu.memory_space<vmem>>, vector<16x1xbf16>,
    %cst_454 = arith.constant 0.000000e+00 : f32
    %742 = vector.broadcast %cst_454 : f32 to vector<16x32xf32>
    %743 = arith.maximumf %721, %742 : vector<16x32xf32>
    %744 = arith.mulf %743, %743 : vector<16x32xf32>
    %745 = arith.addf %707, %744 : vector<16x32xf32>
    %c0_455 = arith.constant 0 : index
    %c0_456 = arith.constant 0 : index
    %746 = vector.load %arg9[%c0_455, %c0_456] : memref<32x32xbf16, #tpu.memory_space<vmem>>, vector<16x32xbf16>
    %c19_457 = arith.constant 19 : index
    %c0_458 = arith.constant 0 : index
    %c0_459 = arith.constant 0 : index
    %747 = vector.load %arg4[%c19_457, %c0_458, %c0_459] : memref<31x32x32xbf16, #tpu.memory_space<vmem>>, vector<1x32x32xbf16>
    %748 = vector.shape_cast %747 : vector<1x32x32xbf16> to vector<32x32xbf16>
    %cst_460 = arith.constant dense<0.000000e+00> : vector<16x32xf32>
    %749 = tpu.matmul %746, %748, %cst_460 {dimension_numbers = #tpu.dot_dimension_numbers<[1], [0], [0], [1], [0, 0, 1, 1], [], []>} : vector<16x32xbf16>, vector<32x32xbf16>, vector<16x32xf32> -> vector<16x32xf32>
    %c19_461 = arith.constant 19 : index
    %c0_462 = arith.constant 0 : index
    %750 = vector.load %arg5[%c19_461, %c0_462] : memref<31x32xf32, #tpu.memory_space<vmem>>, vector<1x32xf32>
    %751 = vector.broadcast %750 : vector<1x32xf32> to vector<16x32xf32>
    %752 = arith.addf %749, %751 : vector<16x32xf32>
    %c16_463 = arith.constant 16 : index
    %c0_464 = arith.constant 0 : index
    %753 = vector.load %arg9[%c16_463, %c0_464] : memref<32x32xbf16, #tpu.memory_space<vmem>>, vector<16x32xbf16>
    %c19_465 = arith.constant 19 : index
    %c0_466 = arith.constant 0 : index
    %c0_467 = arith.constant 0 : index
    %754 = vector.load %arg4[%c19_465, %c0_466, %c0_467] : memref<31x32x32xbf16, #tpu.memory_space<vmem>>, vector<1x32x32xbf16>
    %755 = vector.shape_cast %754 : vector<1x32x32xbf16> to vector<32x32xbf16>
    %cst_468 = arith.constant dense<0.000000e+00> : vector<16x32xf32>
    %756 = tpu.matmul %753, %755, %cst_468 {dimension_numbers = #tpu.dot_dimension_numbers<[1], [0], [0], [1], [0, 0, 1, 1], [], []>} : vector<16x32xbf16>, vector<32x32xbf16>, vector<16x32xf32> -> vector<16x32xf32>
    %c19_469 = arith.constant 19 : index
    %c0_470 = arith.constant 0 : index
    %757 = vector.load %arg5[%c19_469, %c0_470] : memref<31x32xf32, #tpu.memory_space<vmem>>, vector<1x32xf32>
    %758 = vector.broadcast %757 : vector<1x32xf32> to vector<16x32xf32>
    %759 = arith.addf %756, %758 : vector<16x32xf32>
    %760 = vector.extract_strided_slice %752 {offsets = [0, 20], sizes = [16, 1], strides = [1, 1]} : vector<16x32xf32> to vector<16x1xf32>
    %cst_471 = arith.constant 0.000000e+00 : f32
    %761 = vector.broadcast %cst_471 : f32 to vector<16x1xf32>
    %762 = arith.maximumf %760, %761 : vector<16x1xf32>
    %763 = vector.extract_strided_slice %733 {offsets = [0, 20], sizes = [16, 1], strides = [1, 1]} : vector<16x32xf32> to vector<16x1xf32>
    %764 = arith.mulf %762, %762 : vector<16x1xf32>
    %765 = arith.addf %763, %764 : vector<16x1xf32>
    %766 = arith.truncf %765 : vector<16x1xf32> to vector<16x1xbf16>
    %c0_472 = arith.constant 0 : index
    %c20 = arith.constant 20 : index
    %767 = vector.load %arg9[%c0_472, %c20] : memref<32x32xbf16, #tpu.memory_space<vmem>>, vector<16x1xbf16>
    tpu.vector_store %arg9[%c0_472, %c20], %766 {strides = array<i32>} : memref<32x32xbf16, #tpu.memory_space<vmem>>, vector<16x1xbf16>,
    %cst_473 = arith.constant 0.000000e+00 : f32
    %768 = vector.broadcast %cst_473 : f32 to vector<16x32xf32>
    %769 = arith.maximumf %752, %768 : vector<16x32xf32>
    %770 = arith.mulf %769, %769 : vector<16x32xf32>
    %771 = arith.addf %733, %770 : vector<16x32xf32>
    %772 = vector.extract_strided_slice %759 {offsets = [0, 20], sizes = [16, 1], strides = [1, 1]} : vector<16x32xf32> to vector<16x1xf32>
    %cst_474 = arith.constant 0.000000e+00 : f32
    %773 = vector.broadcast %cst_474 : f32 to vector<16x1xf32>
    %774 = arith.maximumf %772, %773 : vector<16x1xf32>
    %775 = vector.extract_strided_slice %745 {offsets = [0, 20], sizes = [16, 1], strides = [1, 1]} : vector<16x32xf32> to vector<16x1xf32>
    %776 = arith.mulf %774, %774 : vector<16x1xf32>
    %777 = arith.addf %775, %776 : vector<16x1xf32>
    %778 = arith.truncf %777 : vector<16x1xf32> to vector<16x1xbf16>
    %c16_475 = arith.constant 16 : index
    %c20_476 = arith.constant 20 : index
    %779 = vector.load %arg9[%c16_475, %c20_476] : memref<32x32xbf16, #tpu.memory_space<vmem>>, vector<16x1xbf16>
    tpu.vector_store %arg9[%c16_475, %c20_476], %778 {strides = array<i32>} : memref<32x32xbf16, #tpu.memory_space<vmem>>, vector<16x1xbf16>,
    %cst_477 = arith.constant 0.000000e+00 : f32
    %780 = vector.broadcast %cst_477 : f32 to vector<16x32xf32>
    %781 = arith.maximumf %759, %780 : vector<16x32xf32>
    %782 = arith.mulf %781, %781 : vector<16x32xf32>
    %783 = arith.addf %745, %782 : vector<16x32xf32>
    %c0_478 = arith.constant 0 : index
    %c0_479 = arith.constant 0 : index
    %784 = vector.load %arg9[%c0_478, %c0_479] : memref<32x32xbf16, #tpu.memory_space<vmem>>, vector<16x32xbf16>
    %c20_480 = arith.constant 20 : index
    %c0_481 = arith.constant 0 : index
    %c0_482 = arith.constant 0 : index
    %785 = vector.load %arg4[%c20_480, %c0_481, %c0_482] : memref<31x32x32xbf16, #tpu.memory_space<vmem>>, vector<1x32x32xbf16>
    %786 = vector.shape_cast %785 : vector<1x32x32xbf16> to vector<32x32xbf16>
    %cst_483 = arith.constant dense<0.000000e+00> : vector<16x32xf32>
    %787 = tpu.matmul %784, %786, %cst_483 {dimension_numbers = #tpu.dot_dimension_numbers<[1], [0], [0], [1], [0, 0, 1, 1], [], []>} : vector<16x32xbf16>, vector<32x32xbf16>, vector<16x32xf32> -> vector<16x32xf32>
    %c20_484 = arith.constant 20 : index
    %c0_485 = arith.constant 0 : index
    %788 = vector.load %arg5[%c20_484, %c0_485] : memref<31x32xf32, #tpu.memory_space<vmem>>, vector<1x32xf32>
    %789 = vector.broadcast %788 : vector<1x32xf32> to vector<16x32xf32>
    %790 = arith.addf %787, %789 : vector<16x32xf32>
    %c16_486 = arith.constant 16 : index
    %c0_487 = arith.constant 0 : index
    %791 = vector.load %arg9[%c16_486, %c0_487] : memref<32x32xbf16, #tpu.memory_space<vmem>>, vector<16x32xbf16>
    %c20_488 = arith.constant 20 : index
    %c0_489 = arith.constant 0 : index
    %c0_490 = arith.constant 0 : index
    %792 = vector.load %arg4[%c20_488, %c0_489, %c0_490] : memref<31x32x32xbf16, #tpu.memory_space<vmem>>, vector<1x32x32xbf16>
    %793 = vector.shape_cast %792 : vector<1x32x32xbf16> to vector<32x32xbf16>
    %cst_491 = arith.constant dense<0.000000e+00> : vector<16x32xf32>
    %794 = tpu.matmul %791, %793, %cst_491 {dimension_numbers = #tpu.dot_dimension_numbers<[1], [0], [0], [1], [0, 0, 1, 1], [], []>} : vector<16x32xbf16>, vector<32x32xbf16>, vector<16x32xf32> -> vector<16x32xf32>
    %c20_492 = arith.constant 20 : index
    %c0_493 = arith.constant 0 : index
    %795 = vector.load %arg5[%c20_492, %c0_493] : memref<31x32xf32, #tpu.memory_space<vmem>>, vector<1x32xf32>
    %796 = vector.broadcast %795 : vector<1x32xf32> to vector<16x32xf32>
    %797 = arith.addf %794, %796 : vector<16x32xf32>
    %798 = vector.extract_strided_slice %790 {offsets = [0, 21], sizes = [16, 1], strides = [1, 1]} : vector<16x32xf32> to vector<16x1xf32>
    %cst_494 = arith.constant 0.000000e+00 : f32
    %799 = vector.broadcast %cst_494 : f32 to vector<16x1xf32>
    %800 = arith.maximumf %798, %799 : vector<16x1xf32>
    %801 = vector.extract_strided_slice %771 {offsets = [0, 21], sizes = [16, 1], strides = [1, 1]} : vector<16x32xf32> to vector<16x1xf32>
    %802 = arith.mulf %800, %800 : vector<16x1xf32>
    %803 = arith.addf %801, %802 : vector<16x1xf32>
    %804 = arith.truncf %803 : vector<16x1xf32> to vector<16x1xbf16>
    %c0_495 = arith.constant 0 : index
    %c21 = arith.constant 21 : index
    %805 = vector.load %arg9[%c0_495, %c21] : memref<32x32xbf16, #tpu.memory_space<vmem>>, vector<16x1xbf16>
    tpu.vector_store %arg9[%c0_495, %c21], %804 {strides = array<i32>} : memref<32x32xbf16, #tpu.memory_space<vmem>>, vector<16x1xbf16>,
    %cst_496 = arith.constant 0.000000e+00 : f32
    %806 = vector.broadcast %cst_496 : f32 to vector<16x32xf32>
    %807 = arith.maximumf %790, %806 : vector<16x32xf32>
    %808 = arith.mulf %807, %807 : vector<16x32xf32>
    %809 = arith.addf %771, %808 : vector<16x32xf32>
    %810 = vector.extract_strided_slice %797 {offsets = [0, 21], sizes = [16, 1], strides = [1, 1]} : vector<16x32xf32> to vector<16x1xf32>
    %cst_497 = arith.constant 0.000000e+00 : f32
    %811 = vector.broadcast %cst_497 : f32 to vector<16x1xf32>
    %812 = arith.maximumf %810, %811 : vector<16x1xf32>
    %813 = vector.extract_strided_slice %783 {offsets = [0, 21], sizes = [16, 1], strides = [1, 1]} : vector<16x32xf32> to vector<16x1xf32>
    %814 = arith.mulf %812, %812 : vector<16x1xf32>
    %815 = arith.addf %813, %814 : vector<16x1xf32>
    %816 = arith.truncf %815 : vector<16x1xf32> to vector<16x1xbf16>
    %c16_498 = arith.constant 16 : index
    %c21_499 = arith.constant 21 : index
    %817 = vector.load %arg9[%c16_498, %c21_499] : memref<32x32xbf16, #tpu.memory_space<vmem>>, vector<16x1xbf16>
    tpu.vector_store %arg9[%c16_498, %c21_499], %816 {strides = array<i32>} : memref<32x32xbf16, #tpu.memory_space<vmem>>, vector<16x1xbf16>,
    %cst_500 = arith.constant 0.000000e+00 : f32
    %818 = vector.broadcast %cst_500 : f32 to vector<16x32xf32>
    %819 = arith.maximumf %797, %818 : vector<16x32xf32>
    %820 = arith.mulf %819, %819 : vector<16x32xf32>
    %821 = arith.addf %783, %820 : vector<16x32xf32>
    %c0_501 = arith.constant 0 : index
    %c0_502 = arith.constant 0 : index
    %822 = vector.load %arg9[%c0_501, %c0_502] : memref<32x32xbf16, #tpu.memory_space<vmem>>, vector<16x32xbf16>
    %c21_503 = arith.constant 21 : index
    %c0_504 = arith.constant 0 : index
    %c0_505 = arith.constant 0 : index
    %823 = vector.load %arg4[%c21_503, %c0_504, %c0_505] : memref<31x32x32xbf16, #tpu.memory_space<vmem>>, vector<1x32x32xbf16>
    %824 = vector.shape_cast %823 : vector<1x32x32xbf16> to vector<32x32xbf16>
    %cst_506 = arith.constant dense<0.000000e+00> : vector<16x32xf32>
    %825 = tpu.matmul %822, %824, %cst_506 {dimension_numbers = #tpu.dot_dimension_numbers<[1], [0], [0], [1], [0, 0, 1, 1], [], []>} : vector<16x32xbf16>, vector<32x32xbf16>, vector<16x32xf32> -> vector<16x32xf32>
    %c21_507 = arith.constant 21 : index
    %c0_508 = arith.constant 0 : index
    %826 = vector.load %arg5[%c21_507, %c0_508] : memref<31x32xf32, #tpu.memory_space<vmem>>, vector<1x32xf32>
    %827 = vector.broadcast %826 : vector<1x32xf32> to vector<16x32xf32>
    %828 = arith.addf %825, %827 : vector<16x32xf32>
    %c16_509 = arith.constant 16 : index
    %c0_510 = arith.constant 0 : index
    %829 = vector.load %arg9[%c16_509, %c0_510] : memref<32x32xbf16, #tpu.memory_space<vmem>>, vector<16x32xbf16>
    %c21_511 = arith.constant 21 : index
    %c0_512 = arith.constant 0 : index
    %c0_513 = arith.constant 0 : index
    %830 = vector.load %arg4[%c21_511, %c0_512, %c0_513] : memref<31x32x32xbf16, #tpu.memory_space<vmem>>, vector<1x32x32xbf16>
    %831 = vector.shape_cast %830 : vector<1x32x32xbf16> to vector<32x32xbf16>
    %cst_514 = arith.constant dense<0.000000e+00> : vector<16x32xf32>
    %832 = tpu.matmul %829, %831, %cst_514 {dimension_numbers = #tpu.dot_dimension_numbers<[1], [0], [0], [1], [0, 0, 1, 1], [], []>} : vector<16x32xbf16>, vector<32x32xbf16>, vector<16x32xf32> -> vector<16x32xf32>
    %c21_515 = arith.constant 21 : index
    %c0_516 = arith.constant 0 : index
    %833 = vector.load %arg5[%c21_515, %c0_516] : memref<31x32xf32, #tpu.memory_space<vmem>>, vector<1x32xf32>
    %834 = vector.broadcast %833 : vector<1x32xf32> to vector<16x32xf32>
    %835 = arith.addf %832, %834 : vector<16x32xf32>
    %836 = vector.extract_strided_slice %828 {offsets = [0, 22], sizes = [16, 1], strides = [1, 1]} : vector<16x32xf32> to vector<16x1xf32>
    %cst_517 = arith.constant 0.000000e+00 : f32
    %837 = vector.broadcast %cst_517 : f32 to vector<16x1xf32>
    %838 = arith.maximumf %836, %837 : vector<16x1xf32>
    %839 = vector.extract_strided_slice %809 {offsets = [0, 22], sizes = [16, 1], strides = [1, 1]} : vector<16x32xf32> to vector<16x1xf32>
    %840 = arith.mulf %838, %838 : vector<16x1xf32>
    %841 = arith.addf %839, %840 : vector<16x1xf32>
    %842 = arith.truncf %841 : vector<16x1xf32> to vector<16x1xbf16>
    %c0_518 = arith.constant 0 : index
    %c22 = arith.constant 22 : index
    %843 = vector.load %arg9[%c0_518, %c22] : memref<32x32xbf16, #tpu.memory_space<vmem>>, vector<16x1xbf16>
    tpu.vector_store %arg9[%c0_518, %c22], %842 {strides = array<i32>} : memref<32x32xbf16, #tpu.memory_space<vmem>>, vector<16x1xbf16>,
    %cst_519 = arith.constant 0.000000e+00 : f32
    %844 = vector.broadcast %cst_519 : f32 to vector<16x32xf32>
    %845 = arith.maximumf %828, %844 : vector<16x32xf32>
    %846 = arith.mulf %845, %845 : vector<16x32xf32>
    %847 = arith.addf %809, %846 : vector<16x32xf32>
    %848 = vector.extract_strided_slice %835 {offsets = [0, 22], sizes = [16, 1], strides = [1, 1]} : vector<16x32xf32> to vector<16x1xf32>
    %cst_520 = arith.constant 0.000000e+00 : f32
    %849 = vector.broadcast %cst_520 : f32 to vector<16x1xf32>
    %850 = arith.maximumf %848, %849 : vector<16x1xf32>
    %851 = vector.extract_strided_slice %821 {offsets = [0, 22], sizes = [16, 1], strides = [1, 1]} : vector<16x32xf32> to vector<16x1xf32>
    %852 = arith.mulf %850, %850 : vector<16x1xf32>
    %853 = arith.addf %851, %852 : vector<16x1xf32>
    %854 = arith.truncf %853 : vector<16x1xf32> to vector<16x1xbf16>
    %c16_521 = arith.constant 16 : index
    %c22_522 = arith.constant 22 : index
    %855 = vector.load %arg9[%c16_521, %c22_522] : memref<32x32xbf16, #tpu.memory_space<vmem>>, vector<16x1xbf16>
    tpu.vector_store %arg9[%c16_521, %c22_522], %854 {strides = array<i32>} : memref<32x32xbf16, #tpu.memory_space<vmem>>, vector<16x1xbf16>,
    %cst_523 = arith.constant 0.000000e+00 : f32
    %856 = vector.broadcast %cst_523 : f32 to vector<16x32xf32>
    %857 = arith.maximumf %835, %856 : vector<16x32xf32>
    %858 = arith.mulf %857, %857 : vector<16x32xf32>
    %859 = arith.addf %821, %858 : vector<16x32xf32>
    %c0_524 = arith.constant 0 : index
    %c0_525 = arith.constant 0 : index
    %860 = vector.load %arg9[%c0_524, %c0_525] : memref<32x32xbf16, #tpu.memory_space<vmem>>, vector<16x32xbf16>
    %c22_526 = arith.constant 22 : index
    %c0_527 = arith.constant 0 : index
    %c0_528 = arith.constant 0 : index
    %861 = vector.load %arg4[%c22_526, %c0_527, %c0_528] : memref<31x32x32xbf16, #tpu.memory_space<vmem>>, vector<1x32x32xbf16>
    %862 = vector.shape_cast %861 : vector<1x32x32xbf16> to vector<32x32xbf16>
    %cst_529 = arith.constant dense<0.000000e+00> : vector<16x32xf32>
    %863 = tpu.matmul %860, %862, %cst_529 {dimension_numbers = #tpu.dot_dimension_numbers<[1], [0], [0], [1], [0, 0, 1, 1], [], []>} : vector<16x32xbf16>, vector<32x32xbf16>, vector<16x32xf32> -> vector<16x32xf32>
    %c22_530 = arith.constant 22 : index
    %c0_531 = arith.constant 0 : index
    %864 = vector.load %arg5[%c22_530, %c0_531] : memref<31x32xf32, #tpu.memory_space<vmem>>, vector<1x32xf32>
    %865 = vector.broadcast %864 : vector<1x32xf32> to vector<16x32xf32>
    %866 = arith.addf %863, %865 : vector<16x32xf32>
    %c16_532 = arith.constant 16 : index
    %c0_533 = arith.constant 0 : index
    %867 = vector.load %arg9[%c16_532, %c0_533] : memref<32x32xbf16, #tpu.memory_space<vmem>>, vector<16x32xbf16>
    %c22_534 = arith.constant 22 : index
    %c0_535 = arith.constant 0 : index
    %c0_536 = arith.constant 0 : index
    %868 = vector.load %arg4[%c22_534, %c0_535, %c0_536] : memref<31x32x32xbf16, #tpu.memory_space<vmem>>, vector<1x32x32xbf16>
    %869 = vector.shape_cast %868 : vector<1x32x32xbf16> to vector<32x32xbf16>
    %cst_537 = arith.constant dense<0.000000e+00> : vector<16x32xf32>
    %870 = tpu.matmul %867, %869, %cst_537 {dimension_numbers = #tpu.dot_dimension_numbers<[1], [0], [0], [1], [0, 0, 1, 1], [], []>} : vector<16x32xbf16>, vector<32x32xbf16>, vector<16x32xf32> -> vector<16x32xf32>
    %c22_538 = arith.constant 22 : index
    %c0_539 = arith.constant 0 : index
    %871 = vector.load %arg5[%c22_538, %c0_539] : memref<31x32xf32, #tpu.memory_space<vmem>>, vector<1x32xf32>
    %872 = vector.broadcast %871 : vector<1x32xf32> to vector<16x32xf32>
    %873 = arith.addf %870, %872 : vector<16x32xf32>
    %874 = vector.extract_strided_slice %866 {offsets = [0, 23], sizes = [16, 1], strides = [1, 1]} : vector<16x32xf32> to vector<16x1xf32>
    %cst_540 = arith.constant 0.000000e+00 : f32
    %875 = vector.broadcast %cst_540 : f32 to vector<16x1xf32>
    %876 = arith.maximumf %874, %875 : vector<16x1xf32>
    %877 = vector.extract_strided_slice %847 {offsets = [0, 23], sizes = [16, 1], strides = [1, 1]} : vector<16x32xf32> to vector<16x1xf32>
    %878 = arith.mulf %876, %876 : vector<16x1xf32>
    %879 = arith.addf %877, %878 : vector<16x1xf32>
    %880 = arith.truncf %879 : vector<16x1xf32> to vector<16x1xbf16>
    %c0_541 = arith.constant 0 : index
    %c23 = arith.constant 23 : index
    %881 = vector.load %arg9[%c0_541, %c23] : memref<32x32xbf16, #tpu.memory_space<vmem>>, vector<16x1xbf16>
    tpu.vector_store %arg9[%c0_541, %c23], %880 {strides = array<i32>} : memref<32x32xbf16, #tpu.memory_space<vmem>>, vector<16x1xbf16>,
    %cst_542 = arith.constant 0.000000e+00 : f32
    %882 = vector.broadcast %cst_542 : f32 to vector<16x32xf32>
    %883 = arith.maximumf %866, %882 : vector<16x32xf32>
    %884 = arith.mulf %883, %883 : vector<16x32xf32>
    %885 = arith.addf %847, %884 : vector<16x32xf32>
    %886 = vector.extract_strided_slice %873 {offsets = [0, 23], sizes = [16, 1], strides = [1, 1]} : vector<16x32xf32> to vector<16x1xf32>
    %cst_543 = arith.constant 0.000000e+00 : f32
    %887 = vector.broadcast %cst_543 : f32 to vector<16x1xf32>
    %888 = arith.maximumf %886, %887 : vector<16x1xf32>
    %889 = vector.extract_strided_slice %859 {offsets = [0, 23], sizes = [16, 1], strides = [1, 1]} : vector<16x32xf32> to vector<16x1xf32>
    %890 = arith.mulf %888, %888 : vector<16x1xf32>
    %891 = arith.addf %889, %890 : vector<16x1xf32>
    %892 = arith.truncf %891 : vector<16x1xf32> to vector<16x1xbf16>
    %c16_544 = arith.constant 16 : index
    %c23_545 = arith.constant 23 : index
    %893 = vector.load %arg9[%c16_544, %c23_545] : memref<32x32xbf16, #tpu.memory_space<vmem>>, vector<16x1xbf16>
    tpu.vector_store %arg9[%c16_544, %c23_545], %892 {strides = array<i32>} : memref<32x32xbf16, #tpu.memory_space<vmem>>, vector<16x1xbf16>,
    %cst_546 = arith.constant 0.000000e+00 : f32
    %894 = vector.broadcast %cst_546 : f32 to vector<16x32xf32>
    %895 = arith.maximumf %873, %894 : vector<16x32xf32>
    %896 = arith.mulf %895, %895 : vector<16x32xf32>
    %897 = arith.addf %859, %896 : vector<16x32xf32>
    %c0_547 = arith.constant 0 : index
    %c0_548 = arith.constant 0 : index
    %898 = vector.load %arg9[%c0_547, %c0_548] : memref<32x32xbf16, #tpu.memory_space<vmem>>, vector<16x32xbf16>
    %c23_549 = arith.constant 23 : index
    %c0_550 = arith.constant 0 : index
    %c0_551 = arith.constant 0 : index
    %899 = vector.load %arg4[%c23_549, %c0_550, %c0_551] : memref<31x32x32xbf16, #tpu.memory_space<vmem>>, vector<1x32x32xbf16>
    %900 = vector.shape_cast %899 : vector<1x32x32xbf16> to vector<32x32xbf16>
    %cst_552 = arith.constant dense<0.000000e+00> : vector<16x32xf32>
    %901 = tpu.matmul %898, %900, %cst_552 {dimension_numbers = #tpu.dot_dimension_numbers<[1], [0], [0], [1], [0, 0, 1, 1], [], []>} : vector<16x32xbf16>, vector<32x32xbf16>, vector<16x32xf32> -> vector<16x32xf32>
    %c23_553 = arith.constant 23 : index
    %c0_554 = arith.constant 0 : index
    %902 = vector.load %arg5[%c23_553, %c0_554] : memref<31x32xf32, #tpu.memory_space<vmem>>, vector<1x32xf32>
    %903 = vector.broadcast %902 : vector<1x32xf32> to vector<16x32xf32>
    %904 = arith.addf %901, %903 : vector<16x32xf32>
    %c16_555 = arith.constant 16 : index
    %c0_556 = arith.constant 0 : index
    %905 = vector.load %arg9[%c16_555, %c0_556] : memref<32x32xbf16, #tpu.memory_space<vmem>>, vector<16x32xbf16>
    %c23_557 = arith.constant 23 : index
    %c0_558 = arith.constant 0 : index
    %c0_559 = arith.constant 0 : index
    %906 = vector.load %arg4[%c23_557, %c0_558, %c0_559] : memref<31x32x32xbf16, #tpu.memory_space<vmem>>, vector<1x32x32xbf16>
    %907 = vector.shape_cast %906 : vector<1x32x32xbf16> to vector<32x32xbf16>
    %cst_560 = arith.constant dense<0.000000e+00> : vector<16x32xf32>
    %908 = tpu.matmul %905, %907, %cst_560 {dimension_numbers = #tpu.dot_dimension_numbers<[1], [0], [0], [1], [0, 0, 1, 1], [], []>} : vector<16x32xbf16>, vector<32x32xbf16>, vector<16x32xf32> -> vector<16x32xf32>
    %c23_561 = arith.constant 23 : index
    %c0_562 = arith.constant 0 : index
    %909 = vector.load %arg5[%c23_561, %c0_562] : memref<31x32xf32, #tpu.memory_space<vmem>>, vector<1x32xf32>
    %910 = vector.broadcast %909 : vector<1x32xf32> to vector<16x32xf32>
    %911 = arith.addf %908, %910 : vector<16x32xf32>
    %912 = vector.extract_strided_slice %904 {offsets = [0, 24], sizes = [16, 1], strides = [1, 1]} : vector<16x32xf32> to vector<16x1xf32>
    %cst_563 = arith.constant 0.000000e+00 : f32
    %913 = vector.broadcast %cst_563 : f32 to vector<16x1xf32>
    %914 = arith.maximumf %912, %913 : vector<16x1xf32>
    %915 = vector.extract_strided_slice %885 {offsets = [0, 24], sizes = [16, 1], strides = [1, 1]} : vector<16x32xf32> to vector<16x1xf32>
    %916 = arith.mulf %914, %914 : vector<16x1xf32>
    %917 = arith.addf %915, %916 : vector<16x1xf32>
    %918 = arith.truncf %917 : vector<16x1xf32> to vector<16x1xbf16>
    %c0_564 = arith.constant 0 : index
    %c24 = arith.constant 24 : index
    %919 = vector.load %arg9[%c0_564, %c24] : memref<32x32xbf16, #tpu.memory_space<vmem>>, vector<16x1xbf16>
    tpu.vector_store %arg9[%c0_564, %c24], %918 {strides = array<i32>} : memref<32x32xbf16, #tpu.memory_space<vmem>>, vector<16x1xbf16>,
    %cst_565 = arith.constant 0.000000e+00 : f32
    %920 = vector.broadcast %cst_565 : f32 to vector<16x32xf32>
    %921 = arith.maximumf %904, %920 : vector<16x32xf32>
    %922 = arith.mulf %921, %921 : vector<16x32xf32>
    %923 = arith.addf %885, %922 : vector<16x32xf32>
    %924 = vector.extract_strided_slice %911 {offsets = [0, 24], sizes = [16, 1], strides = [1, 1]} : vector<16x32xf32> to vector<16x1xf32>
    %cst_566 = arith.constant 0.000000e+00 : f32
    %925 = vector.broadcast %cst_566 : f32 to vector<16x1xf32>
    %926 = arith.maximumf %924, %925 : vector<16x1xf32>
    %927 = vector.extract_strided_slice %897 {offsets = [0, 24], sizes = [16, 1], strides = [1, 1]} : vector<16x32xf32> to vector<16x1xf32>
    %928 = arith.mulf %926, %926 : vector<16x1xf32>
    %929 = arith.addf %927, %928 : vector<16x1xf32>
    %930 = arith.truncf %929 : vector<16x1xf32> to vector<16x1xbf16>
    %c16_567 = arith.constant 16 : index
    %c24_568 = arith.constant 24 : index
    %931 = vector.load %arg9[%c16_567, %c24_568] : memref<32x32xbf16, #tpu.memory_space<vmem>>, vector<16x1xbf16>
    tpu.vector_store %arg9[%c16_567, %c24_568], %930 {strides = array<i32>} : memref<32x32xbf16, #tpu.memory_space<vmem>>, vector<16x1xbf16>,
    %cst_569 = arith.constant 0.000000e+00 : f32
    %932 = vector.broadcast %cst_569 : f32 to vector<16x32xf32>
    %933 = arith.maximumf %911, %932 : vector<16x32xf32>
    %934 = arith.mulf %933, %933 : vector<16x32xf32>
    %935 = arith.addf %897, %934 : vector<16x32xf32>
    %c0_570 = arith.constant 0 : index
    %c0_571 = arith.constant 0 : index
    %936 = vector.load %arg9[%c0_570, %c0_571] : memref<32x32xbf16, #tpu.memory_space<vmem>>, vector<16x32xbf16>
    %c24_572 = arith.constant 24 : index
    %c0_573 = arith.constant 0 : index
    %c0_574 = arith.constant 0 : index
    %937 = vector.load %arg4[%c24_572, %c0_573, %c0_574] : memref<31x32x32xbf16, #tpu.memory_space<vmem>>, vector<1x32x32xbf16>
    %938 = vector.shape_cast %937 : vector<1x32x32xbf16> to vector<32x32xbf16>
    %cst_575 = arith.constant dense<0.000000e+00> : vector<16x32xf32>
    %939 = tpu.matmul %936, %938, %cst_575 {dimension_numbers = #tpu.dot_dimension_numbers<[1], [0], [0], [1], [0, 0, 1, 1], [], []>} : vector<16x32xbf16>, vector<32x32xbf16>, vector<16x32xf32> -> vector<16x32xf32>
    %c24_576 = arith.constant 24 : index
    %c0_577 = arith.constant 0 : index
    %940 = vector.load %arg5[%c24_576, %c0_577] : memref<31x32xf32, #tpu.memory_space<vmem>>, vector<1x32xf32>
    %941 = vector.broadcast %940 : vector<1x32xf32> to vector<16x32xf32>
    %942 = arith.addf %939, %941 : vector<16x32xf32>
    %c16_578 = arith.constant 16 : index
    %c0_579 = arith.constant 0 : index
    %943 = vector.load %arg9[%c16_578, %c0_579] : memref<32x32xbf16, #tpu.memory_space<vmem>>, vector<16x32xbf16>
    %c24_580 = arith.constant 24 : index
    %c0_581 = arith.constant 0 : index
    %c0_582 = arith.constant 0 : index
    %944 = vector.load %arg4[%c24_580, %c0_581, %c0_582] : memref<31x32x32xbf16, #tpu.memory_space<vmem>>, vector<1x32x32xbf16>
    %945 = vector.shape_cast %944 : vector<1x32x32xbf16> to vector<32x32xbf16>
    %cst_583 = arith.constant dense<0.000000e+00> : vector<16x32xf32>
    %946 = tpu.matmul %943, %945, %cst_583 {dimension_numbers = #tpu.dot_dimension_numbers<[1], [0], [0], [1], [0, 0, 1, 1], [], []>} : vector<16x32xbf16>, vector<32x32xbf16>, vector<16x32xf32> -> vector<16x32xf32>
    %c24_584 = arith.constant 24 : index
    %c0_585 = arith.constant 0 : index
    %947 = vector.load %arg5[%c24_584, %c0_585] : memref<31x32xf32, #tpu.memory_space<vmem>>, vector<1x32xf32>
    %948 = vector.broadcast %947 : vector<1x32xf32> to vector<16x32xf32>
    %949 = arith.addf %946, %948 : vector<16x32xf32>
    %950 = vector.extract_strided_slice %942 {offsets = [0, 25], sizes = [16, 1], strides = [1, 1]} : vector<16x32xf32> to vector<16x1xf32>
    %cst_586 = arith.constant 0.000000e+00 : f32
    %951 = vector.broadcast %cst_586 : f32 to vector<16x1xf32>
    %952 = arith.maximumf %950, %951 : vector<16x1xf32>
    %953 = vector.extract_strided_slice %923 {offsets = [0, 25], sizes = [16, 1], strides = [1, 1]} : vector<16x32xf32> to vector<16x1xf32>
    %954 = arith.mulf %952, %952 : vector<16x1xf32>
    %955 = arith.addf %953, %954 : vector<16x1xf32>
    %956 = arith.truncf %955 : vector<16x1xf32> to vector<16x1xbf16>
    %c0_587 = arith.constant 0 : index
    %c25 = arith.constant 25 : index
    %957 = vector.load %arg9[%c0_587, %c25] : memref<32x32xbf16, #tpu.memory_space<vmem>>, vector<16x1xbf16>
    tpu.vector_store %arg9[%c0_587, %c25], %956 {strides = array<i32>} : memref<32x32xbf16, #tpu.memory_space<vmem>>, vector<16x1xbf16>,
    %cst_588 = arith.constant 0.000000e+00 : f32
    %958 = vector.broadcast %cst_588 : f32 to vector<16x32xf32>
    %959 = arith.maximumf %942, %958 : vector<16x32xf32>
    %960 = arith.mulf %959, %959 : vector<16x32xf32>
    %961 = arith.addf %923, %960 : vector<16x32xf32>
    %962 = vector.extract_strided_slice %949 {offsets = [0, 25], sizes = [16, 1], strides = [1, 1]} : vector<16x32xf32> to vector<16x1xf32>
    %cst_589 = arith.constant 0.000000e+00 : f32
    %963 = vector.broadcast %cst_589 : f32 to vector<16x1xf32>
    %964 = arith.maximumf %962, %963 : vector<16x1xf32>
    %965 = vector.extract_strided_slice %935 {offsets = [0, 25], sizes = [16, 1], strides = [1, 1]} : vector<16x32xf32> to vector<16x1xf32>
    %966 = arith.mulf %964, %964 : vector<16x1xf32>
    %967 = arith.addf %965, %966 : vector<16x1xf32>
    %968 = arith.truncf %967 : vector<16x1xf32> to vector<16x1xbf16>
    %c16_590 = arith.constant 16 : index
    %c25_591 = arith.constant 25 : index
    %969 = vector.load %arg9[%c16_590, %c25_591] : memref<32x32xbf16, #tpu.memory_space<vmem>>, vector<16x1xbf16>
    tpu.vector_store %arg9[%c16_590, %c25_591], %968 {strides = array<i32>} : memref<32x32xbf16, #tpu.memory_space<vmem>>, vector<16x1xbf16>,
    %cst_592 = arith.constant 0.000000e+00 : f32
    %970 = vector.broadcast %cst_592 : f32 to vector<16x32xf32>
    %971 = arith.maximumf %949, %970 : vector<16x32xf32>
    %972 = arith.mulf %971, %971 : vector<16x32xf32>
    %973 = arith.addf %935, %972 : vector<16x32xf32>
    %c0_593 = arith.constant 0 : index
    %c0_594 = arith.constant 0 : index
    %974 = vector.load %arg9[%c0_593, %c0_594] : memref<32x32xbf16, #tpu.memory_space<vmem>>, vector<16x32xbf16>
    %c25_595 = arith.constant 25 : index
    %c0_596 = arith.constant 0 : index
    %c0_597 = arith.constant 0 : index
    %975 = vector.load %arg4[%c25_595, %c0_596, %c0_597] : memref<31x32x32xbf16, #tpu.memory_space<vmem>>, vector<1x32x32xbf16>
    %976 = vector.shape_cast %975 : vector<1x32x32xbf16> to vector<32x32xbf16>
    %cst_598 = arith.constant dense<0.000000e+00> : vector<16x32xf32>
    %977 = tpu.matmul %974, %976, %cst_598 {dimension_numbers = #tpu.dot_dimension_numbers<[1], [0], [0], [1], [0, 0, 1, 1], [], []>} : vector<16x32xbf16>, vector<32x32xbf16>, vector<16x32xf32> -> vector<16x32xf32>
    %c25_599 = arith.constant 25 : index
    %c0_600 = arith.constant 0 : index
    %978 = vector.load %arg5[%c25_599, %c0_600] : memref<31x32xf32, #tpu.memory_space<vmem>>, vector<1x32xf32>
    %979 = vector.broadcast %978 : vector<1x32xf32> to vector<16x32xf32>
    %980 = arith.addf %977, %979 : vector<16x32xf32>
    %c16_601 = arith.constant 16 : index
    %c0_602 = arith.constant 0 : index
    %981 = vector.load %arg9[%c16_601, %c0_602] : memref<32x32xbf16, #tpu.memory_space<vmem>>, vector<16x32xbf16>
    %c25_603 = arith.constant 25 : index
    %c0_604 = arith.constant 0 : index
    %c0_605 = arith.constant 0 : index
    %982 = vector.load %arg4[%c25_603, %c0_604, %c0_605] : memref<31x32x32xbf16, #tpu.memory_space<vmem>>, vector<1x32x32xbf16>
    %983 = vector.shape_cast %982 : vector<1x32x32xbf16> to vector<32x32xbf16>
    %cst_606 = arith.constant dense<0.000000e+00> : vector<16x32xf32>
    %984 = tpu.matmul %981, %983, %cst_606 {dimension_numbers = #tpu.dot_dimension_numbers<[1], [0], [0], [1], [0, 0, 1, 1], [], []>} : vector<16x32xbf16>, vector<32x32xbf16>, vector<16x32xf32> -> vector<16x32xf32>
    %c25_607 = arith.constant 25 : index
    %c0_608 = arith.constant 0 : index
    %985 = vector.load %arg5[%c25_607, %c0_608] : memref<31x32xf32, #tpu.memory_space<vmem>>, vector<1x32xf32>
    %986 = vector.broadcast %985 : vector<1x32xf32> to vector<16x32xf32>
    %987 = arith.addf %984, %986 : vector<16x32xf32>
    %988 = vector.extract_strided_slice %980 {offsets = [0, 26], sizes = [16, 1], strides = [1, 1]} : vector<16x32xf32> to vector<16x1xf32>
    %cst_609 = arith.constant 0.000000e+00 : f32
    %989 = vector.broadcast %cst_609 : f32 to vector<16x1xf32>
    %990 = arith.maximumf %988, %989 : vector<16x1xf32>
    %991 = vector.extract_strided_slice %961 {offsets = [0, 26], sizes = [16, 1], strides = [1, 1]} : vector<16x32xf32> to vector<16x1xf32>
    %992 = arith.mulf %990, %990 : vector<16x1xf32>
    %993 = arith.addf %991, %992 : vector<16x1xf32>
    %994 = arith.truncf %993 : vector<16x1xf32> to vector<16x1xbf16>
    %c0_610 = arith.constant 0 : index
    %c26 = arith.constant 26 : index
    %995 = vector.load %arg9[%c0_610, %c26] : memref<32x32xbf16, #tpu.memory_space<vmem>>, vector<16x1xbf16>
    tpu.vector_store %arg9[%c0_610, %c26], %994 {strides = array<i32>} : memref<32x32xbf16, #tpu.memory_space<vmem>>, vector<16x1xbf16>,
    %cst_611 = arith.constant 0.000000e+00 : f32
    %996 = vector.broadcast %cst_611 : f32 to vector<16x32xf32>
    %997 = arith.maximumf %980, %996 : vector<16x32xf32>
    %998 = arith.mulf %997, %997 : vector<16x32xf32>
    %999 = arith.addf %961, %998 : vector<16x32xf32>
    %1000 = vector.extract_strided_slice %987 {offsets = [0, 26], sizes = [16, 1], strides = [1, 1]} : vector<16x32xf32> to vector<16x1xf32>
    %cst_612 = arith.constant 0.000000e+00 : f32
    %1001 = vector.broadcast %cst_612 : f32 to vector<16x1xf32>
    %1002 = arith.maximumf %1000, %1001 : vector<16x1xf32>
    %1003 = vector.extract_strided_slice %973 {offsets = [0, 26], sizes = [16, 1], strides = [1, 1]} : vector<16x32xf32> to vector<16x1xf32>
    %1004 = arith.mulf %1002, %1002 : vector<16x1xf32>
    %1005 = arith.addf %1003, %1004 : vector<16x1xf32>
    %1006 = arith.truncf %1005 : vector<16x1xf32> to vector<16x1xbf16>
    %c16_613 = arith.constant 16 : index
    %c26_614 = arith.constant 26 : index
    %1007 = vector.load %arg9[%c16_613, %c26_614] : memref<32x32xbf16, #tpu.memory_space<vmem>>, vector<16x1xbf16>
    tpu.vector_store %arg9[%c16_613, %c26_614], %1006 {strides = array<i32>} : memref<32x32xbf16, #tpu.memory_space<vmem>>, vector<16x1xbf16>,
    %cst_615 = arith.constant 0.000000e+00 : f32
    %1008 = vector.broadcast %cst_615 : f32 to vector<16x32xf32>
    %1009 = arith.maximumf %987, %1008 : vector<16x32xf32>
    %1010 = arith.mulf %1009, %1009 : vector<16x32xf32>
    %1011 = arith.addf %973, %1010 : vector<16x32xf32>
    %c0_616 = arith.constant 0 : index
    %c0_617 = arith.constant 0 : index
    %1012 = vector.load %arg9[%c0_616, %c0_617] : memref<32x32xbf16, #tpu.memory_space<vmem>>, vector<16x32xbf16>
    %c26_618 = arith.constant 26 : index
    %c0_619 = arith.constant 0 : index
    %c0_620 = arith.constant 0 : index
    %1013 = vector.load %arg4[%c26_618, %c0_619, %c0_620] : memref<31x32x32xbf16, #tpu.memory_space<vmem>>, vector<1x32x32xbf16>
    %1014 = vector.shape_cast %1013 : vector<1x32x32xbf16> to vector<32x32xbf16>
    %cst_621 = arith.constant dense<0.000000e+00> : vector<16x32xf32>
    %1015 = tpu.matmul %1012, %1014, %cst_621 {dimension_numbers = #tpu.dot_dimension_numbers<[1], [0], [0], [1], [0, 0, 1, 1], [], []>} : vector<16x32xbf16>, vector<32x32xbf16>, vector<16x32xf32> -> vector<16x32xf32>
    %c26_622 = arith.constant 26 : index
    %c0_623 = arith.constant 0 : index
    %1016 = vector.load %arg5[%c26_622, %c0_623] : memref<31x32xf32, #tpu.memory_space<vmem>>, vector<1x32xf32>
    %1017 = vector.broadcast %1016 : vector<1x32xf32> to vector<16x32xf32>
    %1018 = arith.addf %1015, %1017 : vector<16x32xf32>
    %c16_624 = arith.constant 16 : index
    %c0_625 = arith.constant 0 : index
    %1019 = vector.load %arg9[%c16_624, %c0_625] : memref<32x32xbf16, #tpu.memory_space<vmem>>, vector<16x32xbf16>
    %c26_626 = arith.constant 26 : index
    %c0_627 = arith.constant 0 : index
    %c0_628 = arith.constant 0 : index
    %1020 = vector.load %arg4[%c26_626, %c0_627, %c0_628] : memref<31x32x32xbf16, #tpu.memory_space<vmem>>, vector<1x32x32xbf16>
    %1021 = vector.shape_cast %1020 : vector<1x32x32xbf16> to vector<32x32xbf16>
    %cst_629 = arith.constant dense<0.000000e+00> : vector<16x32xf32>
    %1022 = tpu.matmul %1019, %1021, %cst_629 {dimension_numbers = #tpu.dot_dimension_numbers<[1], [0], [0], [1], [0, 0, 1, 1], [], []>} : vector<16x32xbf16>, vector<32x32xbf16>, vector<16x32xf32> -> vector<16x32xf32>
    %c26_630 = arith.constant 26 : index
    %c0_631 = arith.constant 0 : index
    %1023 = vector.load %arg5[%c26_630, %c0_631] : memref<31x32xf32, #tpu.memory_space<vmem>>, vector<1x32xf32>
    %1024 = vector.broadcast %1023 : vector<1x32xf32> to vector<16x32xf32>
    %1025 = arith.addf %1022, %1024 : vector<16x32xf32>
    %1026 = vector.extract_strided_slice %1018 {offsets = [0, 27], sizes = [16, 1], strides = [1, 1]} : vector<16x32xf32> to vector<16x1xf32>
    %cst_632 = arith.constant 0.000000e+00 : f32
    %1027 = vector.broadcast %cst_632 : f32 to vector<16x1xf32>
    %1028 = arith.maximumf %1026, %1027 : vector<16x1xf32>
    %1029 = vector.extract_strided_slice %999 {offsets = [0, 27], sizes = [16, 1], strides = [1, 1]} : vector<16x32xf32> to vector<16x1xf32>
    %1030 = arith.mulf %1028, %1028 : vector<16x1xf32>
    %1031 = arith.addf %1029, %1030 : vector<16x1xf32>
    %1032 = arith.truncf %1031 : vector<16x1xf32> to vector<16x1xbf16>
    %c0_633 = arith.constant 0 : index
    %c27 = arith.constant 27 : index
    %1033 = vector.load %arg9[%c0_633, %c27] : memref<32x32xbf16, #tpu.memory_space<vmem>>, vector<16x1xbf16>
    tpu.vector_store %arg9[%c0_633, %c27], %1032 {strides = array<i32>} : memref<32x32xbf16, #tpu.memory_space<vmem>>, vector<16x1xbf16>,
    %cst_634 = arith.constant 0.000000e+00 : f32
    %1034 = vector.broadcast %cst_634 : f32 to vector<16x32xf32>
    %1035 = arith.maximumf %1018, %1034 : vector<16x32xf32>
    %1036 = arith.mulf %1035, %1035 : vector<16x32xf32>
    %1037 = arith.addf %999, %1036 : vector<16x32xf32>
    %1038 = vector.extract_strided_slice %1025 {offsets = [0, 27], sizes = [16, 1], strides = [1, 1]} : vector<16x32xf32> to vector<16x1xf32>
    %cst_635 = arith.constant 0.000000e+00 : f32
    %1039 = vector.broadcast %cst_635 : f32 to vector<16x1xf32>
    %1040 = arith.maximumf %1038, %1039 : vector<16x1xf32>
    %1041 = vector.extract_strided_slice %1011 {offsets = [0, 27], sizes = [16, 1], strides = [1, 1]} : vector<16x32xf32> to vector<16x1xf32>
    %1042 = arith.mulf %1040, %1040 : vector<16x1xf32>
    %1043 = arith.addf %1041, %1042 : vector<16x1xf32>
    %1044 = arith.truncf %1043 : vector<16x1xf32> to vector<16x1xbf16>
    %c16_636 = arith.constant 16 : index
    %c27_637 = arith.constant 27 : index
    %1045 = vector.load %arg9[%c16_636, %c27_637] : memref<32x32xbf16, #tpu.memory_space<vmem>>, vector<16x1xbf16>
    tpu.vector_store %arg9[%c16_636, %c27_637], %1044 {strides = array<i32>} : memref<32x32xbf16, #tpu.memory_space<vmem>>, vector<16x1xbf16>,
    %cst_638 = arith.constant 0.000000e+00 : f32
    %1046 = vector.broadcast %cst_638 : f32 to vector<16x32xf32>
    %1047 = arith.maximumf %1025, %1046 : vector<16x32xf32>
    %1048 = arith.mulf %1047, %1047 : vector<16x32xf32>
    %1049 = arith.addf %1011, %1048 : vector<16x32xf32>
    %c0_639 = arith.constant 0 : index
    %c0_640 = arith.constant 0 : index
    %1050 = vector.load %arg9[%c0_639, %c0_640] : memref<32x32xbf16, #tpu.memory_space<vmem>>, vector<16x32xbf16>
    %c27_641 = arith.constant 27 : index
    %c0_642 = arith.constant 0 : index
    %c0_643 = arith.constant 0 : index
    %1051 = vector.load %arg4[%c27_641, %c0_642, %c0_643] : memref<31x32x32xbf16, #tpu.memory_space<vmem>>, vector<1x32x32xbf16>
    %1052 = vector.shape_cast %1051 : vector<1x32x32xbf16> to vector<32x32xbf16>
    %cst_644 = arith.constant dense<0.000000e+00> : vector<16x32xf32>
    %1053 = tpu.matmul %1050, %1052, %cst_644 {dimension_numbers = #tpu.dot_dimension_numbers<[1], [0], [0], [1], [0, 0, 1, 1], [], []>} : vector<16x32xbf16>, vector<32x32xbf16>, vector<16x32xf32> -> vector<16x32xf32>
    %c27_645 = arith.constant 27 : index
    %c0_646 = arith.constant 0 : index
    %1054 = vector.load %arg5[%c27_645, %c0_646] : memref<31x32xf32, #tpu.memory_space<vmem>>, vector<1x32xf32>
    %1055 = vector.broadcast %1054 : vector<1x32xf32> to vector<16x32xf32>
    %1056 = arith.addf %1053, %1055 : vector<16x32xf32>
    %c16_647 = arith.constant 16 : index
    %c0_648 = arith.constant 0 : index
    %1057 = vector.load %arg9[%c16_647, %c0_648] : memref<32x32xbf16, #tpu.memory_space<vmem>>, vector<16x32xbf16>
    %c27_649 = arith.constant 27 : index
    %c0_650 = arith.constant 0 : index
    %c0_651 = arith.constant 0 : index
    %1058 = vector.load %arg4[%c27_649, %c0_650, %c0_651] : memref<31x32x32xbf16, #tpu.memory_space<vmem>>, vector<1x32x32xbf16>
    %1059 = vector.shape_cast %1058 : vector<1x32x32xbf16> to vector<32x32xbf16>
    %cst_652 = arith.constant dense<0.000000e+00> : vector<16x32xf32>
    %1060 = tpu.matmul %1057, %1059, %cst_652 {dimension_numbers = #tpu.dot_dimension_numbers<[1], [0], [0], [1], [0, 0, 1, 1], [], []>} : vector<16x32xbf16>, vector<32x32xbf16>, vector<16x32xf32> -> vector<16x32xf32>
    %c27_653 = arith.constant 27 : index
    %c0_654 = arith.constant 0 : index
    %1061 = vector.load %arg5[%c27_653, %c0_654] : memref<31x32xf32, #tpu.memory_space<vmem>>, vector<1x32xf32>
    %1062 = vector.broadcast %1061 : vector<1x32xf32> to vector<16x32xf32>
    %1063 = arith.addf %1060, %1062 : vector<16x32xf32>
    %1064 = vector.extract_strided_slice %1056 {offsets = [0, 28], sizes = [16, 1], strides = [1, 1]} : vector<16x32xf32> to vector<16x1xf32>
    %cst_655 = arith.constant 0.000000e+00 : f32
    %1065 = vector.broadcast %cst_655 : f32 to vector<16x1xf32>
    %1066 = arith.maximumf %1064, %1065 : vector<16x1xf32>
    %1067 = vector.extract_strided_slice %1037 {offsets = [0, 28], sizes = [16, 1], strides = [1, 1]} : vector<16x32xf32> to vector<16x1xf32>
    %1068 = arith.mulf %1066, %1066 : vector<16x1xf32>
    %1069 = arith.addf %1067, %1068 : vector<16x1xf32>
    %1070 = arith.truncf %1069 : vector<16x1xf32> to vector<16x1xbf16>
    %c0_656 = arith.constant 0 : index
    %c28 = arith.constant 28 : index
    %1071 = vector.load %arg9[%c0_656, %c28] : memref<32x32xbf16, #tpu.memory_space<vmem>>, vector<16x1xbf16>
    tpu.vector_store %arg9[%c0_656, %c28], %1070 {strides = array<i32>} : memref<32x32xbf16, #tpu.memory_space<vmem>>, vector<16x1xbf16>,
    %cst_657 = arith.constant 0.000000e+00 : f32
    %1072 = vector.broadcast %cst_657 : f32 to vector<16x32xf32>
    %1073 = arith.maximumf %1056, %1072 : vector<16x32xf32>
    %1074 = arith.mulf %1073, %1073 : vector<16x32xf32>
    %1075 = arith.addf %1037, %1074 : vector<16x32xf32>
    %1076 = vector.extract_strided_slice %1063 {offsets = [0, 28], sizes = [16, 1], strides = [1, 1]} : vector<16x32xf32> to vector<16x1xf32>
    %cst_658 = arith.constant 0.000000e+00 : f32
    %1077 = vector.broadcast %cst_658 : f32 to vector<16x1xf32>
    %1078 = arith.maximumf %1076, %1077 : vector<16x1xf32>
    %1079 = vector.extract_strided_slice %1049 {offsets = [0, 28], sizes = [16, 1], strides = [1, 1]} : vector<16x32xf32> to vector<16x1xf32>
    %1080 = arith.mulf %1078, %1078 : vector<16x1xf32>
    %1081 = arith.addf %1079, %1080 : vector<16x1xf32>
    %1082 = arith.truncf %1081 : vector<16x1xf32> to vector<16x1xbf16>
    %c16_659 = arith.constant 16 : index
    %c28_660 = arith.constant 28 : index
    %1083 = vector.load %arg9[%c16_659, %c28_660] : memref<32x32xbf16, #tpu.memory_space<vmem>>, vector<16x1xbf16>
    tpu.vector_store %arg9[%c16_659, %c28_660], %1082 {strides = array<i32>} : memref<32x32xbf16, #tpu.memory_space<vmem>>, vector<16x1xbf16>,
    %cst_661 = arith.constant 0.000000e+00 : f32
    %1084 = vector.broadcast %cst_661 : f32 to vector<16x32xf32>
    %1085 = arith.maximumf %1063, %1084 : vector<16x32xf32>
    %1086 = arith.mulf %1085, %1085 : vector<16x32xf32>
    %1087 = arith.addf %1049, %1086 : vector<16x32xf32>
    %c0_662 = arith.constant 0 : index
    %c0_663 = arith.constant 0 : index
    %1088 = vector.load %arg9[%c0_662, %c0_663] : memref<32x32xbf16, #tpu.memory_space<vmem>>, vector<16x32xbf16>
    %c28_664 = arith.constant 28 : index
    %c0_665 = arith.constant 0 : index
    %c0_666 = arith.constant 0 : index
    %1089 = vector.load %arg4[%c28_664, %c0_665, %c0_666] : memref<31x32x32xbf16, #tpu.memory_space<vmem>>, vector<1x32x32xbf16>
    %1090 = vector.shape_cast %1089 : vector<1x32x32xbf16> to vector<32x32xbf16>
    %cst_667 = arith.constant dense<0.000000e+00> : vector<16x32xf32>
    %1091 = tpu.matmul %1088, %1090, %cst_667 {dimension_numbers = #tpu.dot_dimension_numbers<[1], [0], [0], [1], [0, 0, 1, 1], [], []>} : vector<16x32xbf16>, vector<32x32xbf16>, vector<16x32xf32> -> vector<16x32xf32>
    %c28_668 = arith.constant 28 : index
    %c0_669 = arith.constant 0 : index
    %1092 = vector.load %arg5[%c28_668, %c0_669] : memref<31x32xf32, #tpu.memory_space<vmem>>, vector<1x32xf32>
    %1093 = vector.broadcast %1092 : vector<1x32xf32> to vector<16x32xf32>
    %1094 = arith.addf %1091, %1093 : vector<16x32xf32>
    %c16_670 = arith.constant 16 : index
    %c0_671 = arith.constant 0 : index
    %1095 = vector.load %arg9[%c16_670, %c0_671] : memref<32x32xbf16, #tpu.memory_space<vmem>>, vector<16x32xbf16>
    %c28_672 = arith.constant 28 : index
    %c0_673 = arith.constant 0 : index
    %c0_674 = arith.constant 0 : index
    %1096 = vector.load %arg4[%c28_672, %c0_673, %c0_674] : memref<31x32x32xbf16, #tpu.memory_space<vmem>>, vector<1x32x32xbf16>
    %1097 = vector.shape_cast %1096 : vector<1x32x32xbf16> to vector<32x32xbf16>
    %cst_675 = arith.constant dense<0.000000e+00> : vector<16x32xf32>
    %1098 = tpu.matmul %1095, %1097, %cst_675 {dimension_numbers = #tpu.dot_dimension_numbers<[1], [0], [0], [1], [0, 0, 1, 1], [], []>} : vector<16x32xbf16>, vector<32x32xbf16>, vector<16x32xf32> -> vector<16x32xf32>
    %c28_676 = arith.constant 28 : index
    %c0_677 = arith.constant 0 : index
    %1099 = vector.load %arg5[%c28_676, %c0_677] : memref<31x32xf32, #tpu.memory_space<vmem>>, vector<1x32xf32>
    %1100 = vector.broadcast %1099 : vector<1x32xf32> to vector<16x32xf32>
    %1101 = arith.addf %1098, %1100 : vector<16x32xf32>
    %1102 = vector.extract_strided_slice %1094 {offsets = [0, 29], sizes = [16, 1], strides = [1, 1]} : vector<16x32xf32> to vector<16x1xf32>
    %cst_678 = arith.constant 0.000000e+00 : f32
    %1103 = vector.broadcast %cst_678 : f32 to vector<16x1xf32>
    %1104 = arith.maximumf %1102, %1103 : vector<16x1xf32>
    %1105 = vector.extract_strided_slice %1075 {offsets = [0, 29], sizes = [16, 1], strides = [1, 1]} : vector<16x32xf32> to vector<16x1xf32>
    %1106 = arith.mulf %1104, %1104 : vector<16x1xf32>
    %1107 = arith.addf %1105, %1106 : vector<16x1xf32>
    %1108 = arith.truncf %1107 : vector<16x1xf32> to vector<16x1xbf16>
    %c0_679 = arith.constant 0 : index
    %c29 = arith.constant 29 : index
    %1109 = vector.load %arg9[%c0_679, %c29] : memref<32x32xbf16, #tpu.memory_space<vmem>>, vector<16x1xbf16>
    tpu.vector_store %arg9[%c0_679, %c29], %1108 {strides = array<i32>} : memref<32x32xbf16, #tpu.memory_space<vmem>>, vector<16x1xbf16>,
    %cst_680 = arith.constant 0.000000e+00 : f32
    %1110 = vector.broadcast %cst_680 : f32 to vector<16x32xf32>
    %1111 = arith.maximumf %1094, %1110 : vector<16x32xf32>
    %1112 = arith.mulf %1111, %1111 : vector<16x32xf32>
    %1113 = arith.addf %1075, %1112 : vector<16x32xf32>
    %1114 = vector.extract_strided_slice %1101 {offsets = [0, 29], sizes = [16, 1], strides = [1, 1]} : vector<16x32xf32> to vector<16x1xf32>
    %cst_681 = arith.constant 0.000000e+00 : f32
    %1115 = vector.broadcast %cst_681 : f32 to vector<16x1xf32>
    %1116 = arith.maximumf %1114, %1115 : vector<16x1xf32>
    %1117 = vector.extract_strided_slice %1087 {offsets = [0, 29], sizes = [16, 1], strides = [1, 1]} : vector<16x32xf32> to vector<16x1xf32>
    %1118 = arith.mulf %1116, %1116 : vector<16x1xf32>
    %1119 = arith.addf %1117, %1118 : vector<16x1xf32>
    %1120 = arith.truncf %1119 : vector<16x1xf32> to vector<16x1xbf16>
    %c16_682 = arith.constant 16 : index
    %c29_683 = arith.constant 29 : index
    %1121 = vector.load %arg9[%c16_682, %c29_683] : memref<32x32xbf16, #tpu.memory_space<vmem>>, vector<16x1xbf16>
    tpu.vector_store %arg9[%c16_682, %c29_683], %1120 {strides = array<i32>} : memref<32x32xbf16, #tpu.memory_space<vmem>>, vector<16x1xbf16>,
    %cst_684 = arith.constant 0.000000e+00 : f32
    %1122 = vector.broadcast %cst_684 : f32 to vector<16x32xf32>
    %1123 = arith.maximumf %1101, %1122 : vector<16x32xf32>
    %1124 = arith.mulf %1123, %1123 : vector<16x32xf32>
    %1125 = arith.addf %1087, %1124 : vector<16x32xf32>
    %c0_685 = arith.constant 0 : index
    %c0_686 = arith.constant 0 : index
    %1126 = vector.load %arg9[%c0_685, %c0_686] : memref<32x32xbf16, #tpu.memory_space<vmem>>, vector<16x32xbf16>
    %c29_687 = arith.constant 29 : index
    %c0_688 = arith.constant 0 : index
    %c0_689 = arith.constant 0 : index
    %1127 = vector.load %arg4[%c29_687, %c0_688, %c0_689] : memref<31x32x32xbf16, #tpu.memory_space<vmem>>, vector<1x32x32xbf16>
    %1128 = vector.shape_cast %1127 : vector<1x32x32xbf16> to vector<32x32xbf16>
    %cst_690 = arith.constant dense<0.000000e+00> : vector<16x32xf32>
    %1129 = tpu.matmul %1126, %1128, %cst_690 {dimension_numbers = #tpu.dot_dimension_numbers<[1], [0], [0], [1], [0, 0, 1, 1], [], []>} : vector<16x32xbf16>, vector<32x32xbf16>, vector<16x32xf32> -> vector<16x32xf32>
    %c29_691 = arith.constant 29 : index
    %c0_692 = arith.constant 0 : index
    %1130 = vector.load %arg5[%c29_691, %c0_692] : memref<31x32xf32, #tpu.memory_space<vmem>>, vector<1x32xf32>
    %1131 = vector.broadcast %1130 : vector<1x32xf32> to vector<16x32xf32>
    %1132 = arith.addf %1129, %1131 : vector<16x32xf32>
    %c16_693 = arith.constant 16 : index
    %c0_694 = arith.constant 0 : index
    %1133 = vector.load %arg9[%c16_693, %c0_694] : memref<32x32xbf16, #tpu.memory_space<vmem>>, vector<16x32xbf16>
    %c29_695 = arith.constant 29 : index
    %c0_696 = arith.constant 0 : index
    %c0_697 = arith.constant 0 : index
    %1134 = vector.load %arg4[%c29_695, %c0_696, %c0_697] : memref<31x32x32xbf16, #tpu.memory_space<vmem>>, vector<1x32x32xbf16>
    %1135 = vector.shape_cast %1134 : vector<1x32x32xbf16> to vector<32x32xbf16>
    %cst_698 = arith.constant dense<0.000000e+00> : vector<16x32xf32>
    %1136 = tpu.matmul %1133, %1135, %cst_698 {dimension_numbers = #tpu.dot_dimension_numbers<[1], [0], [0], [1], [0, 0, 1, 1], [], []>} : vector<16x32xbf16>, vector<32x32xbf16>, vector<16x32xf32> -> vector<16x32xf32>
    %c29_699 = arith.constant 29 : index
    %c0_700 = arith.constant 0 : index
    %1137 = vector.load %arg5[%c29_699, %c0_700] : memref<31x32xf32, #tpu.memory_space<vmem>>, vector<1x32xf32>
    %1138 = vector.broadcast %1137 : vector<1x32xf32> to vector<16x32xf32>
    %1139 = arith.addf %1136, %1138 : vector<16x32xf32>
    %1140 = vector.extract_strided_slice %1132 {offsets = [0, 30], sizes = [16, 1], strides = [1, 1]} : vector<16x32xf32> to vector<16x1xf32>
    %cst_701 = arith.constant 0.000000e+00 : f32
    %1141 = vector.broadcast %cst_701 : f32 to vector<16x1xf32>
    %1142 = arith.maximumf %1140, %1141 : vector<16x1xf32>
    %1143 = vector.extract_strided_slice %1113 {offsets = [0, 30], sizes = [16, 1], strides = [1, 1]} : vector<16x32xf32> to vector<16x1xf32>
    %1144 = arith.mulf %1142, %1142 : vector<16x1xf32>
    %1145 = arith.addf %1143, %1144 : vector<16x1xf32>
    %1146 = arith.truncf %1145 : vector<16x1xf32> to vector<16x1xbf16>
    %c0_702 = arith.constant 0 : index
    %c30 = arith.constant 30 : index
    %1147 = vector.load %arg9[%c0_702, %c30] : memref<32x32xbf16, #tpu.memory_space<vmem>>, vector<16x1xbf16>
    tpu.vector_store %arg9[%c0_702, %c30], %1146 {strides = array<i32>} : memref<32x32xbf16, #tpu.memory_space<vmem>>, vector<16x1xbf16>,
    %cst_703 = arith.constant 0.000000e+00 : f32
    %1148 = vector.broadcast %cst_703 : f32 to vector<16x32xf32>
    %1149 = arith.maximumf %1132, %1148 : vector<16x32xf32>
    %1150 = arith.mulf %1149, %1149 : vector<16x32xf32>
    %1151 = arith.addf %1113, %1150 : vector<16x32xf32>
    %1152 = vector.extract_strided_slice %1139 {offsets = [0, 30], sizes = [16, 1], strides = [1, 1]} : vector<16x32xf32> to vector<16x1xf32>
    %cst_704 = arith.constant 0.000000e+00 : f32
    %1153 = vector.broadcast %cst_704 : f32 to vector<16x1xf32>
    %1154 = arith.maximumf %1152, %1153 : vector<16x1xf32>
    %1155 = vector.extract_strided_slice %1125 {offsets = [0, 30], sizes = [16, 1], strides = [1, 1]} : vector<16x32xf32> to vector<16x1xf32>
    %1156 = arith.mulf %1154, %1154 : vector<16x1xf32>
    %1157 = arith.addf %1155, %1156 : vector<16x1xf32>
    %1158 = arith.truncf %1157 : vector<16x1xf32> to vector<16x1xbf16>
    %c16_705 = arith.constant 16 : index
    %c30_706 = arith.constant 30 : index
    %1159 = vector.load %arg9[%c16_705, %c30_706] : memref<32x32xbf16, #tpu.memory_space<vmem>>, vector<16x1xbf16>
    tpu.vector_store %arg9[%c16_705, %c30_706], %1158 {strides = array<i32>} : memref<32x32xbf16, #tpu.memory_space<vmem>>, vector<16x1xbf16>,
    %cst_707 = arith.constant 0.000000e+00 : f32
    %1160 = vector.broadcast %cst_707 : f32 to vector<16x32xf32>
    %1161 = arith.maximumf %1139, %1160 : vector<16x32xf32>
    %1162 = arith.mulf %1161, %1161 : vector<16x32xf32>
    %1163 = arith.addf %1125, %1162 : vector<16x32xf32>
    %c0_708 = arith.constant 0 : index
    %c0_709 = arith.constant 0 : index
    %1164 = vector.load %arg9[%c0_708, %c0_709] : memref<32x32xbf16, #tpu.memory_space<vmem>>, vector<16x32xbf16>
    %c30_710 = arith.constant 30 : index
    %c0_711 = arith.constant 0 : index
    %c0_712 = arith.constant 0 : index
    %1165 = vector.load %arg4[%c30_710, %c0_711, %c0_712] : memref<31x32x32xbf16, #tpu.memory_space<vmem>>, vector<1x32x32xbf16>
    %1166 = vector.shape_cast %1165 : vector<1x32x32xbf16> to vector<32x32xbf16>
    %cst_713 = arith.constant dense<0.000000e+00> : vector<16x32xf32>
    %1167 = tpu.matmul %1164, %1166, %cst_713 {dimension_numbers = #tpu.dot_dimension_numbers<[1], [0], [0], [1], [0, 0, 1, 1], [], []>} : vector<16x32xbf16>, vector<32x32xbf16>, vector<16x32xf32> -> vector<16x32xf32>
    %c30_714 = arith.constant 30 : index
    %c0_715 = arith.constant 0 : index
    %1168 = vector.load %arg5[%c30_714, %c0_715] : memref<31x32xf32, #tpu.memory_space<vmem>>, vector<1x32xf32>
    %1169 = vector.broadcast %1168 : vector<1x32xf32> to vector<16x32xf32>
    %1170 = arith.addf %1167, %1169 : vector<16x32xf32>
    %c16_716 = arith.constant 16 : index
    %c0_717 = arith.constant 0 : index
    %1171 = vector.load %arg9[%c16_716, %c0_717] : memref<32x32xbf16, #tpu.memory_space<vmem>>, vector<16x32xbf16>
    %c30_718 = arith.constant 30 : index
    %c0_719 = arith.constant 0 : index
    %c0_720 = arith.constant 0 : index
    %1172 = vector.load %arg4[%c30_718, %c0_719, %c0_720] : memref<31x32x32xbf16, #tpu.memory_space<vmem>>, vector<1x32x32xbf16>
    %1173 = vector.shape_cast %1172 : vector<1x32x32xbf16> to vector<32x32xbf16>
    %cst_721 = arith.constant dense<0.000000e+00> : vector<16x32xf32>
    %1174 = tpu.matmul %1171, %1173, %cst_721 {dimension_numbers = #tpu.dot_dimension_numbers<[1], [0], [0], [1], [0, 0, 1, 1], [], []>} : vector<16x32xbf16>, vector<32x32xbf16>, vector<16x32xf32> -> vector<16x32xf32>
    %c30_722 = arith.constant 30 : index
    %c0_723 = arith.constant 0 : index
    %1175 = vector.load %arg5[%c30_722, %c0_723] : memref<31x32xf32, #tpu.memory_space<vmem>>, vector<1x32xf32>
    %1176 = vector.broadcast %1175 : vector<1x32xf32> to vector<16x32xf32>
    %1177 = arith.addf %1174, %1176 : vector<16x32xf32>
    %1178 = vector.extract_strided_slice %1170 {offsets = [0, 31], sizes = [16, 1], strides = [1, 1]} : vector<16x32xf32> to vector<16x1xf32>
    %cst_724 = arith.constant 0.000000e+00 : f32
    %1179 = vector.broadcast %cst_724 : f32 to vector<16x1xf32>
    %1180 = arith.maximumf %1178, %1179 : vector<16x1xf32>
    %1181 = vector.extract_strided_slice %1151 {offsets = [0, 31], sizes = [16, 1], strides = [1, 1]} : vector<16x32xf32> to vector<16x1xf32>
    %1182 = arith.mulf %1180, %1180 : vector<16x1xf32>
    %1183 = arith.addf %1181, %1182 : vector<16x1xf32>
    %1184 = arith.truncf %1183 : vector<16x1xf32> to vector<16x1xbf16>
    %c0_725 = arith.constant 0 : index
    %c31 = arith.constant 31 : index
    %1185 = vector.load %arg9[%c0_725, %c31] : memref<32x32xbf16, #tpu.memory_space<vmem>>, vector<16x1xbf16>
    tpu.vector_store %arg9[%c0_725, %c31], %1184 {strides = array<i32>} : memref<32x32xbf16, #tpu.memory_space<vmem>>, vector<16x1xbf16>,
    %cst_726 = arith.constant 0.000000e+00 : f32
    %1186 = vector.broadcast %cst_726 : f32 to vector<16x32xf32>
    %1187 = arith.maximumf %1170, %1186 : vector<16x32xf32>
    %1188 = arith.mulf %1187, %1187 : vector<16x32xf32>
    %1189 = arith.addf %1151, %1188 : vector<16x32xf32>
    %1190 = vector.extract_strided_slice %1177 {offsets = [0, 31], sizes = [16, 1], strides = [1, 1]} : vector<16x32xf32> to vector<16x1xf32>
    %cst_727 = arith.constant 0.000000e+00 : f32
    %1191 = vector.broadcast %cst_727 : f32 to vector<16x1xf32>
    %1192 = arith.maximumf %1190, %1191 : vector<16x1xf32>
    %1193 = vector.extract_strided_slice %1163 {offsets = [0, 31], sizes = [16, 1], strides = [1, 1]} : vector<16x32xf32> to vector<16x1xf32>
    %1194 = arith.mulf %1192, %1192 : vector<16x1xf32>
    %1195 = arith.addf %1193, %1194 : vector<16x1xf32>
    %1196 = arith.truncf %1195 : vector<16x1xf32> to vector<16x1xbf16>
    %c16_728 = arith.constant 16 : index
    %c31_729 = arith.constant 31 : index
    %1197 = vector.load %arg9[%c16_728, %c31_729] : memref<32x32xbf16, #tpu.memory_space<vmem>>, vector<16x1xbf16>
    tpu.vector_store %arg9[%c16_728, %c31_729], %1196 {strides = array<i32>} : memref<32x32xbf16, #tpu.memory_space<vmem>>, vector<16x1xbf16>,
    %cst_730 = arith.constant 0.000000e+00 : f32
    %1198 = vector.broadcast %cst_730 : f32 to vector<16x32xf32>
    %1199 = arith.maximumf %1177, %1198 : vector<16x32xf32>
    %1200 = arith.mulf %1199, %1199 : vector<16x32xf32>
    %1201 = arith.addf %1163, %1200 : vector<16x32xf32>
    %1202 = arith.truncf %1189 : vector<16x32xf32> to vector<16x32xbf16>
    %c0_731 = arith.constant 0 : index
    %c0_732 = arith.constant 0 : index
    %1203 = vector.load %arg6[%c0_731, %c0_732] : memref<32x128xbf16, #tpu.memory_space<vmem>>, vector<32x128xbf16>
    %cst_733 = arith.constant dense<0.000000e+00> : vector<16x128xf32>
    %1204 = tpu.matmul %1202, %1203, %cst_733 {dimension_numbers = #tpu.dot_dimension_numbers<[1], [0], [0], [1], [0, 0, 1, 1], [], []>} : vector<16x32xbf16>, vector<32x128xbf16>, vector<16x128xf32> -> vector<16x128xf32>
    %c0_734 = arith.constant 0 : index
    %c0_735 = arith.constant 0 : index
    %1205 = vector.load %arg7[%c0_734, %c0_735] : memref<1x128xf32, #tpu.memory_space<vmem>>, vector<1x128xf32>
    %1206 = vector.broadcast %1205 : vector<1x128xf32> to vector<16x128xf32>
    %1207 = arith.addf %1204, %1206 : vector<16x128xf32>
    %c0_736 = arith.constant 0 : index
    %c0_737 = arith.constant 0 : index
    %1208 = vector.load %arg8[%c0_736, %c0_737] : memref<32x128xf32, #tpu.memory_space<vmem>>, vector<16x128xf32>
    tpu.vector_store %arg8[%c0_736, %c0_737], %1207 {strides = array<i32>} : memref<32x128xf32, #tpu.memory_space<vmem>>, vector<16x128xf32>,
    %1209 = arith.truncf %1201 : vector<16x32xf32> to vector<16x32xbf16>
    %c0_738 = arith.constant 0 : index
    %c0_739 = arith.constant 0 : index
    %1210 = vector.load %arg6[%c0_738, %c0_739] : memref<32x128xbf16, #tpu.memory_space<vmem>>, vector<32x128xbf16>
    %cst_740 = arith.constant dense<0.000000e+00> : vector<16x128xf32>
    %1211 = tpu.matmul %1209, %1210, %cst_740 {dimension_numbers = #tpu.dot_dimension_numbers<[1], [0], [0], [1], [0, 0, 1, 1], [], []>} : vector<16x32xbf16>, vector<32x128xbf16>, vector<16x128xf32> -> vector<16x128xf32>
    %c0_741 = arith.constant 0 : index
    %c0_742 = arith.constant 0 : index
    %1212 = vector.load %arg7[%c0_741, %c0_742] : memref<1x128xf32, #tpu.memory_space<vmem>>, vector<1x128xf32>
    %1213 = vector.broadcast %1212 : vector<1x128xf32> to vector<16x128xf32>
    %1214 = arith.addf %1211, %1213 : vector<16x128xf32>
    %c16_743 = arith.constant 16 : index
    %c0_744 = arith.constant 0 : index
    %1215 = vector.load %arg8[%c16_743, %c0_744] : memref<32x128xf32, #tpu.memory_space<vmem>>, vector<16x128xf32>
    tpu.vector_store %arg8[%c16_743, %c0_744], %1214 {strides = array<i32>} : memref<32x128xf32, #tpu.memory_space<vmem>>, vector<16x128xf32>,
    return
  }
  func.func @transform_0(%arg0: i32) -> (i32, i32) {
    %c0_i32 = arith.constant 0 : i32
    %c0_i32_0 = arith.constant 0 : i32
    return %arg0, %c0_i32 : i32, i32
  }
  func.func @transform_1(%arg0: i32) -> (i32, i32) {
    %c0_i32 = arith.constant 0 : i32
    %c0_i32_0 = arith.constant 0 : i32
    %c0_i32_1 = arith.constant 0 : i32
    return %c0_i32, %c0_i32_0 : i32, i32
  }
  func.func @transform_2(%arg0: i32) -> (i32, i32) {
    %c0_i32 = arith.constant 0 : i32
    %c0_i32_0 = arith.constant 0 : i32
    %c0_i32_1 = arith.constant 0 : i32
    return %c0_i32, %c0_i32_0 : i32, i32
  }
  func.func @transform_3(%arg0: i32) -> (i32, i32, i32) {
    %c0_i32 = arith.constant 0 : i32
    %c0_i32_0 = arith.constant 0 : i32
    %c0_i32_1 = arith.constant 0 : i32
    %c0_i32_2 = arith.constant 0 : i32
    return %c0_i32, %c0_i32_0, %c0_i32_1 : i32, i32, i32
  }
  func.func @transform_4(%arg0: i32) -> (i32, i32) {
    %c0_i32 = arith.constant 0 : i32
    %c0_i32_0 = arith.constant 0 : i32
    %c0_i32_1 = arith.constant 0 : i32
    return %c0_i32, %c0_i32_0 : i32, i32
  }
  func.func @transform_5(%arg0: i32) -> (i32, i32) {
    %c0_i32 = arith.constant 0 : i32
    %c0_i32_0 = arith.constant 0 : i32
    %c0_i32_1 = arith.constant 0 : i32
    return %c0_i32, %c0_i32_0 : i32, i32
  }
  func.func @transform_6(%arg0: i32) -> (i32, i32) {
    %c0_i32 = arith.constant 0 : i32
    %c0_i32_0 = arith.constant 0 : i32
    %c0_i32_1 = arith.constant 0 : i32
    return %c0_i32, %c0_i32_0 : i32, i32
  }
  func.func @transform_7(%arg0: i32) -> (i32, i32) {
    %c0_i32 = arith.constant 0 : i32
    %c0_i32_0 = arith.constant 0 : i32
    return %arg0, %c0_i32 : i32, i32
  }
}

</mosaic_0001>

<bundles_post_ra>
// kernel: _lambda_.1
= control target key start
LH: loop header
LB: loop body
LE: loop exit
PB: predicated region body
PF: predicated region fallthrough
CT: control target
= control target key end

     0   :  { %12 = vsyncpa [#allocation4], 0  ;;  %s5718_s24 = smov 0   ;;  %s6229_s0 = inlined_call_operand.vmem [shape: f32[64,16], index: 0, kind: input, shape index: {}]   ;;  %s6230_s1 = inlined_call_operand.vmem [shape: bf16[16,32], index: 1, kind: input, shape index: {}]   ;;  %s6231_s2 = inlined_call_operand.vmem [shape: f32[1,32], index: 2, kind: input, shape index: {}]   ;;  %s6232_s3 = inlined_call_operand.hbm [shape: bf16[31,32,32], index: 3, kind: input, shape index: {}]   ;;  %s6233_s4 = inlined_call_operand.vmem [shape: f32[31,32], index: 4, kind: input, shape index: {}]   ;;  %s6234_s5 = inlined_call_operand.vmem [shape: bf16[32,128], index: 5, kind: input, shape index: {}]   ;;  %s6235_s6 = inlined_call_operand.vmem [shape: f32[1,128], index: 6, kind: input, shape index: {}]   ;;  %s6236_s7 = inlined_call_operand.vmem [shape: f32[64,128], index: 7, kind: output, shape index: {}]  }
   0x1 LB: > { %s4640_s25 = sadd.s32 4294967295, %s5671_s24   ;;  %p4642_p0 = scmp.ge.s32.totalorder %s5671_s24, 1  ;;  %s5671_s24 = sphi %s5718_s24, %s18_s24  }
   0x2   : > { %p201_p1 = scmp.lt.s32.totalorder %s5671_s24, 3  ;;  %s5673_s26 = smov [#allocation3]  }
   0x3   : > { %s219_s27 = sshll.u32 %s5673_s26, 4  ;;  %p5732_p3 = scmp.eq.s32.totalorder %s4640_s25, 0  ;;  %s220_s27 = int_to_ptr.vmem [resolvable:$true] %s219_s27 }
   0x4   : > { %p5726_p2 = pnand %p4642_p0, %p201_p1  ;;  %s5633_s10 = scalar_lea.hbm %s6232_s3, 7936 }
   0x5   : > { %s6241_s29 = scalar_select %p5732_p3, 1, 0 }
   0x6   : > { %s6240_s28 = scalar_select %p5726_p2, 1, 0 }
   0x7   : > { %p5546_p4 = pneg %p5726_p2  ;;  %p5634_p6 = scmp.ne.s32.totalorder %s6232_s3, %s5633_s10 }
   0x8   : > { %p5640_p10 = scmp.lt.u32.totalorder %s5633_s10, %s6232_s3 }
   0x9   : > { %p5740_p5 = pnand %p5732_p3, %p5546_p4 }
   0xb   : > { %p5635_p7 = pneg %p5740_p5 }
   0xd   : > { %p5636_p8 = pnand %p5635_p7, %p5634_p6 }
   0xf   : > { %p5637_p9 = pneg %p5636_p8 }
  0x11   : > { %p5642_p11 = pnand %p5640_p10, %p5637_p9 }
  0x13   : > { %5645 = shalt.err (!%p5642_p11)
}
  0x14   : > { %s5646_s15 = scalar_lea.vmem %s220_s27, 7936  ;;  %p5654_p1 = scmp.lt.s32.totalorder %s220_s27, %s220_s27 }
  0x15   : > { %p5647_p12 = scmp.ne.s32.totalorder %s220_s27, %s5646_s15  ;;  %p5655_p4 = scmp.lt.s32.totalorder %s5646_s15, %s5646_s15 }
  0x17   : > { %p5649_p13 = pnand %p5647_p12, %p5635_p7  ;;  %p5656_p3 = por %p5655_p4, %p5654_p1 }
  0x19   : > { %p5650_p0 = pneg %p5649_p13 }
  0x1b   : > { %p5657_p2 = pnand %p5656_p3, %p5650_p0 }
  0x1d   : > { %5660 = shalt.err (!%p5657_p2)
}
  0x1e   : > { %s5674_s16 = smov 64   ;;  %s5675_s17 = smov 4  }
  0x1f   : > { %5549 = dma.hbm_to_vmem [thread:$0]  (!%p5740_p5), %s6232_s3, 7936, %s220_s27, [#allocation4], %s5674_s16, %s5674_s16, %s5675_s17  }
  0x20   : > { %p6243_p6 = scmp.ne.s32.totalorder %s6240_s28, 0 }
  0x21   : > { %p6244_p8 = scmp.ne.s32.totalorder (!%p6243_p6), %s6241_s29, 0 }
  0x22   : > { %253 = sbr.rel (%p6243_p6) target bundleno = 7683 (0x1e03), region = 48 }
  0x29   : > { %5666 = dma.done.wait (%p6244_p8), [#allocation4], 7936  }
  0x2a   : > { %5668 = vsyncadd (%p6244_p8), [#allocation4], 4294959360  ;;  %s4647_s20 = sshll.u32 %s4640_s25, 2  ;;  %v5676_v0 = vmov 0.0   ;;  %vm5677_vm0 = vmmov 0   ;;  %v5565_v1 = vld [vmem:[%s6230_s1] sm:$0xff]  }
  0x2b   : > { %5018 = vmatprep.subr.bf16.mxu0 %v5676_v0  ;;  %5024 = vmatprep.subr.bf16.mxu1 %v5676_v0  ;;  %p286_p2 = scmp.lt.s32.totalorder %s4647_s20, 7  ;;  %v5566_v2 = vld [vmem:[%s6230_s1] sm:$0xff]   ;;  %vm316_vm1 = vcmask 130048   ;;  %v5567_v9 = vld [vmem:[#allocation3] sm:$0xff]   ;;  %v5568_v10 = vld [vmem:[#allocation3 + $0x8] sm:$0xff]   ;;  %vm366_vm2 = vcmask 261120  }
  0x2c   : > { %5020 = vmatprep.mubr.msk.bf16.mxu0 %vm5677_vm0, %v5676_v0  ;;  %5026 = vmatprep.mubr.msk.bf16.mxu1 %vm5677_vm0, %v5676_v0  ;;  %v4651_v11 = vld [vmem:[%s6231_s2] ss:$0 sm:$0xff]  ;;  %v5570_v37 = vld [vmem:[#allocation3 + $0x18] sm:$0xff]   ;;  %vm554_vm3 = vcmask 15368   ;;  %vm683_vm4 = vcmask 23568   ;;  %vm812_vm5 = vcmask 31768  }
  0x2d   : > { %s6246_s20 = smov (!%p286_p2, %s4647_s20), 7  ;;  %5019 = vmatpush3.bf16.msra.mxu0 %v5565_v1  ;;  %5025 = vmatpush3.bf16.msra.mxu1 %v5566_v2  ;;  %v5569_v36 = vld [vmem:[#allocation3 + $0x10] sm:$0xff]   ;;  %vm941_vm6 = vcmask 39968   ;;  %vm1070_vm7 = vcmask 48168   ;;  %vm1199_vm8 = vcmask 56368   ;;  %vm1328_vm9 = vcmask 64568  }
  0x2e   : > { %s4648_s21 = sshll.u32 %s6246_s20, 3  ;;  %5030 = vmatprep.subr.bf16.mxu0 %v5676_v0  ;;  %5038 = vmatprep.subr.bf16.mxu1 %v5676_v0  ;;  %v4657_v38 = vld [vmem:[%s6233_s4] ss:$0 sm:$0xff]  ;;  %vm1457_vm10 = vcmask 72768   ;;  %vm1586_vm11 = vcmask 80968   ;;  %vm1715_vm12 = vcmask 89168  }
  0x2f   : > { %s289_s25 = scalar_lea.vmem %s6229_s0, %s4648_s21  ;;  %vm1844_vm13 = vcmask 97368   ;;  %vm1973_vm14 = vcmask 105568   ;;  %vm2102_vm15 = vcmask 113768   ;;  %s295_s26 = scalar_lea.vmem %s6236_s7, %s4648_s21 }
  0x30   : > { %v298_v3 = vld [vmem:[%s289_s25] sm:$0xff]  ;;  %v299_v4 = vld [vmem:[%s289_s25 + $0x8] sm:$0xff]  ;;  %v368_v5 = vld [vmem:[%s289_s25 + $0x10] sm:$0xff] }
  0x31   : > { %v300_v6 = vpack.c.bf16 %v299_v4, %v298_v3  ;;  %v369_v7 = vld [vmem:[%s289_s25 + $0x18] sm:$0xff]  ;;  %v5571_v4 = vld [vmem:[#allocation3 + $0x20] sm:$0xff]  }
  0x32   : > { %v370_v8 = vpack.c.bf16 %v369_v7, %v368_v5  ;;  %v5572_v5 = vld [vmem:[#allocation3 + $0x28] sm:$0xff]  }
  0x33   : > { %5021 = vmatmul.mubr.msk.bf16.vlgmr.msra.gmra.mrb[0].mxu0 %vm316_vm1, %v300_v6  ;;  %v4662_v6 = vld [vmem:[%s6233_s4 + $0x1] ss:$0 sm:$0xff] }
  0x34   : > { %5027 = vmatmul.mubr.msk.bf16.vlgmr.msra.gmra.mrb[0].mxu1 %vm316_vm1, %v370_v8  ;;  %5034 = vmatprep.mubr.msk.bf16.mxu0 %vm5677_vm0, %v5676_v0  ;;  %vm2231_vm1 = vcmask 121968  }
  0x35   : > { %5042 = vmatprep.mubr.msk.bf16.mxu1 %vm5677_vm0, %v5676_v0  ;;  %5031 = vmatpush3.bf16.msra.mxu0 %v5567_v9 }
  0x36   : > { %5039 = vmatpush3.bf16.msra.mxu1 %v5567_v9  ;;  %5032 = vmatprep.subr.bf16.mxu0 %v5676_v0 }
  0x37   : > { %5040 = vmatprep.subr.bf16.mxu1 %v5676_v0 }
  0x39   : > { %5033 = vmatpush3.bf16.msra.mxu0 %v5568_v10 }
  0x3a   : > { %5041 = vmatpush3.bf16.msra.mxu1 %v5568_v10  ;;  %5046 = vmatprep.subr.bf16.mxu0 %v5676_v0 }
  0x3b   : > { %5054 = vmatprep.subr.bf16.mxu1 %v5676_v0 }
 0x106   : > { %v354_v12 = vpop.f32.mrb[0].mxu0 }
 0x107   : > { %v355_v13 = vadd.f32 %v4651_v11, %v354_v12  ;;  %v423_v14 = vpop.f32.mrb[0].mxu1  ;;  %v5022_v15 = vpop.f32.mrb[1].mxu0 }
 0x108   : > { %v424_v16 = vadd.f32 %v4651_v11, %v423_v14  ;;  %v5028_v17 = vpop.f32.mrb[1].mxu1  ;;  %v357_v18 = vpop.f32.mrb[2].mxu0 }
 0x109   : > { %v361_v19 = vmax.f32 %v355_v13, 0.0  ;;  %v358_v20 = vadd.f32 %v4651_v11, %v357_v18  ;;  %v426_v21 = vpop.f32.mrb[2].mxu1  ;;  %v5023_v22 = vpop.f32.mrb[3].mxu0 }
 0x10a   : > { %v430_v23 = vmax.f32 %v424_v16, 0.0  ;;  %v427_v24 = vadd.f32 %v4651_v11, %v426_v21  ;;  %v5029_v25 = vpop.f32.mrb[3].mxu1 }
 0x10b   : > { %v362_v26 = vmax.f32 %v358_v20, 0.0  ;;  %v363_v29 = vmul.f32 %v361_v19, %v361_v19 }
 0x10c   : > { %v432_v27 = vmul.f32 %v430_v23, %v430_v23  ;;  %v431_v28 = vmax.f32 %v427_v24, 0.0 }
 0x10d   : > { %v364_v30 = vmul.f32 %v362_v26, %v362_v26 }
 0x10e   : > { %v433_v31 = vmul.f32 %v431_v28, %v431_v28 }
 0x10f   : > { %v365_v32 = vpack.c.bf16 %v364_v30, %v363_v29 }
 0x110   : > { %v434_v33 = vpack.c.bf16 %v433_v31, %v432_v27 }
 0x111   : > { %367 = vst.msk [vmem:[#allocation2] sm:$0xff] %vm366_vm2, %v365_v32 }
 0x112   : > { %435 = vst.msk [vmem:[#allocation2 + $0x8] sm:$0xff] %vm366_vm2, %v434_v33 }
 0x118   : > { %v436_v34 = vld [vmem:[#allocation2] sm:$0xff] }
 0x119   : > { %5035 = vmatmul.mubr.msk.bf16.vlgmr.msra.gmra.mrb[4].mxu0 %vm366_vm2, %v436_v34  ;;  %v502_v35 = vld [vmem:[#allocation2 + $0x8] sm:$0xff] }
 0x11a   : > { %5043 = vmatmul.mubr.msk.bf16.vlgmr.msra.gmra.mrb[4].mxu1 %vm366_vm2, %v502_v35  ;;  %5050 = vmatprep.mubr.msk.bf16.mxu0 %vm5677_vm0, %v5676_v0  ;;  %v5573_v35 = vld [vmem:[#allocation3 + $0x30] sm:$0xff]  }
 0x11b   : > { %5058 = vmatprep.mubr.msk.bf16.mxu1 %vm5677_vm0, %v5676_v0  ;;  %5047 = vmatpush3.bf16.msra.mxu0 %v5569_v36 }
 0x11c   : > { %5055 = vmatpush3.bf16.msra.mxu1 %v5569_v36  ;;  %5048 = vmatprep.subr.bf16.mxu0 %v5676_v0  ;;  %v5574_v36 = vld [vmem:[#allocation3 + $0x38] sm:$0xff]  }
 0x11d   : > { %5056 = vmatprep.subr.bf16.mxu1 %v5676_v0 }
 0x11f   : > { %5049 = vmatpush3.bf16.msra.mxu0 %v5570_v37 }
 0x120   : > { %5057 = vmatpush3.bf16.msra.mxu1 %v5570_v37  ;;  %5062 = vmatprep.subr.bf16.mxu0 %v5676_v0  ;;  %v4667_v37 = vld [vmem:[%s6233_s4 + $0x2] ss:$0 sm:$0xff] }
 0x121   : > { %5070 = vmatprep.subr.bf16.mxu1 %v5676_v0 }
 0x1ec   : > { %v495_v39 = vpop.f32.mrb[4].mxu0 }
 0x1ed   : > { %v496_v40 = vadd.f32 %v4657_v38, %v495_v39  ;;  %v540_v41 = vpop.f32.mrb[4].mxu1  ;;  %v5036_v42 = vpop.f32.mrb[5].mxu0 }
 0x1ee   : > { %v541_v43 = vadd.f32 %v4657_v38, %v540_v41  ;;  %v5044_v44 = vpop.f32.mrb[5].mxu1  ;;  %v498_v45 = vpop.f32.mrb[6].mxu0 }
 0x1ef   : > { %v547_v46 = vmax.f32 %v496_v40, 0.0  ;;  %v499_v47 = vadd.f32 %v4657_v38, %v498_v45  ;;  %v543_v48 = vpop.f32.mrb[6].mxu1  ;;  %v5037_v49 = vpop.f32.mrb[7].mxu0 }
 0x1f0   : > { %v556_v50 = vmax.f32 %v541_v43, 0.0  ;;  %v544_v51 = vadd.f32 %v4657_v38, %v543_v48  ;;  %v5045_v52 = vpop.f32.mrb[7].mxu1 }
 0x1f1   : > { %v549_v53 = vmul.f32 %v547_v46, %v547_v46  ;;  %v548_v54 = vmax.f32 %v499_v47, 0.0 }
 0x1f2   : > { %v558_v55 = vmul.f32 %v556_v50, %v556_v50  ;;  %v557_v56 = vmax.f32 %v544_v51, 0.0 }
 0x1f3   : > { %v550_v57 = vmul.f32 %v548_v54, %v548_v54  ;;  %v551_v59 = vadd.f32 %v549_v53, %v363_v29 }
 0x1f4   : > { %v559_v58 = vmul.f32 %v557_v56, %v557_v56  ;;  %v560_v61 = vadd.f32 %v558_v55, %v432_v27 }
 0x1f5   : > { %v552_v60 = vadd.f32 %v550_v57, %v364_v30 }
 0x1f6   : > { %v561_v62 = vadd.f32 %v559_v58, %v433_v31 }
 0x1f7   : > { %v553_v63 = vpack.c.bf16 %v552_v60, %v551_v59 }
 0x1f8   : > { %v562_v1 = vpack.c.bf16 %v561_v62, %v560_v61 }
 0x1f9   : > { %555 = vst.msk [vmem:[#allocation2] sm:$0xff] %vm554_vm3, %v553_v63 }
 0x1fa   : > { %563 = vst.msk [vmem:[#allocation2 + $0x8] sm:$0xff] %vm554_vm3, %v562_v1  ;;  %vm2360_vm3 = vcmask 130168  }
 0x200   : > { %v564_v2 = vld [vmem:[#allocation2] sm:$0xff] }
 0x201   : > { %5051 = vmatmul.mubr.msk.bf16.vlgmr.msra.gmra.mrb[8].mxu0 %vm366_vm2, %v564_v2  ;;  %v631_v3 = vld [vmem:[#allocation2 + $0x8] sm:$0xff] }
 0x202   : > { %5059 = vmatmul.mubr.msk.bf16.vlgmr.msra.gmra.mrb[8].mxu1 %vm366_vm2, %v631_v3  ;;  %5066 = vmatprep.mubr.msk.bf16.mxu0 %vm5677_vm0, %v5676_v0  ;;  %v5575_v3 = vld [vmem:[#allocation3 + $0x40] sm:$0xff]  }
 0x203   : > { %5074 = vmatprep.mubr.msk.bf16.mxu1 %vm5677_vm0, %v5676_v0  ;;  %5063 = vmatpush3.bf16.msra.mxu0 %v5571_v4 }
 0x204   : > { %5071 = vmatpush3.bf16.msra.mxu1 %v5571_v4  ;;  %5064 = vmatprep.subr.bf16.mxu0 %v5676_v0  ;;  %v5576_v4 = vld [vmem:[#allocation3 + $0x48] sm:$0xff]  }
 0x205   : > { %5072 = vmatprep.subr.bf16.mxu1 %v5676_v0 }
 0x207   : > { %5065 = vmatpush3.bf16.msra.mxu0 %v5572_v5 }
 0x208   : > { %5073 = vmatpush3.bf16.msra.mxu1 %v5572_v5  ;;  %5078 = vmatprep.subr.bf16.mxu0 %v5676_v0  ;;  %v4672_v5 = vld [vmem:[%s6233_s4 + $0x3] ss:$0 sm:$0xff] }
 0x209   : > { %5086 = vmatprep.subr.bf16.mxu1 %v5676_v0 }
 0x2d4   : > { %v624_v7 = vpop.f32.mrb[8].mxu0 }
 0x2d5   : > { %v625_v8 = vadd.f32 %v4662_v6, %v624_v7  ;;  %v669_v9 = vpop.f32.mrb[8].mxu1  ;;  %v5052_v10 = vpop.f32.mrb[9].mxu0 }
 0x2d6   : > { %v670_v11 = vadd.f32 %v4662_v6, %v669_v9  ;;  %v5060_v12 = vpop.f32.mrb[9].mxu1  ;;  %v627_v13 = vpop.f32.mrb[10].mxu0 }
 0x2d7   : > { %v676_v14 = vmax.f32 %v625_v8, 0.0  ;;  %v628_v15 = vadd.f32 %v4662_v6, %v627_v13  ;;  %v672_v16 = vpop.f32.mrb[10].mxu1  ;;  %v5053_v17 = vpop.f32.mrb[11].mxu0 }
 0x2d8   : > { %v685_v18 = vmax.f32 %v670_v11, 0.0  ;;  %v673_v19 = vadd.f32 %v4662_v6, %v672_v16  ;;  %v5061_v20 = vpop.f32.mrb[11].mxu1 }
 0x2d9   : > { %v678_v21 = vmul.f32 %v676_v14, %v676_v14  ;;  %v677_v22 = vmax.f32 %v628_v15, 0.0 }
 0x2da   : > { %v687_v23 = vmul.f32 %v685_v18, %v685_v18  ;;  %v686_v24 = vmax.f32 %v673_v19, 0.0 }
 0x2db   : > { %v679_v25 = vmul.f32 %v677_v22, %v677_v22  ;;  %v680_v27 = vadd.f32 %v678_v21, %v551_v59 }
 0x2dc   : > { %v688_v26 = vmul.f32 %v686_v24, %v686_v24  ;;  %v689_v29 = vadd.f32 %v687_v23, %v560_v61 }
 0x2dd   : > { %v681_v28 = vadd.f32 %v679_v25, %v552_v60 }
 0x2de   : > { %v690_v30 = vadd.f32 %v688_v26, %v561_v62 }
 0x2df   : > { %v682_v31 = vpack.c.bf16 %v681_v28, %v680_v27 }
 0x2e0   : > { %v691_v32 = vpack.c.bf16 %v690_v30, %v689_v29 }
 0x2e1   : > { %684 = vst.msk [vmem:[#allocation2] sm:$0xff] %vm683_vm4, %v682_v31 }
 0x2e2   : > { %692 = vst.msk [vmem:[#allocation2 + $0x8] sm:$0xff] %vm683_vm4, %v691_v32  ;;  %vm2489_vm4 = vcmask 138368  }
 0x2e8   : > { %v693_v33 = vld [vmem:[#allocation2] sm:$0xff] }
 0x2e9   : > { %5067 = vmatmul.mubr.msk.bf16.vlgmr.msra.gmra.mrb[12].mxu0 %vm366_vm2, %v693_v33  ;;  %v760_v34 = vld [vmem:[#allocation2 + $0x8] sm:$0xff] }
 0x2ea   : > { %5075 = vmatmul.mubr.msk.bf16.vlgmr.msra.gmra.mrb[12].mxu1 %vm366_vm2, %v760_v34  ;;  %5082 = vmatprep.mubr.msk.bf16.mxu0 %vm5677_vm0, %v5676_v0  ;;  %v5577_v34 = vld [vmem:[#allocation3 + $0x50] sm:$0xff]  }
 0x2eb   : > { %5090 = vmatprep.mubr.msk.bf16.mxu1 %vm5677_vm0, %v5676_v0  ;;  %5079 = vmatpush3.bf16.msra.mxu0 %v5573_v35 }
 0x2ec   : > { %5087 = vmatpush3.bf16.msra.mxu1 %v5573_v35  ;;  %5080 = vmatprep.subr.bf16.mxu0 %v5676_v0  ;;  %v5578_v35 = vld [vmem:[#allocation3 + $0x58] sm:$0xff]  }
 0x2ed   : > { %5088 = vmatprep.subr.bf16.mxu1 %v5676_v0 }
 0x2ef   : > { %5081 = vmatpush3.bf16.msra.mxu0 %v5574_v36 }
 0x2f0   : > { %5089 = vmatpush3.bf16.msra.mxu1 %v5574_v36  ;;  %5094 = vmatprep.subr.bf16.mxu0 %v5676_v0  ;;  %v4677_v36 = vld [vmem:[%s6233_s4 + $0x4] ss:$0 sm:$0xff] }
 0x2f1   : > { %5102 = vmatprep.subr.bf16.mxu1 %v5676_v0 }
 0x3bc   : > { %v753_v38 = vpop.f32.mrb[12].mxu0 }
 0x3bd   : > { %v754_v39 = vadd.f32 %v4667_v37, %v753_v38  ;;  %v798_v40 = vpop.f32.mrb[12].mxu1  ;;  %v5068_v41 = vpop.f32.mrb[13].mxu0 }
 0x3be   : > { %v799_v42 = vadd.f32 %v4667_v37, %v798_v40  ;;  %v5076_v43 = vpop.f32.mrb[13].mxu1  ;;  %v756_v44 = vpop.f32.mrb[14].mxu0 }
 0x3bf   : > { %v805_v45 = vmax.f32 %v754_v39, 0.0  ;;  %v757_v46 = vadd.f32 %v4667_v37, %v756_v44  ;;  %v801_v47 = vpop.f32.mrb[14].mxu1  ;;  %v5069_v48 = vpop.f32.mrb[15].mxu0 }
 0x3c0   : > { %v814_v49 = vmax.f32 %v799_v42, 0.0  ;;  %v802_v50 = vadd.f32 %v4667_v37, %v801_v47  ;;  %v5077_v51 = vpop.f32.mrb[15].mxu1 }
 0x3c1   : > { %v807_v52 = vmul.f32 %v805_v45, %v805_v45  ;;  %v806_v53 = vmax.f32 %v757_v46, 0.0 }
 0x3c2   : > { %v816_v54 = vmul.f32 %v814_v49, %v814_v49  ;;  %v815_v55 = vmax.f32 %v802_v50, 0.0 }
 0x3c3   : > { %v808_v56 = vmul.f32 %v806_v53, %v806_v53  ;;  %v809_v58 = vadd.f32 %v807_v52, %v680_v27 }
 0x3c4   : > { %v817_v57 = vmul.f32 %v815_v55, %v815_v55  ;;  %v818_v60 = vadd.f32 %v816_v54, %v689_v29 }
 0x3c5   : > { %v810_v59 = vadd.f32 %v808_v56, %v681_v28 }
 0x3c6   : > { %v819_v61 = vadd.f32 %v817_v57, %v690_v30 }
 0x3c7   : > { %v811_v62 = vpack.c.bf16 %v810_v59, %v809_v58 }
 0x3c8   : > { %v820_v63 = vpack.c.bf16 %v819_v61, %v818_v60 }
 0x3c9   : > { %813 = vst.msk [vmem:[#allocation2] sm:$0xff] %vm812_vm5, %v811_v62 }
 0x3ca   : > { %821 = vst.msk [vmem:[#allocation2 + $0x8] sm:$0xff] %vm812_vm5, %v820_v63  ;;  %vm2618_vm5 = vcmask 146568  }
 0x3d0   : > { %v822_v1 = vld [vmem:[#allocation2] sm:$0xff] }
 0x3d1   : > { %5083 = vmatmul.mubr.msk.bf16.vlgmr.msra.gmra.mrb[16].mxu0 %vm366_vm2, %v822_v1  ;;  %v889_v2 = vld [vmem:[#allocation2 + $0x8] sm:$0xff] }
 0x3d2   : > { %5091 = vmatmul.mubr.msk.bf16.vlgmr.msra.gmra.mrb[16].mxu1 %vm366_vm2, %v889_v2  ;;  %5098 = vmatprep.mubr.msk.bf16.mxu0 %vm5677_vm0, %v5676_v0  ;;  %v5579_v2 = vld [vmem:[#allocation3 + $0x60] sm:$0xff]  }
 0x3d3   : > { %5106 = vmatprep.mubr.msk.bf16.mxu1 %vm5677_vm0, %v5676_v0  ;;  %5095 = vmatpush3.bf16.msra.mxu0 %v5575_v3 }
 0x3d4   : > { %5103 = vmatpush3.bf16.msra.mxu1 %v5575_v3  ;;  %5096 = vmatprep.subr.bf16.mxu0 %v5676_v0  ;;  %v5580_v3 = vld [vmem:[#allocation3 + $0x68] sm:$0xff]  }
 0x3d5   : > { %5104 = vmatprep.subr.bf16.mxu1 %v5676_v0 }
 0x3d7   : > { %5097 = vmatpush3.bf16.msra.mxu0 %v5576_v4 }
 0x3d8   : > { %5105 = vmatpush3.bf16.msra.mxu1 %v5576_v4  ;;  %5110 = vmatprep.subr.bf16.mxu0 %v5676_v0  ;;  %v4682_v4 = vld [vmem:[%s6233_s4 + $0x5] ss:$0 sm:$0xff] }
 0x3d9   : > { %5118 = vmatprep.subr.bf16.mxu1 %v5676_v0 }
 0x4a4   : > { %v882_v6 = vpop.f32.mrb[16].mxu0 }
 0x4a5   : > { %v883_v7 = vadd.f32 %v4672_v5, %v882_v6  ;;  %v927_v8 = vpop.f32.mrb[16].mxu1  ;;  %v5084_v9 = vpop.f32.mrb[17].mxu0 }
 0x4a6   : > { %v928_v10 = vadd.f32 %v4672_v5, %v927_v8  ;;  %v5092_v11 = vpop.f32.mrb[17].mxu1  ;;  %v885_v12 = vpop.f32.mrb[18].mxu0 }
 0x4a7   : > { %v934_v13 = vmax.f32 %v883_v7, 0.0  ;;  %v886_v14 = vadd.f32 %v4672_v5, %v885_v12  ;;  %v930_v15 = vpop.f32.mrb[18].mxu1  ;;  %v5085_v16 = vpop.f32.mrb[19].mxu0 }
 0x4a8   : > { %v943_v17 = vmax.f32 %v928_v10, 0.0  ;;  %v931_v18 = vadd.f32 %v4672_v5, %v930_v15  ;;  %v5093_v19 = vpop.f32.mrb[19].mxu1 }
 0x4a9   : > { %v936_v20 = vmul.f32 %v934_v13, %v934_v13  ;;  %v935_v21 = vmax.f32 %v886_v14, 0.0 }
 0x4aa   : > { %v945_v22 = vmul.f32 %v943_v17, %v943_v17  ;;  %v944_v23 = vmax.f32 %v931_v18, 0.0 }
 0x4ab   : > { %v937_v24 = vmul.f32 %v935_v21, %v935_v21  ;;  %v938_v26 = vadd.f32 %v936_v20, %v809_v58 }
 0x4ac   : > { %v946_v25 = vmul.f32 %v944_v23, %v944_v23  ;;  %v947_v28 = vadd.f32 %v945_v22, %v818_v60 }
 0x4ad   : > { %v939_v27 = vadd.f32 %v937_v24, %v810_v59 }
 0x4ae   : > { %v948_v29 = vadd.f32 %v946_v25, %v819_v61 }
 0x4af   : > { %v940_v30 = vpack.c.bf16 %v939_v27, %v938_v26 }
 0x4b0   : > { %v949_v31 = vpack.c.bf16 %v948_v29, %v947_v28 }
 0x4b1   : > { %942 = vst.msk [vmem:[#allocation2] sm:$0xff] %vm941_vm6, %v940_v30 }
 0x4b2   : > { %950 = vst.msk [vmem:[#allocation2 + $0x8] sm:$0xff] %vm941_vm6, %v949_v31  ;;  %vm2747_vm6 = vcmask 154768  }
 0x4b8   : > { %v951_v32 = vld [vmem:[#allocation2] sm:$0xff] }
 0x4b9   : > { %5099 = vmatmul.mubr.msk.bf16.vlgmr.msra.gmra.mrb[20].mxu0 %vm366_vm2, %v951_v32  ;;  %v1018_v33 = vld [vmem:[#allocation2 + $0x8] sm:$0xff] }
 0x4ba   : > { %5107 = vmatmul.mubr.msk.bf16.vlgmr.msra.gmra.mrb[20].mxu1 %vm366_vm2, %v1018_v33  ;;  %5114 = vmatprep.mubr.msk.bf16.mxu0 %vm5677_vm0, %v5676_v0  ;;  %v5581_v33 = vld [vmem:[#allocation3 + $0x70] sm:$0xff]  }
 0x4bb   : > { %5122 = vmatprep.mubr.msk.bf16.mxu1 %vm5677_vm0, %v5676_v0  ;;  %5111 = vmatpush3.bf16.msra.mxu0 %v5577_v34 }
 0x4bc   : > { %5119 = vmatpush3.bf16.msra.mxu1 %v5577_v34  ;;  %5112 = vmatprep.subr.bf16.mxu0 %v5676_v0  ;;  %v5582_v34 = vld [vmem:[#allocation3 + $0x78] sm:$0xff]  }
 0x4bd   : > { %5120 = vmatprep.subr.bf16.mxu1 %v5676_v0 }
 0x4bf   : > { %5113 = vmatpush3.bf16.msra.mxu0 %v5578_v35 }
 0x4c0   : > { %5121 = vmatpush3.bf16.msra.mxu1 %v5578_v35  ;;  %5126 = vmatprep.subr.bf16.mxu0 %v5676_v0  ;;  %v4687_v35 = vld [vmem:[%s6233_s4 + $0x6] ss:$0 sm:$0xff] }
 0x4c1   : > { %5134 = vmatprep.subr.bf16.mxu1 %v5676_v0 }
 0x58c   : > { %v1011_v37 = vpop.f32.mrb[20].mxu0 }
 0x58d   : > { %v1012_v38 = vadd.f32 %v4677_v36, %v1011_v37  ;;  %v1056_v39 = vpop.f32.mrb[20].mxu1  ;;  %v5100_v40 = vpop.f32.mrb[21].mxu0 }
 0x58e   : > { %v1057_v41 = vadd.f32 %v4677_v36, %v1056_v39  ;;  %v5108_v42 = vpop.f32.mrb[21].mxu1  ;;  %v1014_v43 = vpop.f32.mrb[22].mxu0 }
 0x58f   : > { %v1063_v44 = vmax.f32 %v1012_v38, 0.0  ;;  %v1015_v45 = vadd.f32 %v4677_v36, %v1014_v43  ;;  %v1059_v46 = vpop.f32.mrb[22].mxu1  ;;  %v5101_v47 = vpop.f32.mrb[23].mxu0 }
 0x590   : > { %v1072_v48 = vmax.f32 %v1057_v41, 0.0  ;;  %v1060_v49 = vadd.f32 %v4677_v36, %v1059_v46  ;;  %v5109_v50 = vpop.f32.mrb[23].mxu1 }
 0x591   : > { %v1065_v51 = vmul.f32 %v1063_v44, %v1063_v44  ;;  %v1064_v52 = vmax.f32 %v1015_v45, 0.0 }
 0x592   : > { %v1074_v53 = vmul.f32 %v1072_v48, %v1072_v48  ;;  %v1073_v54 = vmax.f32 %v1060_v49, 0.0 }
 0x593   : > { %v1066_v55 = vmul.f32 %v1064_v52, %v1064_v52  ;;  %v1067_v57 = vadd.f32 %v1065_v51, %v938_v26 }
 0x594   : > { %v1075_v56 = vmul.f32 %v1073_v54, %v1073_v54  ;;  %v1076_v59 = vadd.f32 %v1074_v53, %v947_v28 }
 0x595   : > { %v1068_v58 = vadd.f32 %v1066_v55, %v939_v27 }
 0x596   : > { %v1077_v60 = vadd.f32 %v1075_v56, %v948_v29 }
 0x597   : > { %v1069_v61 = vpack.c.bf16 %v1068_v58, %v1067_v57 }
 0x598   : > { %v1078_v62 = vpack.c.bf16 %v1077_v60, %v1076_v59 }
 0x599   : > { %1071 = vst.msk [vmem:[#allocation2] sm:$0xff] %vm1070_vm7, %v1069_v61 }
 0x59a   : > { %1079 = vst.msk [vmem:[#allocation2 + $0x8] sm:$0xff] %vm1070_vm7, %v1078_v62  ;;  %vm2876_vm7 = vcmask 162968  }
 0x5a0   : > { %v1080_v63 = vld [vmem:[#allocation2] sm:$0xff] }
 0x5a1   : > { %5115 = vmatmul.mubr.msk.bf16.vlgmr.msra.gmra.mrb[24].mxu0 %vm366_vm2, %v1080_v63  ;;  %v1147_v1 = vld [vmem:[#allocation2 + $0x8] sm:$0xff] }
 0x5a2   : > { %5123 = vmatmul.mubr.msk.bf16.vlgmr.msra.gmra.mrb[24].mxu1 %vm366_vm2, %v1147_v1  ;;  %5130 = vmatprep.mubr.msk.bf16.mxu0 %vm5677_vm0, %v5676_v0  ;;  %v5583_v1 = vld [vmem:[#allocation3 + $0x80] sm:$0xff]  }
 0x5a3   : > { %5138 = vmatprep.mubr.msk.bf16.mxu1 %vm5677_vm0, %v5676_v0  ;;  %5127 = vmatpush3.bf16.msra.mxu0 %v5579_v2 }
 0x5a4   : > { %5135 = vmatpush3.bf16.msra.mxu1 %v5579_v2  ;;  %5128 = vmatprep.subr.bf16.mxu0 %v5676_v0  ;;  %v5584_v2 = vld [vmem:[#allocation3 + $0x88] sm:$0xff]  }
 0x5a5   : > { %5136 = vmatprep.subr.bf16.mxu1 %v5676_v0 }
 0x5a7   : > { %5129 = vmatpush3.bf16.msra.mxu0 %v5580_v3 }
 0x5a8   : > { %5137 = vmatpush3.bf16.msra.mxu1 %v5580_v3  ;;  %5142 = vmatprep.subr.bf16.mxu0 %v5676_v0  ;;  %v4692_v3 = vld [vmem:[%s6233_s4 + $0x7] ss:$0 sm:$0xff] }
 0x5a9   : > { %5150 = vmatprep.subr.bf16.mxu1 %v5676_v0 }
 0x674   : > { %v1140_v5 = vpop.f32.mrb[24].mxu0 }
 0x675   : > { %v1141_v6 = vadd.f32 %v4682_v4, %v1140_v5  ;;  %v1185_v7 = vpop.f32.mrb[24].mxu1  ;;  %v5116_v8 = vpop.f32.mrb[25].mxu0 }
 0x676   : > { %v1186_v9 = vadd.f32 %v4682_v4, %v1185_v7  ;;  %v5124_v10 = vpop.f32.mrb[25].mxu1  ;;  %v1143_v11 = vpop.f32.mrb[26].mxu0 }
 0x677   : > { %v1192_v12 = vmax.f32 %v1141_v6, 0.0  ;;  %v1144_v13 = vadd.f32 %v4682_v4, %v1143_v11  ;;  %v1188_v14 = vpop.f32.mrb[26].mxu1  ;;  %v5117_v15 = vpop.f32.mrb[27].mxu0 }
 0x678   : > { %v1201_v16 = vmax.f32 %v1186_v9, 0.0  ;;  %v1189_v17 = vadd.f32 %v4682_v4, %v1188_v14  ;;  %v5125_v18 = vpop.f32.mrb[27].mxu1 }
 0x679   : > { %v1194_v19 = vmul.f32 %v1192_v12, %v1192_v12  ;;  %v1193_v20 = vmax.f32 %v1144_v13, 0.0 }
 0x67a   : > { %v1203_v21 = vmul.f32 %v1201_v16, %v1201_v16  ;;  %v1202_v22 = vmax.f32 %v1189_v17, 0.0 }
 0x67b   : > { %v1195_v23 = vmul.f32 %v1193_v20, %v1193_v20  ;;  %v1196_v25 = vadd.f32 %v1194_v19, %v1067_v57 }
 0x67c   : > { %v1204_v24 = vmul.f32 %v1202_v22, %v1202_v22  ;;  %v1205_v27 = vadd.f32 %v1203_v21, %v1076_v59 }
 0x67d   : > { %v1197_v26 = vadd.f32 %v1195_v23, %v1068_v58 }
 0x67e   : > { %v1206_v28 = vadd.f32 %v1204_v24, %v1077_v60 }
 0x67f   : > { %v1198_v29 = vpack.c.bf16 %v1197_v26, %v1196_v25 }
 0x680   : > { %v1207_v30 = vpack.c.bf16 %v1206_v28, %v1205_v27 }
 0x681   : > { %1200 = vst.msk [vmem:[#allocation2] sm:$0xff] %vm1199_vm8, %v1198_v29 }
 0x682   : > { %1208 = vst.msk [vmem:[#allocation2 + $0x8] sm:$0xff] %vm1199_vm8, %v1207_v30  ;;  %vm3005_vm8 = vcmask 171168  }
 0x688   : > { %v1209_v31 = vld [vmem:[#allocation2] sm:$0xff] }
 0x689   : > { %5131 = vmatmul.mubr.msk.bf16.vlgmr.msra.gmra.mrb[28].mxu0 %vm366_vm2, %v1209_v31  ;;  %v1276_v32 = vld [vmem:[#allocation2 + $0x8] sm:$0xff] }
 0x68a   : > { %5139 = vmatmul.mubr.msk.bf16.vlgmr.msra.gmra.mrb[28].mxu1 %vm366_vm2, %v1276_v32  ;;  %5146 = vmatprep.mubr.msk.bf16.mxu0 %vm5677_vm0, %v5676_v0  ;;  %v5585_v32 = vld [vmem:[#allocation3 + $0x90] sm:$0xff]  }
 0x68b   : > { %5154 = vmatprep.mubr.msk.bf16.mxu1 %vm5677_vm0, %v5676_v0  ;;  %5143 = vmatpush3.bf16.msra.mxu0 %v5581_v33 }
 0x68c   : > { %5151 = vmatpush3.bf16.msra.mxu1 %v5581_v33  ;;  %5144 = vmatprep.subr.bf16.mxu0 %v5676_v0  ;;  %v5586_v33 = vld [vmem:[#allocation3 + $0x98] sm:$0xff]  }
 0x68d   : > { %5152 = vmatprep.subr.bf16.mxu1 %v5676_v0 }
 0x68f   : > { %5145 = vmatpush3.bf16.msra.mxu0 %v5582_v34 }
 0x690   : > { %5153 = vmatpush3.bf16.msra.mxu1 %v5582_v34  ;;  %5158 = vmatprep.subr.bf16.mxu0 %v5676_v0  ;;  %v4697_v34 = vld [vmem:[%s6233_s4 + $0x8] ss:$0 sm:$0xff] }
 0x691   : > { %5166 = vmatprep.subr.bf16.mxu1 %v5676_v0 }
 0x75c   : > { %v1269_v36 = vpop.f32.mrb[28].mxu0 }
 0x75d   : > { %v1270_v37 = vadd.f32 %v4687_v35, %v1269_v36  ;;  %v1314_v38 = vpop.f32.mrb[28].mxu1  ;;  %v5132_v39 = vpop.f32.mrb[29].mxu0 }
 0x75e   : > { %v1315_v40 = vadd.f32 %v4687_v35, %v1314_v38  ;;  %v5140_v41 = vpop.f32.mrb[29].mxu1  ;;  %v1272_v42 = vpop.f32.mrb[30].mxu0 }
 0x75f   : > { %v1321_v43 = vmax.f32 %v1270_v37, 0.0  ;;  %v1273_v44 = vadd.f32 %v4687_v35, %v1272_v42  ;;  %v1317_v45 = vpop.f32.mrb[30].mxu1  ;;  %v5133_v46 = vpop.f32.mrb[31].mxu0 }
 0x760   : > { %v1330_v47 = vmax.f32 %v1315_v40, 0.0  ;;  %v1318_v48 = vadd.f32 %v4687_v35, %v1317_v45  ;;  %v5141_v49 = vpop.f32.mrb[31].mxu1 }
 0x761   : > { %v1323_v50 = vmul.f32 %v1321_v43, %v1321_v43  ;;  %v1322_v51 = vmax.f32 %v1273_v44, 0.0 }
 0x762   : > { %v1332_v52 = vmul.f32 %v1330_v47, %v1330_v47  ;;  %v1331_v53 = vmax.f32 %v1318_v48, 0.0 }
 0x763   : > { %v1324_v54 = vmul.f32 %v1322_v51, %v1322_v51  ;;  %v1325_v56 = vadd.f32 %v1323_v50, %v1196_v25 }
 0x764   : > { %v1333_v55 = vmul.f32 %v1331_v53, %v1331_v53  ;;  %v1334_v58 = vadd.f32 %v1332_v52, %v1205_v27 }
 0x765   : > { %v1326_v57 = vadd.f32 %v1324_v54, %v1197_v26 }
 0x766   : > { %v1335_v59 = vadd.f32 %v1333_v55, %v1206_v28 }
 0x767   : > { %v1327_v60 = vpack.c.bf16 %v1326_v57, %v1325_v56 }
 0x768   : > { %v1336_v61 = vpack.c.bf16 %v1335_v59, %v1334_v58 }
 0x769   : > { %1329 = vst.msk [vmem:[#allocation2] sm:$0xff] %vm1328_vm9, %v1327_v60 }
 0x76a   : > { %1337 = vst.msk [vmem:[#allocation2 + $0x8] sm:$0xff] %vm1328_vm9, %v1336_v61  ;;  %vm3134_vm9 = vcmask 179368  }
 0x770   : > { %v1338_v62 = vld [vmem:[#allocation2] sm:$0xff] }
 0x771   : > { %5147 = vmatmul.mubr.msk.bf16.vlgmr.msra.gmra.mrb[32].mxu0 %vm366_vm2, %v1338_v62  ;;  %v1405_v63 = vld [vmem:[#allocation2 + $0x8] sm:$0xff] }
 0x772   : > { %5155 = vmatmul.mubr.msk.bf16.vlgmr.msra.gmra.mrb[32].mxu1 %vm366_vm2, %v1405_v63  ;;  %5162 = vmatprep.mubr.msk.bf16.mxu0 %vm5677_vm0, %v5676_v0  ;;  %v5587_v63 = vld [vmem:[#allocation3 + $0xa0] sm:$0xff]  }
 0x773   : > { %5170 = vmatprep.mubr.msk.bf16.mxu1 %vm5677_vm0, %v5676_v0  ;;  %5159 = vmatpush3.bf16.msra.mxu0 %v5583_v1 }
 0x774   : > { %5167 = vmatpush3.bf16.msra.mxu1 %v5583_v1  ;;  %5160 = vmatprep.subr.bf16.mxu0 %v5676_v0  ;;  %v5588_v1 = vld [vmem:[#allocation3 + $0xa8] sm:$0xff]  }
 0x775   : > { %5168 = vmatprep.subr.bf16.mxu1 %v5676_v0 }
 0x777   : > { %5161 = vmatpush3.bf16.msra.mxu0 %v5584_v2 }
 0x778   : > { %5169 = vmatpush3.bf16.msra.mxu1 %v5584_v2  ;;  %5174 = vmatprep.subr.bf16.mxu0 %v5676_v0  ;;  %v4702_v2 = vld [vmem:[%s6233_s4 + $0x9] ss:$0 sm:$0xff] }
 0x779   : > { %5182 = vmatprep.subr.bf16.mxu1 %v5676_v0 }
 0x844   : > { %v1398_v4 = vpop.f32.mrb[32].mxu0 }
 0x845   : > { %v1399_v5 = vadd.f32 %v4692_v3, %v1398_v4  ;;  %v1443_v6 = vpop.f32.mrb[32].mxu1  ;;  %v5148_v7 = vpop.f32.mrb[33].mxu0 }
 0x846   : > { %v1444_v8 = vadd.f32 %v4692_v3, %v1443_v6  ;;  %v5156_v9 = vpop.f32.mrb[33].mxu1  ;;  %v1401_v10 = vpop.f32.mrb[34].mxu0 }
 0x847   : > { %v1450_v11 = vmax.f32 %v1399_v5, 0.0  ;;  %v1402_v12 = vadd.f32 %v4692_v3, %v1401_v10  ;;  %v1446_v13 = vpop.f32.mrb[34].mxu1  ;;  %v5149_v14 = vpop.f32.mrb[35].mxu0 }
 0x848   : > { %v1459_v15 = vmax.f32 %v1444_v8, 0.0  ;;  %v1447_v16 = vadd.f32 %v4692_v3, %v1446_v13  ;;  %v5157_v17 = vpop.f32.mrb[35].mxu1 }
 0x849   : > { %v1452_v18 = vmul.f32 %v1450_v11, %v1450_v11  ;;  %v1451_v19 = vmax.f32 %v1402_v12, 0.0 }
 0x84a   : > { %v1461_v20 = vmul.f32 %v1459_v15, %v1459_v15  ;;  %v1460_v21 = vmax.f32 %v1447_v16, 0.0 }
 0x84b   : > { %v1453_v22 = vmul.f32 %v1451_v19, %v1451_v19  ;;  %v1454_v24 = vadd.f32 %v1452_v18, %v1325_v56 }
 0x84c   : > { %v1462_v23 = vmul.f32 %v1460_v21, %v1460_v21  ;;  %v1463_v26 = vadd.f32 %v1461_v20, %v1334_v58 }
 0x84d   : > { %v1455_v25 = vadd.f32 %v1453_v22, %v1326_v57 }
 0x84e   : > { %v1464_v27 = vadd.f32 %v1462_v23, %v1335_v59 }
 0x84f   : > { %v1456_v28 = vpack.c.bf16 %v1455_v25, %v1454_v24 }
 0x850   : > { %v1465_v29 = vpack.c.bf16 %v1464_v27, %v1463_v26 }
 0x851   : > { %1458 = vst.msk [vmem:[#allocation2] sm:$0xff] %vm1457_vm10, %v1456_v28 }
 0x852   : > { %1466 = vst.msk [vmem:[#allocation2 + $0x8] sm:$0xff] %vm1457_vm10, %v1465_v29  ;;  %vm3263_vm10 = vcmask 187568  }
 0x858   : > { %v1467_v30 = vld [vmem:[#allocation2] sm:$0xff] }
 0x859   : > { %5163 = vmatmul.mubr.msk.bf16.vlgmr.msra.gmra.mrb[36].mxu0 %vm366_vm2, %v1467_v30  ;;  %v1534_v31 = vld [vmem:[#allocation2 + $0x8] sm:$0xff] }
 0x85a   : > { %5171 = vmatmul.mubr.msk.bf16.vlgmr.msra.gmra.mrb[36].mxu1 %vm366_vm2, %v1534_v31  ;;  %5178 = vmatprep.mubr.msk.bf16.mxu0 %vm5677_vm0, %v5676_v0  ;;  %v5589_v31 = vld [vmem:[#allocation3 + $0xb0] sm:$0xff]  }
 0x85b   : > { %5186 = vmatprep.mubr.msk.bf16.mxu1 %vm5677_vm0, %v5676_v0  ;;  %5175 = vmatpush3.bf16.msra.mxu0 %v5585_v32 }
 0x85c   : > { %5183 = vmatpush3.bf16.msra.mxu1 %v5585_v32  ;;  %5176 = vmatprep.subr.bf16.mxu0 %v5676_v0  ;;  %v5590_v32 = vld [vmem:[#allocation3 + $0xb8] sm:$0xff]  }
 0x85d   : > { %5184 = vmatprep.subr.bf16.mxu1 %v5676_v0 }
 0x85f   : > { %5177 = vmatpush3.bf16.msra.mxu0 %v5586_v33 }
 0x860   : > { %5185 = vmatpush3.bf16.msra.mxu1 %v5586_v33  ;;  %5190 = vmatprep.subr.bf16.mxu0 %v5676_v0  ;;  %v4707_v33 = vld [vmem:[%s6233_s4 + $0xa] ss:$0 sm:$0xff] }
 0x861   : > { %5198 = vmatprep.subr.bf16.mxu1 %v5676_v0 }
 0x92c   : > { %v1527_v35 = vpop.f32.mrb[36].mxu0 }
 0x92d   : > { %v1528_v36 = vadd.f32 %v4697_v34, %v1527_v35  ;;  %v1572_v37 = vpop.f32.mrb[36].mxu1  ;;  %v5164_v38 = vpop.f32.mrb[37].mxu0 }
 0x92e   : > { %v1573_v39 = vadd.f32 %v4697_v34, %v1572_v37  ;;  %v5172_v40 = vpop.f32.mrb[37].mxu1  ;;  %v1530_v41 = vpop.f32.mrb[38].mxu0 }
 0x92f   : > { %v1579_v42 = vmax.f32 %v1528_v36, 0.0  ;;  %v1531_v43 = vadd.f32 %v4697_v34, %v1530_v41  ;;  %v1575_v44 = vpop.f32.mrb[38].mxu1  ;;  %v5165_v45 = vpop.f32.mrb[39].mxu0 }
 0x930   : > { %v1588_v46 = vmax.f32 %v1573_v39, 0.0  ;;  %v1576_v47 = vadd.f32 %v4697_v34, %v1575_v44  ;;  %v5173_v48 = vpop.f32.mrb[39].mxu1 }
 0x931   : > { %v1581_v49 = vmul.f32 %v1579_v42, %v1579_v42  ;;  %v1580_v50 = vmax.f32 %v1531_v43, 0.0 }
 0x932   : > { %v1590_v51 = vmul.f32 %v1588_v46, %v1588_v46  ;;  %v1589_v52 = vmax.f32 %v1576_v47, 0.0 }
 0x933   : > { %v1582_v53 = vmul.f32 %v1580_v50, %v1580_v50  ;;  %v1583_v55 = vadd.f32 %v1581_v49, %v1454_v24 }
 0x934   : > { %v1591_v54 = vmul.f32 %v1589_v52, %v1589_v52  ;;  %v1592_v57 = vadd.f32 %v1590_v51, %v1463_v26 }
 0x935   : > { %v1584_v56 = vadd.f32 %v1582_v53, %v1455_v25 }
 0x936   : > { %v1593_v58 = vadd.f32 %v1591_v54, %v1464_v27 }
 0x937   : > { %v1585_v59 = vpack.c.bf16 %v1584_v56, %v1583_v55 }
 0x938   : > { %v1594_v60 = vpack.c.bf16 %v1593_v58, %v1592_v57 }
 0x939   : > { %1587 = vst.msk [vmem:[#allocation2] sm:$0xff] %vm1586_vm11, %v1585_v59 }
 0x93a   : > { %1595 = vst.msk [vmem:[#allocation2 + $0x8] sm:$0xff] %vm1586_vm11, %v1594_v60  ;;  %vm3392_vm11 = vcmask 195768  }
 0x940   : > { %v1596_v61 = vld [vmem:[#allocation2] sm:$0xff] }
 0x941   : > { %5179 = vmatmul.mubr.msk.bf16.vlgmr.msra.gmra.mrb[40].mxu0 %vm366_vm2, %v1596_v61  ;;  %v1663_v62 = vld [vmem:[#allocation2 + $0x8] sm:$0xff] }
 0x942   : > { %5187 = vmatmul.mubr.msk.bf16.vlgmr.msra.gmra.mrb[40].mxu1 %vm366_vm2, %v1663_v62  ;;  %5194 = vmatprep.mubr.msk.bf16.mxu0 %vm5677_vm0, %v5676_v0  ;;  %v5591_v62 = vld [vmem:[#allocation3 + $0xc0] sm:$0xff]  }
 0x943   : > { %5202 = vmatprep.mubr.msk.bf16.mxu1 %vm5677_vm0, %v5676_v0  ;;  %5191 = vmatpush3.bf16.msra.mxu0 %v5587_v63 }
 0x944   : > { %5199 = vmatpush3.bf16.msra.mxu1 %v5587_v63  ;;  %5192 = vmatprep.subr.bf16.mxu0 %v5676_v0  ;;  %v5592_v63 = vld [vmem:[#allocation3 + $0xc8] sm:$0xff]  }
 0x945   : > { %5200 = vmatprep.subr.bf16.mxu1 %v5676_v0 }
 0x947   : > { %5193 = vmatpush3.bf16.msra.mxu0 %v5588_v1 }
 0x948   : > { %5201 = vmatpush3.bf16.msra.mxu1 %v5588_v1  ;;  %5206 = vmatprep.subr.bf16.mxu0 %v5676_v0  ;;  %v4712_v1 = vld [vmem:[%s6233_s4 + $0xb] ss:$0 sm:$0xff] }
 0x949   : > { %5214 = vmatprep.subr.bf16.mxu1 %v5676_v0 }
 0xa14   : > { %v1656_v3 = vpop.f32.mrb[40].mxu0 }
 0xa15   : > { %v1657_v4 = vadd.f32 %v4702_v2, %v1656_v3  ;;  %v1701_v5 = vpop.f32.mrb[40].mxu1  ;;  %v5180_v6 = vpop.f32.mrb[41].mxu0 }
 0xa16   : > { %v1702_v7 = vadd.f32 %v4702_v2, %v1701_v5  ;;  %v5188_v8 = vpop.f32.mrb[41].mxu1  ;;  %v1659_v9 = vpop.f32.mrb[42].mxu0 }
 0xa17   : > { %v1708_v10 = vmax.f32 %v1657_v4, 0.0  ;;  %v1660_v11 = vadd.f32 %v4702_v2, %v1659_v9  ;;  %v1704_v12 = vpop.f32.mrb[42].mxu1  ;;  %v5181_v13 = vpop.f32.mrb[43].mxu0 }
 0xa18   : > { %v1717_v14 = vmax.f32 %v1702_v7, 0.0  ;;  %v1705_v15 = vadd.f32 %v4702_v2, %v1704_v12  ;;  %v5189_v16 = vpop.f32.mrb[43].mxu1 }
 0xa19   : > { %v1710_v17 = vmul.f32 %v1708_v10, %v1708_v10  ;;  %v1709_v18 = vmax.f32 %v1660_v11, 0.0 }
 0xa1a   : > { %v1719_v19 = vmul.f32 %v1717_v14, %v1717_v14  ;;  %v1718_v20 = vmax.f32 %v1705_v15, 0.0 }
 0xa1b   : > { %v1711_v21 = vmul.f32 %v1709_v18, %v1709_v18  ;;  %v1712_v23 = vadd.f32 %v1710_v17, %v1583_v55 }
 0xa1c   : > { %v1720_v22 = vmul.f32 %v1718_v20, %v1718_v20  ;;  %v1721_v25 = vadd.f32 %v1719_v19, %v1592_v57 }
 0xa1d   : > { %v1713_v24 = vadd.f32 %v1711_v21, %v1584_v56 }
 0xa1e   : > { %v1722_v26 = vadd.f32 %v1720_v22, %v1593_v58 }
 0xa1f   : > { %v1714_v27 = vpack.c.bf16 %v1713_v24, %v1712_v23 }
 0xa20   : > { %v1723_v28 = vpack.c.bf16 %v1722_v26, %v1721_v25 }
 0xa21   : > { %1716 = vst.msk [vmem:[#allocation2] sm:$0xff] %vm1715_vm12, %v1714_v27 }
 0xa22   : > { %1724 = vst.msk [vmem:[#allocation2 + $0x8] sm:$0xff] %vm1715_vm12, %v1723_v28  ;;  %vm3521_vm12 = vcmask 203968  }
 0xa28   : > { %v1725_v29 = vld [vmem:[#allocation2] sm:$0xff] }
 0xa29   : > { %5195 = vmatmul.mubr.msk.bf16.vlgmr.msra.gmra.mrb[44].mxu0 %vm366_vm2, %v1725_v29  ;;  %v1792_v30 = vld [vmem:[#allocation2 + $0x8] sm:$0xff] }
 0xa2a   : > { %5203 = vmatmul.mubr.msk.bf16.vlgmr.msra.gmra.mrb[44].mxu1 %vm366_vm2, %v1792_v30  ;;  %5210 = vmatprep.mubr.msk.bf16.mxu0 %vm5677_vm0, %v5676_v0  ;;  %v5593_v30 = vld [vmem:[#allocation3 + $0xd0] sm:$0xff]  }
 0xa2b   : > { %5218 = vmatprep.mubr.msk.bf16.mxu1 %vm5677_vm0, %v5676_v0  ;;  %5207 = vmatpush3.bf16.msra.mxu0 %v5589_v31 }
 0xa2c   : > { %5215 = vmatpush3.bf16.msra.mxu1 %v5589_v31  ;;  %5208 = vmatprep.subr.bf16.mxu0 %v5676_v0  ;;  %v5594_v31 = vld [vmem:[#allocation3 + $0xd8] sm:$0xff]  }
 0xa2d   : > { %5216 = vmatprep.subr.bf16.mxu1 %v5676_v0 }
 0xa2f   : > { %5209 = vmatpush3.bf16.msra.mxu0 %v5590_v32 }
 0xa30   : > { %5217 = vmatpush3.bf16.msra.mxu1 %v5590_v32  ;;  %5222 = vmatprep.subr.bf16.mxu0 %v5676_v0  ;;  %v4717_v32 = vld [vmem:[%s6233_s4 + $0xc] ss:$0 sm:$0xff] }
 0xa31   : > { %5230 = vmatprep.subr.bf16.mxu1 %v5676_v0 }
 0xafc   : > { %v1785_v34 = vpop.f32.mrb[44].mxu0 }
 0xafd   : > { %v1786_v35 = vadd.f32 %v4707_v33, %v1785_v34  ;;  %v1830_v36 = vpop.f32.mrb[44].mxu1  ;;  %v5196_v37 = vpop.f32.mrb[45].mxu0 }
 0xafe   : > { %v1831_v38 = vadd.f32 %v4707_v33, %v1830_v36  ;;  %v5204_v39 = vpop.f32.mrb[45].mxu1  ;;  %v1788_v40 = vpop.f32.mrb[46].mxu0 }
 0xaff   : > { %v1837_v41 = vmax.f32 %v1786_v35, 0.0  ;;  %v1789_v42 = vadd.f32 %v4707_v33, %v1788_v40  ;;  %v1833_v43 = vpop.f32.mrb[46].mxu1  ;;  %v5197_v44 = vpop.f32.mrb[47].mxu0 }
 0xb00   : > { %v1846_v45 = vmax.f32 %v1831_v38, 0.0  ;;  %v1834_v46 = vadd.f32 %v4707_v33, %v1833_v43  ;;  %v5205_v47 = vpop.f32.mrb[47].mxu1 }
 0xb01   : > { %v1839_v48 = vmul.f32 %v1837_v41, %v1837_v41  ;;  %v1838_v49 = vmax.f32 %v1789_v42, 0.0 }
 0xb02   : > { %v1848_v50 = vmul.f32 %v1846_v45, %v1846_v45  ;;  %v1847_v51 = vmax.f32 %v1834_v46, 0.0 }
 0xb03   : > { %v1840_v52 = vmul.f32 %v1838_v49, %v1838_v49  ;;  %v1841_v54 = vadd.f32 %v1839_v48, %v1712_v23 }
 0xb04   : > { %v1849_v53 = vmul.f32 %v1847_v51, %v1847_v51  ;;  %v1850_v56 = vadd.f32 %v1848_v50, %v1721_v25 }
 0xb05   : > { %v1842_v55 = vadd.f32 %v1840_v52, %v1713_v24 }
 0xb06   : > { %v1851_v57 = vadd.f32 %v1849_v53, %v1722_v26 }
 0xb07   : > { %v1843_v58 = vpack.c.bf16 %v1842_v55, %v1841_v54 }
 0xb08   : > { %v1852_v59 = vpack.c.bf16 %v1851_v57, %v1850_v56 }
 0xb09   : > { %1845 = vst.msk [vmem:[#allocation2] sm:$0xff] %vm1844_vm13, %v1843_v58 }
 0xb0a   : > { %1853 = vst.msk [vmem:[#allocation2 + $0x8] sm:$0xff] %vm1844_vm13, %v1852_v59  ;;  %vm3650_vm13 = vcmask 212168  }
 0xb10   : > { %v1854_v60 = vld [vmem:[#allocation2] sm:$0xff] }
 0xb11   : > { %5211 = vmatmul.mubr.msk.bf16.vlgmr.msra.gmra.mrb[48].mxu0 %vm366_vm2, %v1854_v60  ;;  %v1921_v61 = vld [vmem:[#allocation2 + $0x8] sm:$0xff] }
 0xb12   : > { %5219 = vmatmul.mubr.msk.bf16.vlgmr.msra.gmra.mrb[48].mxu1 %vm366_vm2, %v1921_v61  ;;  %5226 = vmatprep.mubr.msk.bf16.mxu0 %vm5677_vm0, %v5676_v0  ;;  %v5595_v61 = vld [vmem:[#allocation3 + $0xe0] sm:$0xff]  }
 0xb13   : > { %5234 = vmatprep.mubr.msk.bf16.mxu1 %vm5677_vm0, %v5676_v0  ;;  %5223 = vmatpush3.bf16.msra.mxu0 %v5591_v62 }
 0xb14   : > { %5231 = vmatpush3.bf16.msra.mxu1 %v5591_v62  ;;  %5224 = vmatprep.subr.bf16.mxu0 %v5676_v0  ;;  %v5596_v62 = vld [vmem:[#allocation3 + $0xe8] sm:$0xff]  }
 0xb15   : > { %5232 = vmatprep.subr.bf16.mxu1 %v5676_v0 }
 0xb17   : > { %5225 = vmatpush3.bf16.msra.mxu0 %v5592_v63 }
 0xb18   : > { %5233 = vmatpush3.bf16.msra.mxu1 %v5592_v63  ;;  %5238 = vmatprep.subr.bf16.mxu0 %v5676_v0  ;;  %v4722_v63 = vld [vmem:[%s6233_s4 + $0xd] ss:$0 sm:$0xff] }
 0xb19   : > { %5246 = vmatprep.subr.bf16.mxu1 %v5676_v0 }
 0xbe4   : > { %v1914_v2 = vpop.f32.mrb[48].mxu0 }
 0xbe5   : > { %v1915_v3 = vadd.f32 %v4712_v1, %v1914_v2  ;;  %v1959_v4 = vpop.f32.mrb[48].mxu1  ;;  %v5212_v5 = vpop.f32.mrb[49].mxu0 }
 0xbe6   : > { %v1960_v6 = vadd.f32 %v4712_v1, %v1959_v4  ;;  %v5220_v7 = vpop.f32.mrb[49].mxu1  ;;  %v1917_v8 = vpop.f32.mrb[50].mxu0 }
 0xbe7   : > { %v1966_v9 = vmax.f32 %v1915_v3, 0.0  ;;  %v1918_v10 = vadd.f32 %v4712_v1, %v1917_v8  ;;  %v1962_v11 = vpop.f32.mrb[50].mxu1  ;;  %v5213_v12 = vpop.f32.mrb[51].mxu0 }
 0xbe8   : > { %v1975_v13 = vmax.f32 %v1960_v6, 0.0  ;;  %v1963_v14 = vadd.f32 %v4712_v1, %v1962_v11  ;;  %v5221_v15 = vpop.f32.mrb[51].mxu1 }
 0xbe9   : > { %v1968_v16 = vmul.f32 %v1966_v9, %v1966_v9  ;;  %v1967_v17 = vmax.f32 %v1918_v10, 0.0 }
 0xbea   : > { %v1977_v18 = vmul.f32 %v1975_v13, %v1975_v13  ;;  %v1976_v19 = vmax.f32 %v1963_v14, 0.0 }
 0xbeb   : > { %v1969_v20 = vmul.f32 %v1967_v17, %v1967_v17  ;;  %v1970_v22 = vadd.f32 %v1968_v16, %v1841_v54 }
 0xbec   : > { %v1978_v21 = vmul.f32 %v1976_v19, %v1976_v19  ;;  %v1979_v24 = vadd.f32 %v1977_v18, %v1850_v56 }
 0xbed   : > { %v1971_v23 = vadd.f32 %v1969_v20, %v1842_v55 }
 0xbee   : > { %v1980_v25 = vadd.f32 %v1978_v21, %v1851_v57 }
 0xbef   : > { %v1972_v26 = vpack.c.bf16 %v1971_v23, %v1970_v22 }
 0xbf0   : > { %v1981_v27 = vpack.c.bf16 %v1980_v25, %v1979_v24 }
 0xbf1   : > { %1974 = vst.msk [vmem:[#allocation2] sm:$0xff] %vm1973_vm14, %v1972_v26 }
 0xbf2   : > { %1982 = vst.msk [vmem:[#allocation2 + $0x8] sm:$0xff] %vm1973_vm14, %v1981_v27  ;;  %vm3779_vm14 = vcmask 220368  }
 0xbf8   : > { %v1983_v28 = vld [vmem:[#allocation2] sm:$0xff] }
 0xbf9   : > { %5227 = vmatmul.mubr.msk.bf16.vlgmr.msra.gmra.mrb[52].mxu0 %vm366_vm2, %v1983_v28  ;;  %v2050_v29 = vld [vmem:[#allocation2 + $0x8] sm:$0xff] }
 0xbfa   : > { %5235 = vmatmul.mubr.msk.bf16.vlgmr.msra.gmra.mrb[52].mxu1 %vm366_vm2, %v2050_v29  ;;  %5242 = vmatprep.mubr.msk.bf16.mxu0 %vm5677_vm0, %v5676_v0  ;;  %v5597_v29 = vld [vmem:[#allocation3 + $0xf0] sm:$0xff]  }
 0xbfb   : > { %5250 = vmatprep.mubr.msk.bf16.mxu1 %vm5677_vm0, %v5676_v0  ;;  %5239 = vmatpush3.bf16.msra.mxu0 %v5593_v30 }
 0xbfc   : > { %5247 = vmatpush3.bf16.msra.mxu1 %v5593_v30  ;;  %5240 = vmatprep.subr.bf16.mxu0 %v5676_v0  ;;  %v5598_v30 = vld [vmem:[#allocation3 + $0xf8] sm:$0xff]  }
 0xbfd   : > { %5248 = vmatprep.subr.bf16.mxu1 %v5676_v0 }
 0xbff   : > { %5241 = vmatpush3.bf16.msra.mxu0 %v5594_v31 }
 0xc00   : > { %5249 = vmatpush3.bf16.msra.mxu1 %v5594_v31  ;;  %5254 = vmatprep.subr.bf16.mxu0 %v5676_v0  ;;  %v4727_v31 = vld [vmem:[%s6233_s4 + $0xe] ss:$0 sm:$0xff] }
 0xc01   : > { %5262 = vmatprep.subr.bf16.mxu1 %v5676_v0 }
 0xccc   : > { %v2043_v33 = vpop.f32.mrb[52].mxu0 }
 0xccd   : > { %v2044_v34 = vadd.f32 %v4717_v32, %v2043_v33  ;;  %v2088_v35 = vpop.f32.mrb[52].mxu1  ;;  %v5228_v36 = vpop.f32.mrb[53].mxu0 }
 0xcce   : > { %v2089_v37 = vadd.f32 %v4717_v32, %v2088_v35  ;;  %v5236_v38 = vpop.f32.mrb[53].mxu1  ;;  %v2046_v39 = vpop.f32.mrb[54].mxu0 }
 0xccf   : > { %v2095_v40 = vmax.f32 %v2044_v34, 0.0  ;;  %v2047_v41 = vadd.f32 %v4717_v32, %v2046_v39  ;;  %v2091_v42 = vpop.f32.mrb[54].mxu1  ;;  %v5229_v43 = vpop.f32.mrb[55].mxu0 }
 0xcd0   : > { %v2104_v44 = vmax.f32 %v2089_v37, 0.0  ;;  %v2092_v45 = vadd.f32 %v4717_v32, %v2091_v42  ;;  %v5237_v46 = vpop.f32.mrb[55].mxu1 }
 0xcd1   : > { %v2097_v47 = vmul.f32 %v2095_v40, %v2095_v40  ;;  %v2096_v48 = vmax.f32 %v2047_v41, 0.0 }
 0xcd2   : > { %v2106_v49 = vmul.f32 %v2104_v44, %v2104_v44  ;;  %v2105_v50 = vmax.f32 %v2092_v45, 0.0 }
 0xcd3   : > { %v2098_v51 = vmul.f32 %v2096_v48, %v2096_v48  ;;  %v2099_v53 = vadd.f32 %v2097_v47, %v1970_v22 }
 0xcd4   : > { %v2107_v52 = vmul.f32 %v2105_v50, %v2105_v50  ;;  %v2108_v55 = vadd.f32 %v2106_v49, %v1979_v24 }
 0xcd5   : > { %v2100_v54 = vadd.f32 %v2098_v51, %v1971_v23 }
 0xcd6   : > { %v2109_v56 = vadd.f32 %v2107_v52, %v1980_v25 }
 0xcd7   : > { %v2101_v57 = vpack.c.bf16 %v2100_v54, %v2099_v53 }
 0xcd8   : > { %v2110_v58 = vpack.c.bf16 %v2109_v56, %v2108_v55 }
 0xcd9   : > { %2103 = vst.msk [vmem:[#allocation2] sm:$0xff] %vm2102_vm15, %v2101_v57 }
 0xcda   : > { %2111 = vst.msk [vmem:[#allocation2 + $0x8] sm:$0xff] %vm2102_vm15, %v2110_v58  ;;  %vm3908_vm15 = vcmask 228568  }
 0xce0   : > { %v2112_v59 = vld [vmem:[#allocation2] sm:$0xff] }
 0xce1   : > { %5243 = vmatmul.mubr.msk.bf16.vlgmr.msra.gmra.mrb[56].mxu0 %vm366_vm2, %v2112_v59  ;;  %v2179_v60 = vld [vmem:[#allocation2 + $0x8] sm:$0xff] }
 0xce2   : > { %5251 = vmatmul.mubr.msk.bf16.vlgmr.msra.gmra.mrb[56].mxu1 %vm366_vm2, %v2179_v60  ;;  %5258 = vmatprep.mubr.msk.bf16.mxu0 %vm5677_vm0, %v5676_v0  ;;  %v5599_v60 = vld [vmem:[#allocation3 + $0x100] sm:$0xff]  }
 0xce3   : > { %5266 = vmatprep.mubr.msk.bf16.mxu1 %vm5677_vm0, %v5676_v0  ;;  %5255 = vmatpush3.bf16.msra.mxu0 %v5595_v61 }
 0xce4   : > { %5263 = vmatpush3.bf16.msra.mxu1 %v5595_v61  ;;  %5256 = vmatprep.subr.bf16.mxu0 %v5676_v0  ;;  %v5600_v61 = vld [vmem:[#allocation3 + $0x108] sm:$0xff]  }
 0xce5   : > { %5264 = vmatprep.subr.bf16.mxu1 %v5676_v0 }
 0xce7   : > { %5257 = vmatpush3.bf16.msra.mxu0 %v5596_v62 }
 0xce8   : > { %5265 = vmatpush3.bf16.msra.mxu1 %v5596_v62  ;;  %5270 = vmatprep.subr.bf16.mxu0 %v5676_v0  ;;  %v4732_v62 = vld [vmem:[%s6233_s4 + $0xf] ss:$0 sm:$0xff] }
 0xce9   : > { %5278 = vmatprep.subr.bf16.mxu1 %v5676_v0 }
 0xdb4   : > { %v2172_v1 = vpop.f32.mrb[56].mxu0 }
 0xdb5   : > { %v2173_v2 = vadd.f32 %v4722_v63, %v2172_v1  ;;  %v2217_v3 = vpop.f32.mrb[56].mxu1  ;;  %v5244_v4 = vpop.f32.mrb[57].mxu0 }
 0xdb6   : > { %v2218_v5 = vadd.f32 %v4722_v63, %v2217_v3  ;;  %v5252_v6 = vpop.f32.mrb[57].mxu1  ;;  %v2175_v7 = vpop.f32.mrb[58].mxu0 }
 0xdb7   : > { %v2224_v8 = vmax.f32 %v2173_v2, 0.0  ;;  %v2176_v9 = vadd.f32 %v4722_v63, %v2175_v7  ;;  %v2220_v10 = vpop.f32.mrb[58].mxu1  ;;  %v5245_v11 = vpop.f32.mrb[59].mxu0 }
 0xdb8   : > { %v2233_v12 = vmax.f32 %v2218_v5, 0.0  ;;  %v2221_v13 = vadd.f32 %v4722_v63, %v2220_v10  ;;  %v5253_v14 = vpop.f32.mrb[59].mxu1 }
 0xdb9   : > { %v2226_v15 = vmul.f32 %v2224_v8, %v2224_v8  ;;  %v2225_v16 = vmax.f32 %v2176_v9, 0.0 }
 0xdba   : > { %v2235_v17 = vmul.f32 %v2233_v12, %v2233_v12  ;;  %v2234_v18 = vmax.f32 %v2221_v13, 0.0 }
 0xdbb   : > { %v2227_v19 = vmul.f32 %v2225_v16, %v2225_v16  ;;  %v2228_v21 = vadd.f32 %v2226_v15, %v2099_v53 }
 0xdbc   : > { %v2236_v20 = vmul.f32 %v2234_v18, %v2234_v18  ;;  %v2237_v23 = vadd.f32 %v2235_v17, %v2108_v55 }
 0xdbd   : > { %v2229_v22 = vadd.f32 %v2227_v19, %v2100_v54 }
 0xdbe   : > { %v2238_v24 = vadd.f32 %v2236_v20, %v2109_v56 }
 0xdbf   : > { %v2230_v25 = vpack.c.bf16 %v2229_v22, %v2228_v21 }
 0xdc0   : > { %v2239_v26 = vpack.c.bf16 %v2238_v24, %v2237_v23 }
 0xdc1   : > { %2232 = vst.msk [vmem:[#allocation2] sm:$0xff] %vm2231_vm1, %v2230_v25 }
 0xdc2   : > { %2240 = vst.msk [vmem:[#allocation2 + $0x8] sm:$0xff] %vm2231_vm1, %v2239_v26  ;;  %vm4037_vm1 = vcmask 236768  }
 0xdc8   : > { %v2241_v27 = vld [vmem:[#allocation2] sm:$0xff] }
 0xdc9   : > { %5259 = vmatmul.mubr.msk.bf16.vlgmr.msra.gmra.mrb[60].mxu0 %vm366_vm2, %v2241_v27  ;;  %v2308_v28 = vld [vmem:[#allocation2 + $0x8] sm:$0xff] }
 0xdca   : > { %5267 = vmatmul.mubr.msk.bf16.vlgmr.msra.gmra.mrb[60].mxu1 %vm366_vm2, %v2308_v28  ;;  %5274 = vmatprep.mubr.msk.bf16.mxu0 %vm5677_vm0, %v5676_v0  ;;  %v5601_v28 = vld [vmem:[#allocation3 + $0x110] sm:$0xff]  }
 0xdcb   : > { %5282 = vmatprep.mubr.msk.bf16.mxu1 %vm5677_vm0, %v5676_v0  ;;  %5271 = vmatpush3.bf16.msra.mxu0 %v5597_v29 }
 0xdcc   : > { %5279 = vmatpush3.bf16.msra.mxu1 %v5597_v29  ;;  %5272 = vmatprep.subr.bf16.mxu0 %v5676_v0  ;;  %v5602_v29 = vld [vmem:[#allocation3 + $0x118] sm:$0xff]  }
 0xdcd   : > { %5280 = vmatprep.subr.bf16.mxu1 %v5676_v0 }
 0xdcf   : > { %5273 = vmatpush3.bf16.msra.mxu0 %v5598_v30 }
 0xdd0   : > { %5281 = vmatpush3.bf16.msra.mxu1 %v5598_v30  ;;  %5286 = vmatprep.subr.bf16.mxu0 %v5676_v0  ;;  %v4737_v30 = vld [vmem:[%s6233_s4 + $0x10] ss:$0 sm:$0xff] }
 0xdd1   : > { %5294 = vmatprep.subr.bf16.mxu1 %v5676_v0 }
 0xe9c   : > { %v2301_v32 = vpop.f32.mrb[60].mxu0 }
 0xe9d   : > { %v2302_v33 = vadd.f32 %v4727_v31, %v2301_v32  ;;  %v2346_v34 = vpop.f32.mrb[60].mxu1  ;;  %v5260_v35 = vpop.f32.mrb[61].mxu0 }
 0xe9e   : > { %v2347_v36 = vadd.f32 %v4727_v31, %v2346_v34  ;;  %v5268_v37 = vpop.f32.mrb[61].mxu1  ;;  %v2304_v38 = vpop.f32.mrb[62].mxu0 }
 0xe9f   : > { %v2353_v39 = vmax.f32 %v2302_v33, 0.0  ;;  %v2305_v40 = vadd.f32 %v4727_v31, %v2304_v38  ;;  %v2349_v41 = vpop.f32.mrb[62].mxu1  ;;  %v5261_v42 = vpop.f32.mrb[63].mxu0 }
 0xea0   : > { %v2362_v43 = vmax.f32 %v2347_v36, 0.0  ;;  %v2350_v44 = vadd.f32 %v4727_v31, %v2349_v41  ;;  %v5269_v45 = vpop.f32.mrb[63].mxu1 }
 0xea1   : > { %v2355_v46 = vmul.f32 %v2353_v39, %v2353_v39  ;;  %v2354_v47 = vmax.f32 %v2305_v40, 0.0 }
 0xea2   : > { %v2364_v48 = vmul.f32 %v2362_v43, %v2362_v43  ;;  %v2363_v49 = vmax.f32 %v2350_v44, 0.0 }
 0xea3   : > { %v2356_v50 = vmul.f32 %v2354_v47, %v2354_v47  ;;  %v2357_v52 = vadd.f32 %v2355_v46, %v2228_v21 }
 0xea4   : > { %v2365_v51 = vmul.f32 %v2363_v49, %v2363_v49  ;;  %v2366_v54 = vadd.f32 %v2364_v48, %v2237_v23 }
 0xea5   : > { %v2358_v53 = vadd.f32 %v2356_v50, %v2229_v22 }
 0xea6   : > { %v2367_v55 = vadd.f32 %v2365_v51, %v2238_v24 }
 0xea7   : > { %v2359_v56 = vpack.c.bf16 %v2358_v53, %v2357_v52 }
 0xea8   : > { %v2368_v57 = vpack.c.bf16 %v2367_v55, %v2366_v54 }
 0xea9   : > { %2361 = vst.msk [vmem:[#allocation2] sm:$0xff] %vm2360_vm3, %v2359_v56 }
 0xeaa   : > { %2369 = vst.msk [vmem:[#allocation2 + $0x8] sm:$0xff] %vm2360_vm3, %v2368_v57  ;;  %vm4166_vm3 = vcmask 244968  }
 0xeb0   : > { %v2370_v58 = vld [vmem:[#allocation2] sm:$0xff] }
 0xeb1   : > { %5275 = vmatmul.mubr.msk.bf16.vlgmr.msra.gmra.mrb[64].mxu0 %vm366_vm2, %v2370_v58  ;;  %v2437_v59 = vld [vmem:[#allocation2 + $0x8] sm:$0xff] }
 0xeb2   : > { %5283 = vmatmul.mubr.msk.bf16.vlgmr.msra.gmra.mrb[64].mxu1 %vm366_vm2, %v2437_v59  ;;  %5290 = vmatprep.mubr.msk.bf16.mxu0 %vm5677_vm0, %v5676_v0  ;;  %v5603_v59 = vld [vmem:[#allocation3 + $0x120] sm:$0xff]  }
 0xeb3   : > { %5298 = vmatprep.mubr.msk.bf16.mxu1 %vm5677_vm0, %v5676_v0  ;;  %5287 = vmatpush3.bf16.msra.mxu0 %v5599_v60 }
 0xeb4   : > { %5295 = vmatpush3.bf16.msra.mxu1 %v5599_v60  ;;  %5288 = vmatprep.subr.bf16.mxu0 %v5676_v0  ;;  %v5604_v60 = vld [vmem:[#allocation3 + $0x128] sm:$0xff]  }
 0xeb5   : > { %5296 = vmatprep.subr.bf16.mxu1 %v5676_v0 }
 0xeb7   : > { %5289 = vmatpush3.bf16.msra.mxu0 %v5600_v61 }
 0xeb8   : > { %5297 = vmatpush3.bf16.msra.mxu1 %v5600_v61  ;;  %5302 = vmatprep.subr.bf16.mxu0 %v5676_v0  ;;  %v4742_v61 = vld [vmem:[%s6233_s4 + $0x11] ss:$0 sm:$0xff] }
 0xeb9   : > { %5310 = vmatprep.subr.bf16.mxu1 %v5676_v0 }
 0xf84   : > { %v2430_v63 = vpop.f32.mrb[64].mxu0 }
 0xf85   : > { %v2431_v1 = vadd.f32 %v4732_v62, %v2430_v63  ;;  %v2475_v2 = vpop.f32.mrb[64].mxu1  ;;  %v5276_v3 = vpop.f32.mrb[65].mxu0 }
 0xf86   : > { %v2476_v4 = vadd.f32 %v4732_v62, %v2475_v2  ;;  %v5284_v5 = vpop.f32.mrb[65].mxu1  ;;  %v2433_v6 = vpop.f32.mrb[66].mxu0 }
 0xf87   : > { %v2482_v7 = vmax.f32 %v2431_v1, 0.0  ;;  %v2434_v8 = vadd.f32 %v4732_v62, %v2433_v6  ;;  %v2478_v9 = vpop.f32.mrb[66].mxu1  ;;  %v5277_v10 = vpop.f32.mrb[67].mxu0 }
 0xf88   : > { %v2491_v11 = vmax.f32 %v2476_v4, 0.0  ;;  %v2479_v12 = vadd.f32 %v4732_v62, %v2478_v9  ;;  %v5285_v13 = vpop.f32.mrb[67].mxu1 }
 0xf89   : > { %v2484_v14 = vmul.f32 %v2482_v7, %v2482_v7  ;;  %v2483_v15 = vmax.f32 %v2434_v8, 0.0 }
 0xf8a   : > { %v2493_v16 = vmul.f32 %v2491_v11, %v2491_v11  ;;  %v2492_v17 = vmax.f32 %v2479_v12, 0.0 }
 0xf8b   : > { %v2485_v18 = vmul.f32 %v2483_v15, %v2483_v15  ;;  %v2486_v20 = vadd.f32 %v2484_v14, %v2357_v52 }
 0xf8c   : > { %v2494_v19 = vmul.f32 %v2492_v17, %v2492_v17  ;;  %v2495_v22 = vadd.f32 %v2493_v16, %v2366_v54 }
 0xf8d   : > { %v2487_v21 = vadd.f32 %v2485_v18, %v2358_v53 }
 0xf8e   : > { %v2496_v23 = vadd.f32 %v2494_v19, %v2367_v55 }
 0xf8f   : > { %v2488_v24 = vpack.c.bf16 %v2487_v21, %v2486_v20 }
 0xf90   : > { %v2497_v25 = vpack.c.bf16 %v2496_v23, %v2495_v22 }
 0xf91   : > { %2490 = vst.msk [vmem:[#allocation2] sm:$0xff] %vm2489_vm4, %v2488_v24 }
 0xf92   : > { %2498 = vst.msk [vmem:[#allocation2 + $0x8] sm:$0xff] %vm2489_vm4, %v2497_v25  ;;  %vm4295_vm4 = vcmask 253168  }
 0xf98   : > { %v2499_v26 = vld [vmem:[#allocation2] sm:$0xff] }
 0xf99   : > { %5291 = vmatmul.mubr.msk.bf16.vlgmr.msra.gmra.mrb[68].mxu0 %vm366_vm2, %v2499_v26  ;;  %v2566_v27 = vld [vmem:[#allocation2 + $0x8] sm:$0xff] }
 0xf9a   : > { %5299 = vmatmul.mubr.msk.bf16.vlgmr.msra.gmra.mrb[68].mxu1 %vm366_vm2, %v2566_v27  ;;  %5306 = vmatprep.mubr.msk.bf16.mxu0 %vm5677_vm0, %v5676_v0  ;;  %v5605_v27 = vld [vmem:[#allocation3 + $0x130] sm:$0xff]  }
 0xf9b   : > { %5314 = vmatprep.mubr.msk.bf16.mxu1 %vm5677_vm0, %v5676_v0  ;;  %5303 = vmatpush3.bf16.msra.mxu0 %v5601_v28 }
 0xf9c   : > { %5311 = vmatpush3.bf16.msra.mxu1 %v5601_v28  ;;  %5304 = vmatprep.subr.bf16.mxu0 %v5676_v0  ;;  %v5606_v28 = vld [vmem:[#allocation3 + $0x138] sm:$0xff]  }
 0xf9d   : > { %5312 = vmatprep.subr.bf16.mxu1 %v5676_v0 }
 0xf9f   : > { %5305 = vmatpush3.bf16.msra.mxu0 %v5602_v29 }
 0xfa0   : > { %5313 = vmatpush3.bf16.msra.mxu1 %v5602_v29  ;;  %5318 = vmatprep.subr.bf16.mxu0 %v5676_v0  ;;  %v4747_v29 = vld [vmem:[%s6233_s4 + $0x12] ss:$0 sm:$0xff] }
 0xfa1   : > { %5326 = vmatprep.subr.bf16.mxu1 %v5676_v0 }
0x106c   : > { %v2559_v31 = vpop.f32.mrb[68].mxu0 }
0x106d   : > { %v2560_v32 = vadd.f32 %v4737_v30, %v2559_v31  ;;  %v2604_v33 = vpop.f32.mrb[68].mxu1  ;;  %v5292_v34 = vpop.f32.mrb[69].mxu0 }
0x106e   : > { %v2605_v35 = vadd.f32 %v4737_v30, %v2604_v33  ;;  %v5300_v36 = vpop.f32.mrb[69].mxu1  ;;  %v2562_v37 = vpop.f32.mrb[70].mxu0 }
0x106f   : > { %v2611_v38 = vmax.f32 %v2560_v32, 0.0  ;;  %v2563_v39 = vadd.f32 %v4737_v30, %v2562_v37  ;;  %v2607_v40 = vpop.f32.mrb[70].mxu1  ;;  %v5293_v41 = vpop.f32.mrb[71].mxu0 }
0x1070   : > { %v2620_v42 = vmax.f32 %v2605_v35, 0.0  ;;  %v2608_v43 = vadd.f32 %v4737_v30, %v2607_v40  ;;  %v5301_v44 = vpop.f32.mrb[71].mxu1 }
0x1071   : > { %v2613_v45 = vmul.f32 %v2611_v38, %v2611_v38  ;;  %v2612_v46 = vmax.f32 %v2563_v39, 0.0 }
0x1072   : > { %v2622_v47 = vmul.f32 %v2620_v42, %v2620_v42  ;;  %v2621_v48 = vmax.f32 %v2608_v43, 0.0 }
0x1073   : > { %v2614_v49 = vmul.f32 %v2612_v46, %v2612_v46  ;;  %v2615_v51 = vadd.f32 %v2613_v45, %v2486_v20 }
0x1074   : > { %v2623_v50 = vmul.f32 %v2621_v48, %v2621_v48  ;;  %v2624_v53 = vadd.f32 %v2622_v47, %v2495_v22 }
0x1075   : > { %v2616_v52 = vadd.f32 %v2614_v49, %v2487_v21 }
0x1076   : > { %v2625_v54 = vadd.f32 %v2623_v50, %v2496_v23 }
0x1077   : > { %v2617_v55 = vpack.c.bf16 %v2616_v52, %v2615_v51 }
0x1078   : > { %v2626_v56 = vpack.c.bf16 %v2625_v54, %v2624_v53 }
0x1079   : > { %2619 = vst.msk [vmem:[#allocation2] sm:$0xff] %vm2618_vm5, %v2617_v55 }
0x107a   : > { %2627 = vst.msk [vmem:[#allocation2 + $0x8] sm:$0xff] %vm2618_vm5, %v2626_v56 }
0x1080   : > { %v2628_v57 = vld [vmem:[#allocation2] sm:$0xff] }
0x1081   : > { %5307 = vmatmul.mubr.msk.bf16.vlgmr.msra.gmra.mrb[72].mxu0 %vm366_vm2, %v2628_v57  ;;  %v2695_v58 = vld [vmem:[#allocation2 + $0x8] sm:$0xff] }
0x1082   : > { %5315 = vmatmul.mubr.msk.bf16.vlgmr.msra.gmra.mrb[72].mxu1 %vm366_vm2, %v2695_v58  ;;  %5322 = vmatprep.mubr.msk.bf16.mxu0 %vm5677_vm0, %v5676_v0  ;;  %v5607_v58 = vld [vmem:[#allocation3 + $0x140] sm:$0xff]  }
0x1083   : > { %5330 = vmatprep.mubr.msk.bf16.mxu1 %vm5677_vm0, %v5676_v0  ;;  %5319 = vmatpush3.bf16.msra.mxu0 %v5603_v59 }
0x1084   : > { %5327 = vmatpush3.bf16.msra.mxu1 %v5603_v59  ;;  %5320 = vmatprep.subr.bf16.mxu0 %v5676_v0  ;;  %v5608_v59 = vld [vmem:[#allocation3 + $0x148] sm:$0xff]  }
0x1085   : > { %5328 = vmatprep.subr.bf16.mxu1 %v5676_v0 }
0x1087   : > { %5321 = vmatpush3.bf16.msra.mxu0 %v5604_v60 }
0x1088   : > { %5329 = vmatpush3.bf16.msra.mxu1 %v5604_v60  ;;  %5334 = vmatprep.subr.bf16.mxu0 %v5676_v0  ;;  %v4752_v60 = vld [vmem:[%s6233_s4 + $0x13] ss:$0 sm:$0xff] }
0x1089   : > { %5342 = vmatprep.subr.bf16.mxu1 %v5676_v0 }
0x1154   : > { %v2688_v62 = vpop.f32.mrb[72].mxu0 }
0x1155   : > { %v2689_v63 = vadd.f32 %v4742_v61, %v2688_v62  ;;  %v2733_v1 = vpop.f32.mrb[72].mxu1  ;;  %v5308_v2 = vpop.f32.mrb[73].mxu0 }
0x1156   : > { %v2734_v3 = vadd.f32 %v4742_v61, %v2733_v1  ;;  %v5316_v4 = vpop.f32.mrb[73].mxu1  ;;  %v2691_v5 = vpop.f32.mrb[74].mxu0 }
0x1157   : > { %v2740_v6 = vmax.f32 %v2689_v63, 0.0  ;;  %v2692_v7 = vadd.f32 %v4742_v61, %v2691_v5  ;;  %v2736_v8 = vpop.f32.mrb[74].mxu1  ;;  %v5309_v9 = vpop.f32.mrb[75].mxu0 }
0x1158   : > { %v2749_v10 = vmax.f32 %v2734_v3, 0.0  ;;  %v2737_v11 = vadd.f32 %v4742_v61, %v2736_v8  ;;  %v5317_v12 = vpop.f32.mrb[75].mxu1 }
0x1159   : > { %v2742_v13 = vmul.f32 %v2740_v6, %v2740_v6  ;;  %v2741_v14 = vmax.f32 %v2692_v7, 0.0 }
0x115a   : > { %v2751_v15 = vmul.f32 %v2749_v10, %v2749_v10  ;;  %v2750_v16 = vmax.f32 %v2737_v11, 0.0 }
0x115b   : > { %v2743_v17 = vmul.f32 %v2741_v14, %v2741_v14  ;;  %v2744_v19 = vadd.f32 %v2742_v13, %v2615_v51 }
0x115c   : > { %v2752_v18 = vmul.f32 %v2750_v16, %v2750_v16  ;;  %v2753_v21 = vadd.f32 %v2751_v15, %v2624_v53 }
0x115d   : > { %v2745_v20 = vadd.f32 %v2743_v17, %v2616_v52 }
0x115e   : > { %v2754_v22 = vadd.f32 %v2752_v18, %v2625_v54 }
0x115f   : > { %v2746_v23 = vpack.c.bf16 %v2745_v20, %v2744_v19 }
0x1160   : > { %v2755_v24 = vpack.c.bf16 %v2754_v22, %v2753_v21 }
0x1161   : > { %2748 = vst.msk [vmem:[#allocation2] sm:$0xff] %vm2747_vm6, %v2746_v23 }
0x1162   : > { %2756 = vst.msk [vmem:[#allocation2 + $0x8] sm:$0xff] %vm2747_vm6, %v2755_v24 }
0x1168   : > { %v2757_v25 = vld [vmem:[#allocation2] sm:$0xff] }
0x1169   : > { %5323 = vmatmul.mubr.msk.bf16.vlgmr.msra.gmra.mrb[76].mxu0 %vm366_vm2, %v2757_v25  ;;  %v2824_v26 = vld [vmem:[#allocation2 + $0x8] sm:$0xff] }
0x116a   : > { %5331 = vmatmul.mubr.msk.bf16.vlgmr.msra.gmra.mrb[76].mxu1 %vm366_vm2, %v2824_v26  ;;  %5338 = vmatprep.mubr.msk.bf16.mxu0 %vm5677_vm0, %v5676_v0  ;;  %v5609_v26 = vld [vmem:[#allocation3 + $0x150] sm:$0xff]  }
0x116b   : > { %5346 = vmatprep.mubr.msk.bf16.mxu1 %vm5677_vm0, %v5676_v0  ;;  %5335 = vmatpush3.bf16.msra.mxu0 %v5605_v27 }
0x116c   : > { %5343 = vmatpush3.bf16.msra.mxu1 %v5605_v27  ;;  %5336 = vmatprep.subr.bf16.mxu0 %v5676_v0  ;;  %v5610_v27 = vld [vmem:[#allocation3 + $0x158] sm:$0xff]  }
0x116d   : > { %5344 = vmatprep.subr.bf16.mxu1 %v5676_v0 }
0x116f   : > { %5337 = vmatpush3.bf16.msra.mxu0 %v5606_v28 }
0x1170   : > { %5345 = vmatpush3.bf16.msra.mxu1 %v5606_v28  ;;  %5350 = vmatprep.subr.bf16.mxu0 %v5676_v0  ;;  %v4757_v28 = vld [vmem:[%s6233_s4 + $0x14] ss:$0 sm:$0xff] }
0x1171   : > { %5358 = vmatprep.subr.bf16.mxu1 %v5676_v0 }
0x123c   : > { %v2817_v30 = vpop.f32.mrb[76].mxu0 }
0x123d   : > { %v2818_v31 = vadd.f32 %v4747_v29, %v2817_v30  ;;  %v2862_v32 = vpop.f32.mrb[76].mxu1  ;;  %v5324_v33 = vpop.f32.mrb[77].mxu0 }
0x123e   : > { %v2863_v34 = vadd.f32 %v4747_v29, %v2862_v32  ;;  %v5332_v35 = vpop.f32.mrb[77].mxu1  ;;  %v2820_v36 = vpop.f32.mrb[78].mxu0 }
0x123f   : > { %v2869_v37 = vmax.f32 %v2818_v31, 0.0  ;;  %v2821_v38 = vadd.f32 %v4747_v29, %v2820_v36  ;;  %v2865_v39 = vpop.f32.mrb[78].mxu1  ;;  %v5325_v40 = vpop.f32.mrb[79].mxu0 }
0x1240   : > { %v2878_v41 = vmax.f32 %v2863_v34, 0.0  ;;  %v2866_v42 = vadd.f32 %v4747_v29, %v2865_v39  ;;  %v5333_v43 = vpop.f32.mrb[79].mxu1 }
0x1241   : > { %v2871_v44 = vmul.f32 %v2869_v37, %v2869_v37  ;;  %v2870_v45 = vmax.f32 %v2821_v38, 0.0 }
0x1242   : > { %v2880_v46 = vmul.f32 %v2878_v41, %v2878_v41  ;;  %v2879_v47 = vmax.f32 %v2866_v42, 0.0 }
0x1243   : > { %v2872_v48 = vmul.f32 %v2870_v45, %v2870_v45  ;;  %v2873_v50 = vadd.f32 %v2871_v44, %v2744_v19 }
0x1244   : > { %v2881_v49 = vmul.f32 %v2879_v47, %v2879_v47  ;;  %v2882_v52 = vadd.f32 %v2880_v46, %v2753_v21 }
0x1245   : > { %v2874_v51 = vadd.f32 %v2872_v48, %v2745_v20 }
0x1246   : > { %v2883_v53 = vadd.f32 %v2881_v49, %v2754_v22 }
0x1247   : > { %v2875_v54 = vpack.c.bf16 %v2874_v51, %v2873_v50 }
0x1248   : > { %v2884_v55 = vpack.c.bf16 %v2883_v53, %v2882_v52 }
0x1249   : > { %2877 = vst.msk [vmem:[#allocation2] sm:$0xff] %vm2876_vm7, %v2875_v54 }
0x124a   : > { %2885 = vst.msk [vmem:[#allocation2 + $0x8] sm:$0xff] %vm2876_vm7, %v2884_v55 }
0x1250   : > { %v2886_v56 = vld [vmem:[#allocation2] sm:$0xff] }
0x1251   : > { %5339 = vmatmul.mubr.msk.bf16.vlgmr.msra.gmra.mrb[80].mxu0 %vm366_vm2, %v2886_v56  ;;  %v2953_v57 = vld [vmem:[#allocation2 + $0x8] sm:$0xff] }
0x1252   : > { %5347 = vmatmul.mubr.msk.bf16.vlgmr.msra.gmra.mrb[80].mxu1 %vm366_vm2, %v2953_v57  ;;  %5354 = vmatprep.mubr.msk.bf16.mxu0 %vm5677_vm0, %v5676_v0  ;;  %v5611_v57 = vld [vmem:[#allocation3 + $0x160] sm:$0xff]  }
0x1253   : > { %5362 = vmatprep.mubr.msk.bf16.mxu1 %vm5677_vm0, %v5676_v0  ;;  %5351 = vmatpush3.bf16.msra.mxu0 %v5607_v58 }
0x1254   : > { %5359 = vmatpush3.bf16.msra.mxu1 %v5607_v58  ;;  %5352 = vmatprep.subr.bf16.mxu0 %v5676_v0  ;;  %v5612_v58 = vld [vmem:[#allocation3 + $0x168] sm:$0xff]  }
0x1255   : > { %5360 = vmatprep.subr.bf16.mxu1 %v5676_v0 }
0x1257   : > { %5353 = vmatpush3.bf16.msra.mxu0 %v5608_v59 }
0x1258   : > { %5361 = vmatpush3.bf16.msra.mxu1 %v5608_v59  ;;  %5366 = vmatprep.subr.bf16.mxu0 %v5676_v0  ;;  %v4762_v59 = vld [vmem:[%s6233_s4 + $0x15] ss:$0 sm:$0xff] }
0x1259   : > { %5374 = vmatprep.subr.bf16.mxu1 %v5676_v0 }
0x1324   : > { %v2946_v61 = vpop.f32.mrb[80].mxu0 }
0x1325   : > { %v2947_v62 = vadd.f32 %v4752_v60, %v2946_v61  ;;  %v2991_v63 = vpop.f32.mrb[80].mxu1  ;;  %v5340_v1 = vpop.f32.mrb[81].mxu0 }
0x1326   : > { %v2992_v2 = vadd.f32 %v4752_v60, %v2991_v63  ;;  %v5348_v3 = vpop.f32.mrb[81].mxu1  ;;  %v2949_v4 = vpop.f32.mrb[82].mxu0 }
0x1327   : > { %v2998_v5 = vmax.f32 %v2947_v62, 0.0  ;;  %v2950_v6 = vadd.f32 %v4752_v60, %v2949_v4  ;;  %v2994_v7 = vpop.f32.mrb[82].mxu1  ;;  %v5341_v8 = vpop.f32.mrb[83].mxu0 }
0x1328   : > { %v3007_v9 = vmax.f32 %v2992_v2, 0.0  ;;  %v2995_v10 = vadd.f32 %v4752_v60, %v2994_v7  ;;  %v5349_v11 = vpop.f32.mrb[83].mxu1 }
0x1329   : > { %v3000_v12 = vmul.f32 %v2998_v5, %v2998_v5  ;;  %v2999_v13 = vmax.f32 %v2950_v6, 0.0 }
0x132a   : > { %v3009_v14 = vmul.f32 %v3007_v9, %v3007_v9  ;;  %v3008_v15 = vmax.f32 %v2995_v10, 0.0 }
0x132b   : > { %v3001_v16 = vmul.f32 %v2999_v13, %v2999_v13  ;;  %v3002_v18 = vadd.f32 %v3000_v12, %v2873_v50 }
0x132c   : > { %v3010_v17 = vmul.f32 %v3008_v15, %v3008_v15  ;;  %v3011_v20 = vadd.f32 %v3009_v14, %v2882_v52 }
0x132d   : > { %v3003_v19 = vadd.f32 %v3001_v16, %v2874_v51 }
0x132e   : > { %v3012_v21 = vadd.f32 %v3010_v17, %v2883_v53 }
0x132f   : > { %v3004_v22 = vpack.c.bf16 %v3003_v19, %v3002_v18 }
0x1330   : > { %v3013_v23 = vpack.c.bf16 %v3012_v21, %v3011_v20 }
0x1331   : > { %3006 = vst.msk [vmem:[#allocation2] sm:$0xff] %vm3005_vm8, %v3004_v22 }
0x1332   : > { %3014 = vst.msk [vmem:[#allocation2 + $0x8] sm:$0xff] %vm3005_vm8, %v3013_v23 }
0x1338   : > { %v3015_v24 = vld [vmem:[#allocation2] sm:$0xff] }
0x1339   : > { %5355 = vmatmul.mubr.msk.bf16.vlgmr.msra.gmra.mrb[84].mxu0 %vm366_vm2, %v3015_v24  ;;  %v3082_v25 = vld [vmem:[#allocation2 + $0x8] sm:$0xff] }
0x133a   : > { %5363 = vmatmul.mubr.msk.bf16.vlgmr.msra.gmra.mrb[84].mxu1 %vm366_vm2, %v3082_v25  ;;  %5370 = vmatprep.mubr.msk.bf16.mxu0 %vm5677_vm0, %v5676_v0  ;;  %v5613_v25 = vld [vmem:[#allocation3 + $0x170] sm:$0xff]  }
0x133b   : > { %5378 = vmatprep.mubr.msk.bf16.mxu1 %vm5677_vm0, %v5676_v0  ;;  %5367 = vmatpush3.bf16.msra.mxu0 %v5609_v26 }
0x133c   : > { %5375 = vmatpush3.bf16.msra.mxu1 %v5609_v26  ;;  %5368 = vmatprep.subr.bf16.mxu0 %v5676_v0  ;;  %v5614_v26 = vld [vmem:[#allocation3 + $0x178] sm:$0xff]  }
0x133d   : > { %5376 = vmatprep.subr.bf16.mxu1 %v5676_v0 }
0x133f   : > { %5369 = vmatpush3.bf16.msra.mxu0 %v5610_v27 }
0x1340   : > { %5377 = vmatpush3.bf16.msra.mxu1 %v5610_v27  ;;  %5382 = vmatprep.subr.bf16.mxu0 %v5676_v0  ;;  %v4767_v27 = vld [vmem:[%s6233_s4 + $0x16] ss:$0 sm:$0xff] }
0x1341   : > { %5390 = vmatprep.subr.bf16.mxu1 %v5676_v0 }
0x140c   : > { %v3075_v29 = vpop.f32.mrb[84].mxu0 }
0x140d   : > { %v3076_v30 = vadd.f32 %v4757_v28, %v3075_v29  ;;  %v3120_v31 = vpop.f32.mrb[84].mxu1  ;;  %v5356_v32 = vpop.f32.mrb[85].mxu0 }
0x140e   : > { %v3121_v33 = vadd.f32 %v4757_v28, %v3120_v31  ;;  %v5364_v34 = vpop.f32.mrb[85].mxu1  ;;  %v3078_v35 = vpop.f32.mrb[86].mxu0 }
0x140f   : > { %v3127_v36 = vmax.f32 %v3076_v30, 0.0  ;;  %v3079_v37 = vadd.f32 %v4757_v28, %v3078_v35  ;;  %v3123_v38 = vpop.f32.mrb[86].mxu1  ;;  %v5357_v39 = vpop.f32.mrb[87].mxu0 }
0x1410   : > { %v3136_v40 = vmax.f32 %v3121_v33, 0.0  ;;  %v3124_v41 = vadd.f32 %v4757_v28, %v3123_v38  ;;  %v5365_v42 = vpop.f32.mrb[87].mxu1 }
0x1411   : > { %v3129_v43 = vmul.f32 %v3127_v36, %v3127_v36  ;;  %v3128_v44 = vmax.f32 %v3079_v37, 0.0 }
0x1412   : > { %v3138_v45 = vmul.f32 %v3136_v40, %v3136_v40  ;;  %v3137_v46 = vmax.f32 %v3124_v41, 0.0 }
0x1413   : > { %v3130_v47 = vmul.f32 %v3128_v44, %v3128_v44  ;;  %v3131_v49 = vadd.f32 %v3129_v43, %v3002_v18 }
0x1414   : > { %v3139_v48 = vmul.f32 %v3137_v46, %v3137_v46  ;;  %v3140_v51 = vadd.f32 %v3138_v45, %v3011_v20 }
0x1415   : > { %v3132_v50 = vadd.f32 %v3130_v47, %v3003_v19 }
0x1416   : > { %v3141_v52 = vadd.f32 %v3139_v48, %v3012_v21 }
0x1417   : > { %v3133_v53 = vpack.c.bf16 %v3132_v50, %v3131_v49 }
0x1418   : > { %v3142_v54 = vpack.c.bf16 %v3141_v52, %v3140_v51 }
0x1419   : > { %3135 = vst.msk [vmem:[#allocation2] sm:$0xff] %vm3134_vm9, %v3133_v53 }
0x141a   : > { %3143 = vst.msk [vmem:[#allocation2 + $0x8] sm:$0xff] %vm3134_vm9, %v3142_v54 }
0x1420   : > { %v3144_v55 = vld [vmem:[#allocation2] sm:$0xff] }
0x1421   : > { %5371 = vmatmul.mubr.msk.bf16.vlgmr.msra.gmra.mrb[88].mxu0 %vm366_vm2, %v3144_v55  ;;  %v3211_v56 = vld [vmem:[#allocation2 + $0x8] sm:$0xff] }
0x1422   : > { %5379 = vmatmul.mubr.msk.bf16.vlgmr.msra.gmra.mrb[88].mxu1 %vm366_vm2, %v3211_v56  ;;  %5386 = vmatprep.mubr.msk.bf16.mxu0 %vm5677_vm0, %v5676_v0  ;;  %v5615_v56 = vld [vmem:[#allocation3 + $0x180] sm:$0xff]  }
0x1423   : > { %5394 = vmatprep.mubr.msk.bf16.mxu1 %vm5677_vm0, %v5676_v0  ;;  %5383 = vmatpush3.bf16.msra.mxu0 %v5611_v57 }
0x1424   : > { %5391 = vmatpush3.bf16.msra.mxu1 %v5611_v57  ;;  %5384 = vmatprep.subr.bf16.mxu0 %v5676_v0  ;;  %v5616_v57 = vld [vmem:[#allocation3 + $0x188] sm:$0xff]  }
0x1425   : > { %5392 = vmatprep.subr.bf16.mxu1 %v5676_v0 }
0x1427   : > { %5385 = vmatpush3.bf16.msra.mxu0 %v5612_v58 }
0x1428   : > { %5393 = vmatpush3.bf16.msra.mxu1 %v5612_v58  ;;  %5398 = vmatprep.subr.bf16.mxu0 %v5676_v0  ;;  %v4772_v58 = vld [vmem:[%s6233_s4 + $0x17] ss:$0 sm:$0xff] }
0x1429   : > { %5406 = vmatprep.subr.bf16.mxu1 %v5676_v0 }
0x14f4   : > { %v3204_v60 = vpop.f32.mrb[88].mxu0 }
0x14f5   : > { %v3205_v61 = vadd.f32 %v4762_v59, %v3204_v60  ;;  %v3249_v62 = vpop.f32.mrb[88].mxu1  ;;  %v5372_v63 = vpop.f32.mrb[89].mxu0 }
0x14f6   : > { %v3250_v1 = vadd.f32 %v4762_v59, %v3249_v62  ;;  %v5380_v2 = vpop.f32.mrb[89].mxu1  ;;  %v3207_v3 = vpop.f32.mrb[90].mxu0 }
0x14f7   : > { %v3256_v4 = vmax.f32 %v3205_v61, 0.0  ;;  %v3208_v5 = vadd.f32 %v4762_v59, %v3207_v3  ;;  %v3252_v6 = vpop.f32.mrb[90].mxu1  ;;  %v5373_v7 = vpop.f32.mrb[91].mxu0 }
0x14f8   : > { %v3265_v8 = vmax.f32 %v3250_v1, 0.0  ;;  %v3253_v9 = vadd.f32 %v4762_v59, %v3252_v6  ;;  %v5381_v10 = vpop.f32.mrb[91].mxu1 }
0x14f9   : > { %v3258_v11 = vmul.f32 %v3256_v4, %v3256_v4  ;;  %v3257_v12 = vmax.f32 %v3208_v5, 0.0 }
0x14fa   : > { %v3267_v13 = vmul.f32 %v3265_v8, %v3265_v8  ;;  %v3266_v14 = vmax.f32 %v3253_v9, 0.0 }
0x14fb   : > { %v3259_v15 = vmul.f32 %v3257_v12, %v3257_v12  ;;  %v3260_v17 = vadd.f32 %v3258_v11, %v3131_v49 }
0x14fc   : > { %v3268_v16 = vmul.f32 %v3266_v14, %v3266_v14  ;;  %v3269_v19 = vadd.f32 %v3267_v13, %v3140_v51 }
0x14fd   : > { %v3261_v18 = vadd.f32 %v3259_v15, %v3132_v50 }
0x14fe   : > { %v3270_v20 = vadd.f32 %v3268_v16, %v3141_v52 }
0x14ff   : > { %v3262_v21 = vpack.c.bf16 %v3261_v18, %v3260_v17 }
0x1500   : > { %v3271_v22 = vpack.c.bf16 %v3270_v20, %v3269_v19 }
0x1501   : > { %3264 = vst.msk [vmem:[#allocation2] sm:$0xff] %vm3263_vm10, %v3262_v21 }
0x1502   : > { %3272 = vst.msk [vmem:[#allocation2 + $0x8] sm:$0xff] %vm3263_vm10, %v3271_v22 }
0x1508   : > { %v3273_v23 = vld [vmem:[#allocation2] sm:$0xff] }
0x1509   : > { %5387 = vmatmul.mubr.msk.bf16.vlgmr.msra.gmra.mrb[92].mxu0 %vm366_vm2, %v3273_v23  ;;  %v3340_v24 = vld [vmem:[#allocation2 + $0x8] sm:$0xff] }
0x150a   : > { %5395 = vmatmul.mubr.msk.bf16.vlgmr.msra.gmra.mrb[92].mxu1 %vm366_vm2, %v3340_v24  ;;  %5402 = vmatprep.mubr.msk.bf16.mxu0 %vm5677_vm0, %v5676_v0  ;;  %v5617_v24 = vld [vmem:[#allocation3 + $0x190] sm:$0xff]  }
0x150b   : > { %5410 = vmatprep.mubr.msk.bf16.mxu1 %vm5677_vm0, %v5676_v0  ;;  %5399 = vmatpush3.bf16.msra.mxu0 %v5613_v25 }
0x150c   : > { %5407 = vmatpush3.bf16.msra.mxu1 %v5613_v25  ;;  %5400 = vmatprep.subr.bf16.mxu0 %v5676_v0  ;;  %v5618_v25 = vld [vmem:[#allocation3 + $0x198] sm:$0xff]  }
0x150d   : > { %5408 = vmatprep.subr.bf16.mxu1 %v5676_v0 }
0x150f   : > { %5401 = vmatpush3.bf16.msra.mxu0 %v5614_v26 }
0x1510   : > { %5409 = vmatpush3.bf16.msra.mxu1 %v5614_v26  ;;  %5414 = vmatprep.subr.bf16.mxu0 %v5676_v0  ;;  %v4777_v26 = vld [vmem:[%s6233_s4 + $0x18] ss:$0 sm:$0xff] }
0x1511   : > { %5422 = vmatprep.subr.bf16.mxu1 %v5676_v0 }
0x15dc   : > { %v3333_v28 = vpop.f32.mrb[92].mxu0 }
0x15dd   : > { %v3334_v29 = vadd.f32 %v4767_v27, %v3333_v28  ;;  %v3378_v30 = vpop.f32.mrb[92].mxu1  ;;  %v5388_v31 = vpop.f32.mrb[93].mxu0 }
0x15de   : > { %v3379_v32 = vadd.f32 %v4767_v27, %v3378_v30  ;;  %v5396_v33 = vpop.f32.mrb[93].mxu1  ;;  %v3336_v34 = vpop.f32.mrb[94].mxu0 }
0x15df   : > { %v3385_v35 = vmax.f32 %v3334_v29, 0.0  ;;  %v3337_v36 = vadd.f32 %v4767_v27, %v3336_v34  ;;  %v3381_v37 = vpop.f32.mrb[94].mxu1  ;;  %v5389_v38 = vpop.f32.mrb[95].mxu0 }
0x15e0   : > { %v3394_v39 = vmax.f32 %v3379_v32, 0.0  ;;  %v3382_v40 = vadd.f32 %v4767_v27, %v3381_v37  ;;  %v5397_v41 = vpop.f32.mrb[95].mxu1 }
0x15e1   : > { %v3387_v42 = vmul.f32 %v3385_v35, %v3385_v35  ;;  %v3386_v43 = vmax.f32 %v3337_v36, 0.0 }
0x15e2   : > { %v3396_v44 = vmul.f32 %v3394_v39, %v3394_v39  ;;  %v3395_v45 = vmax.f32 %v3382_v40, 0.0 }
0x15e3   : > { %v3388_v46 = vmul.f32 %v3386_v43, %v3386_v43  ;;  %v3389_v48 = vadd.f32 %v3387_v42, %v3260_v17 }
0x15e4   : > { %v3397_v47 = vmul.f32 %v3395_v45, %v3395_v45  ;;  %v3398_v50 = vadd.f32 %v3396_v44, %v3269_v19 }
0x15e5   : > { %v3390_v49 = vadd.f32 %v3388_v46, %v3261_v18 }
0x15e6   : > { %v3399_v51 = vadd.f32 %v3397_v47, %v3270_v20 }
0x15e7   : > { %v3391_v52 = vpack.c.bf16 %v3390_v49, %v3389_v48 }
0x15e8   : > { %v3400_v53 = vpack.c.bf16 %v3399_v51, %v3398_v50 }
0x15e9   : > { %3393 = vst.msk [vmem:[#allocation2] sm:$0xff] %vm3392_vm11, %v3391_v52 }
0x15ea   : > { %3401 = vst.msk [vmem:[#allocation2 + $0x8] sm:$0xff] %vm3392_vm11, %v3400_v53 }
0x15f0   : > { %v3402_v54 = vld [vmem:[#allocation2] sm:$0xff] }
0x15f1   : > { %5403 = vmatmul.mubr.msk.bf16.vlgmr.msra.gmra.mrb[96].mxu0 %vm366_vm2, %v3402_v54  ;;  %v3469_v55 = vld [vmem:[#allocation2 + $0x8] sm:$0xff] }
0x15f2   : > { %5411 = vmatmul.mubr.msk.bf16.vlgmr.msra.gmra.mrb[96].mxu1 %vm366_vm2, %v3469_v55  ;;  %5418 = vmatprep.mubr.msk.bf16.mxu0 %vm5677_vm0, %v5676_v0  ;;  %v5619_v55 = vld [vmem:[#allocation3 + $0x1a0] sm:$0xff]  }
0x15f3   : > { %5426 = vmatprep.mubr.msk.bf16.mxu1 %vm5677_vm0, %v5676_v0  ;;  %5415 = vmatpush3.bf16.msra.mxu0 %v5615_v56 }
0x15f4   : > { %5423 = vmatpush3.bf16.msra.mxu1 %v5615_v56  ;;  %5416 = vmatprep.subr.bf16.mxu0 %v5676_v0  ;;  %v5620_v56 = vld [vmem:[#allocation3 + $0x1a8] sm:$0xff]  }
0x15f5   : > { %5424 = vmatprep.subr.bf16.mxu1 %v5676_v0 }
0x15f7   : > { %5417 = vmatpush3.bf16.msra.mxu0 %v5616_v57 }
0x15f8   : > { %5425 = vmatpush3.bf16.msra.mxu1 %v5616_v57  ;;  %5430 = vmatprep.subr.bf16.mxu0 %v5676_v0  ;;  %v4782_v57 = vld [vmem:[%s6233_s4 + $0x19] ss:$0 sm:$0xff] }
0x15f9   : > { %5438 = vmatprep.subr.bf16.mxu1 %v5676_v0 }
0x16c4   : > { %v3462_v59 = vpop.f32.mrb[96].mxu0 }
0x16c5   : > { %v3463_v60 = vadd.f32 %v4772_v58, %v3462_v59  ;;  %v3507_v61 = vpop.f32.mrb[96].mxu1  ;;  %v5404_v62 = vpop.f32.mrb[97].mxu0 }
0x16c6   : > { %v3508_v63 = vadd.f32 %v4772_v58, %v3507_v61  ;;  %v5412_v1 = vpop.f32.mrb[97].mxu1  ;;  %v3465_v2 = vpop.f32.mrb[98].mxu0 }
0x16c7   : > { %v3514_v3 = vmax.f32 %v3463_v60, 0.0  ;;  %v3466_v4 = vadd.f32 %v4772_v58, %v3465_v2  ;;  %v3510_v5 = vpop.f32.mrb[98].mxu1  ;;  %v5405_v6 = vpop.f32.mrb[99].mxu0 }
0x16c8   : > { %v3523_v7 = vmax.f32 %v3508_v63, 0.0  ;;  %v3511_v8 = vadd.f32 %v4772_v58, %v3510_v5  ;;  %v5413_v9 = vpop.f32.mrb[99].mxu1 }
0x16c9   : > { %v3516_v10 = vmul.f32 %v3514_v3, %v3514_v3  ;;  %v3515_v11 = vmax.f32 %v3466_v4, 0.0 }
0x16ca   : > { %v3525_v12 = vmul.f32 %v3523_v7, %v3523_v7  ;;  %v3524_v13 = vmax.f32 %v3511_v8, 0.0 }
0x16cb   : > { %v3517_v14 = vmul.f32 %v3515_v11, %v3515_v11  ;;  %v3518_v16 = vadd.f32 %v3516_v10, %v3389_v48 }
0x16cc   : > { %v3526_v15 = vmul.f32 %v3524_v13, %v3524_v13  ;;  %v3527_v18 = vadd.f32 %v3525_v12, %v3398_v50 }
0x16cd   : > { %v3519_v17 = vadd.f32 %v3517_v14, %v3390_v49 }
0x16ce   : > { %v3528_v19 = vadd.f32 %v3526_v15, %v3399_v51 }
0x16cf   : > { %v3520_v20 = vpack.c.bf16 %v3519_v17, %v3518_v16 }
0x16d0   : > { %v3529_v21 = vpack.c.bf16 %v3528_v19, %v3527_v18 }
0x16d1   : > { %3522 = vst.msk [vmem:[#allocation2] sm:$0xff] %vm3521_vm12, %v3520_v20 }
0x16d2   : > { %3530 = vst.msk [vmem:[#allocation2 + $0x8] sm:$0xff] %vm3521_vm12, %v3529_v21 }
0x16d8   : > { %v3531_v22 = vld [vmem:[#allocation2] sm:$0xff] }
0x16d9   : > { %5419 = vmatmul.mubr.msk.bf16.vlgmr.msra.gmra.mrb[100].mxu0 %vm366_vm2, %v3531_v22  ;;  %v3598_v23 = vld [vmem:[#allocation2 + $0x8] sm:$0xff] }
0x16da   : > { %5427 = vmatmul.mubr.msk.bf16.vlgmr.msra.gmra.mrb[100].mxu1 %vm366_vm2, %v3598_v23  ;;  %5434 = vmatprep.mubr.msk.bf16.mxu0 %vm5677_vm0, %v5676_v0  ;;  %v5621_v23 = vld [vmem:[#allocation3 + $0x1b0] sm:$0xff]  }
0x16db   : > { %5442 = vmatprep.mubr.msk.bf16.mxu1 %vm5677_vm0, %v5676_v0  ;;  %5431 = vmatpush3.bf16.msra.mxu0 %v5617_v24 }
0x16dc   : > { %5439 = vmatpush3.bf16.msra.mxu1 %v5617_v24  ;;  %5432 = vmatprep.subr.bf16.mxu0 %v5676_v0  ;;  %v5622_v24 = vld [vmem:[#allocation3 + $0x1b8] sm:$0xff]  }
0x16dd   : > { %5440 = vmatprep.subr.bf16.mxu1 %v5676_v0 }
0x16df   : > { %5433 = vmatpush3.bf16.msra.mxu0 %v5618_v25 }
0x16e0   : > { %5441 = vmatpush3.bf16.msra.mxu1 %v5618_v25  ;;  %5446 = vmatprep.subr.bf16.mxu0 %v5676_v0  ;;  %v4787_v25 = vld [vmem:[%s6233_s4 + $0x1a] ss:$0 sm:$0xff] }
0x16e1   : > { %5454 = vmatprep.subr.bf16.mxu1 %v5676_v0 }
0x17ac   : > { %v3591_v27 = vpop.f32.mrb[100].mxu0 }
0x17ad   : > { %v3592_v28 = vadd.f32 %v4777_v26, %v3591_v27  ;;  %v3636_v29 = vpop.f32.mrb[100].mxu1  ;;  %v5420_v30 = vpop.f32.mrb[101].mxu0 }
0x17ae   : > { %v3637_v31 = vadd.f32 %v4777_v26, %v3636_v29  ;;  %v5428_v32 = vpop.f32.mrb[101].mxu1  ;;  %v3594_v33 = vpop.f32.mrb[102].mxu0 }
0x17af   : > { %v3643_v34 = vmax.f32 %v3592_v28, 0.0  ;;  %v3595_v35 = vadd.f32 %v4777_v26, %v3594_v33  ;;  %v3639_v36 = vpop.f32.mrb[102].mxu1  ;;  %v5421_v37 = vpop.f32.mrb[103].mxu0 }
0x17b0   : > { %v3652_v38 = vmax.f32 %v3637_v31, 0.0  ;;  %v3640_v39 = vadd.f32 %v4777_v26, %v3639_v36  ;;  %v5429_v40 = vpop.f32.mrb[103].mxu1 }
0x17b1   : > { %v3645_v41 = vmul.f32 %v3643_v34, %v3643_v34  ;;  %v3644_v42 = vmax.f32 %v3595_v35, 0.0 }
0x17b2   : > { %v3654_v43 = vmul.f32 %v3652_v38, %v3652_v38  ;;  %v3653_v44 = vmax.f32 %v3640_v39, 0.0 }
0x17b3   : > { %v3646_v45 = vmul.f32 %v3644_v42, %v3644_v42  ;;  %v3647_v47 = vadd.f32 %v3645_v41, %v3518_v16 }
0x17b4   : > { %v3655_v46 = vmul.f32 %v3653_v44, %v3653_v44  ;;  %v3656_v49 = vadd.f32 %v3654_v43, %v3527_v18 }
0x17b5   : > { %v3648_v48 = vadd.f32 %v3646_v45, %v3519_v17 }
0x17b6   : > { %v3657_v50 = vadd.f32 %v3655_v46, %v3528_v19 }
0x17b7   : > { %v3649_v51 = vpack.c.bf16 %v3648_v48, %v3647_v47 }
0x17b8   : > { %v3658_v52 = vpack.c.bf16 %v3657_v50, %v3656_v49 }
0x17b9   : > { %3651 = vst.msk [vmem:[#allocation2] sm:$0xff] %vm3650_vm13, %v3649_v51 }
0x17ba   : > { %3659 = vst.msk [vmem:[#allocation2 + $0x8] sm:$0xff] %vm3650_vm13, %v3658_v52 }
0x17c0   : > { %v3660_v53 = vld [vmem:[#allocation2] sm:$0xff] }
0x17c1   : > { %5435 = vmatmul.mubr.msk.bf16.vlgmr.msra.gmra.mrb[104].mxu0 %vm366_vm2, %v3660_v53  ;;  %v3727_v54 = vld [vmem:[#allocation2 + $0x8] sm:$0xff] }
0x17c2   : > { %5443 = vmatmul.mubr.msk.bf16.vlgmr.msra.gmra.mrb[104].mxu1 %vm366_vm2, %v3727_v54  ;;  %5450 = vmatprep.mubr.msk.bf16.mxu0 %vm5677_vm0, %v5676_v0  ;;  %v5623_v54 = vld [vmem:[#allocation3 + $0x1c0] sm:$0xff]  }
0x17c3   : > { %5458 = vmatprep.mubr.msk.bf16.mxu1 %vm5677_vm0, %v5676_v0  ;;  %5447 = vmatpush3.bf16.msra.mxu0 %v5619_v55 }
0x17c4   : > { %5455 = vmatpush3.bf16.msra.mxu1 %v5619_v55  ;;  %5448 = vmatprep.subr.bf16.mxu0 %v5676_v0  ;;  %v5624_v55 = vld [vmem:[#allocation3 + $0x1c8] sm:$0xff]  }
0x17c5   : > { %5456 = vmatprep.subr.bf16.mxu1 %v5676_v0 }
0x17c7   : > { %5449 = vmatpush3.bf16.msra.mxu0 %v5620_v56 }
0x17c8   : > { %5457 = vmatpush3.bf16.msra.mxu1 %v5620_v56  ;;  %5462 = vmatprep.subr.bf16.mxu0 %v5676_v0  ;;  %v4792_v56 = vld [vmem:[%s6233_s4 + $0x1b] ss:$0 sm:$0xff] }
0x17c9   : > { %5470 = vmatprep.subr.bf16.mxu1 %v5676_v0 }
0x1894   : > { %v3720_v58 = vpop.f32.mrb[104].mxu0 }
0x1895   : > { %v3721_v59 = vadd.f32 %v4782_v57, %v3720_v58  ;;  %v3765_v60 = vpop.f32.mrb[104].mxu1  ;;  %v5436_v61 = vpop.f32.mrb[105].mxu0 }
0x1896   : > { %v3766_v62 = vadd.f32 %v4782_v57, %v3765_v60  ;;  %v5444_v63 = vpop.f32.mrb[105].mxu1  ;;  %v3723_v1 = vpop.f32.mrb[106].mxu0 }
0x1897   : > { %v3772_v2 = vmax.f32 %v3721_v59, 0.0  ;;  %v3724_v3 = vadd.f32 %v4782_v57, %v3723_v1  ;;  %v3768_v4 = vpop.f32.mrb[106].mxu1  ;;  %v5437_v5 = vpop.f32.mrb[107].mxu0 }
0x1898   : > { %v3781_v6 = vmax.f32 %v3766_v62, 0.0  ;;  %v3769_v7 = vadd.f32 %v4782_v57, %v3768_v4  ;;  %v5445_v8 = vpop.f32.mrb[107].mxu1 }
0x1899   : > { %v3774_v9 = vmul.f32 %v3772_v2, %v3772_v2  ;;  %v3773_v10 = vmax.f32 %v3724_v3, 0.0 }
0x189a   : > { %v3783_v11 = vmul.f32 %v3781_v6, %v3781_v6  ;;  %v3782_v12 = vmax.f32 %v3769_v7, 0.0 }
0x189b   : > { %v3775_v13 = vmul.f32 %v3773_v10, %v3773_v10  ;;  %v3776_v15 = vadd.f32 %v3774_v9, %v3647_v47 }
0x189c   : > { %v3784_v14 = vmul.f32 %v3782_v12, %v3782_v12  ;;  %v3785_v17 = vadd.f32 %v3783_v11, %v3656_v49 }
0x189d   : > { %v3777_v16 = vadd.f32 %v3775_v13, %v3648_v48 }
0x189e   : > { %v3786_v18 = vadd.f32 %v3784_v14, %v3657_v50 }
0x189f   : > { %v3778_v19 = vpack.c.bf16 %v3777_v16, %v3776_v15 }
0x18a0   : > { %v3787_v20 = vpack.c.bf16 %v3786_v18, %v3785_v17 }
0x18a1   : > { %3780 = vst.msk [vmem:[#allocation2] sm:$0xff] %vm3779_vm14, %v3778_v19 }
0x18a2   : > { %3788 = vst.msk [vmem:[#allocation2 + $0x8] sm:$0xff] %vm3779_vm14, %v3787_v20 }
0x18a8   : > { %v3789_v21 = vld [vmem:[#allocation2] sm:$0xff] }
0x18a9   : > { %5451 = vmatmul.mubr.msk.bf16.vlgmr.msra.gmra.mrb[108].mxu0 %vm366_vm2, %v3789_v21  ;;  %v3856_v22 = vld [vmem:[#allocation2 + $0x8] sm:$0xff] }
0x18aa   : > { %5459 = vmatmul.mubr.msk.bf16.vlgmr.msra.gmra.mrb[108].mxu1 %vm366_vm2, %v3856_v22  ;;  %5466 = vmatprep.mubr.msk.bf16.mxu0 %vm5677_vm0, %v5676_v0  ;;  %v5625_v22 = vld [vmem:[#allocation3 + $0x1d0] sm:$0xff]  }
0x18ab   : > { %5474 = vmatprep.mubr.msk.bf16.mxu1 %vm5677_vm0, %v5676_v0  ;;  %5463 = vmatpush3.bf16.msra.mxu0 %v5621_v23 }
0x18ac   : > { %5471 = vmatpush3.bf16.msra.mxu1 %v5621_v23  ;;  %5464 = vmatprep.subr.bf16.mxu0 %v5676_v0  ;;  %v5626_v23 = vld [vmem:[#allocation3 + $0x1d8] sm:$0xff]  }
0x18ad   : > { %5472 = vmatprep.subr.bf16.mxu1 %v5676_v0 }
0x18af   : > { %5465 = vmatpush3.bf16.msra.mxu0 %v5622_v24 }
0x18b0   : > { %5473 = vmatpush3.bf16.msra.mxu1 %v5622_v24  ;;  %5478 = vmatprep.subr.bf16.mxu0 %v5676_v0  ;;  %v4797_v24 = vld [vmem:[%s6233_s4 + $0x1c] ss:$0 sm:$0xff] }
0x18b1   : > { %5486 = vmatprep.subr.bf16.mxu1 %v5676_v0 }
0x197c   : > { %v3849_v26 = vpop.f32.mrb[108].mxu0 }
0x197d   : > { %v3850_v27 = vadd.f32 %v4787_v25, %v3849_v26  ;;  %v3894_v28 = vpop.f32.mrb[108].mxu1  ;;  %v5452_v29 = vpop.f32.mrb[109].mxu0 }
0x197e   : > { %v3895_v30 = vadd.f32 %v4787_v25, %v3894_v28  ;;  %v5460_v31 = vpop.f32.mrb[109].mxu1  ;;  %v3852_v32 = vpop.f32.mrb[110].mxu0 }
0x197f   : > { %v3901_v33 = vmax.f32 %v3850_v27, 0.0  ;;  %v3853_v34 = vadd.f32 %v4787_v25, %v3852_v32  ;;  %v3897_v35 = vpop.f32.mrb[110].mxu1  ;;  %v5453_v36 = vpop.f32.mrb[111].mxu0 }
0x1980   : > { %v3910_v37 = vmax.f32 %v3895_v30, 0.0  ;;  %v3898_v38 = vadd.f32 %v4787_v25, %v3897_v35  ;;  %v5461_v39 = vpop.f32.mrb[111].mxu1 }
0x1981   : > { %v3903_v40 = vmul.f32 %v3901_v33, %v3901_v33  ;;  %v3902_v41 = vmax.f32 %v3853_v34, 0.0 }
0x1982   : > { %v3912_v42 = vmul.f32 %v3910_v37, %v3910_v37  ;;  %v3911_v43 = vmax.f32 %v3898_v38, 0.0 }
0x1983   : > { %v3904_v44 = vmul.f32 %v3902_v41, %v3902_v41  ;;  %v3905_v46 = vadd.f32 %v3903_v40, %v3776_v15 }
0x1984   : > { %v3913_v45 = vmul.f32 %v3911_v43, %v3911_v43  ;;  %v3914_v48 = vadd.f32 %v3912_v42, %v3785_v17 }
0x1985   : > { %v3906_v47 = vadd.f32 %v3904_v44, %v3777_v16 }
0x1986   : > { %v3915_v49 = vadd.f32 %v3913_v45, %v3786_v18 }
0x1987   : > { %v3907_v50 = vpack.c.bf16 %v3906_v47, %v3905_v46 }
0x1988   : > { %v3916_v51 = vpack.c.bf16 %v3915_v49, %v3914_v48 }
0x1989   : > { %3909 = vst.msk [vmem:[#allocation2] sm:$0xff] %vm3908_vm15, %v3907_v50 }
0x198a   : > { %3917 = vst.msk [vmem:[#allocation2 + $0x8] sm:$0xff] %vm3908_vm15, %v3916_v51 }
0x1990   : > { %v3918_v52 = vld [vmem:[#allocation2] sm:$0xff] }
0x1991   : > { %5467 = vmatmul.mubr.msk.bf16.vlgmr.msra.gmra.mrb[112].mxu0 %vm366_vm2, %v3918_v52  ;;  %v3985_v53 = vld [vmem:[#allocation2 + $0x8] sm:$0xff] }
0x1992   : > { %5475 = vmatmul.mubr.msk.bf16.vlgmr.msra.gmra.mrb[112].mxu1 %vm366_vm2, %v3985_v53  ;;  %5482 = vmatprep.mubr.msk.bf16.mxu0 %vm5677_vm0, %v5676_v0  ;;  %v5627_v53 = vld [vmem:[#allocation3 + $0x1e0] sm:$0xff]  }
0x1993   : > { %5490 = vmatprep.mubr.msk.bf16.mxu1 %vm5677_vm0, %v5676_v0  ;;  %5479 = vmatpush3.bf16.msra.mxu0 %v5623_v54 }
0x1994   : > { %5487 = vmatpush3.bf16.msra.mxu1 %v5623_v54  ;;  %5480 = vmatprep.subr.bf16.mxu0 %v5676_v0  ;;  %v5628_v54 = vld [vmem:[#allocation3 + $0x1e8] sm:$0xff]  }
0x1995   : > { %5488 = vmatprep.subr.bf16.mxu1 %v5676_v0 }
0x1997   : > { %5481 = vmatpush3.bf16.msra.mxu0 %v5624_v55 }
0x1998   : > { %5489 = vmatpush3.bf16.msra.mxu1 %v5624_v55  ;;  %5494 = vmatprep.subr.bf16.mxu0 %v5676_v0  ;;  %v4802_v55 = vld [vmem:[%s6233_s4 + $0x1d] ss:$0 sm:$0xff] }
0x1999   : > { %5502 = vmatprep.subr.bf16.mxu1 %v5676_v0 }
0x1a64   : > { %v3978_v57 = vpop.f32.mrb[112].mxu0 }
0x1a65   : > { %v3979_v58 = vadd.f32 %v4792_v56, %v3978_v57  ;;  %v4023_v59 = vpop.f32.mrb[112].mxu1  ;;  %v5468_v60 = vpop.f32.mrb[113].mxu0 }
0x1a66   : > { %v4024_v61 = vadd.f32 %v4792_v56, %v4023_v59  ;;  %v5476_v62 = vpop.f32.mrb[113].mxu1  ;;  %v3981_v63 = vpop.f32.mrb[114].mxu0 }
0x1a67   : > { %v4030_v1 = vmax.f32 %v3979_v58, 0.0  ;;  %v3982_v2 = vadd.f32 %v4792_v56, %v3981_v63  ;;  %v4026_v3 = vpop.f32.mrb[114].mxu1  ;;  %v5469_v4 = vpop.f32.mrb[115].mxu0 }
0x1a68   : > { %v4039_v5 = vmax.f32 %v4024_v61, 0.0  ;;  %v4027_v6 = vadd.f32 %v4792_v56, %v4026_v3  ;;  %v5477_v7 = vpop.f32.mrb[115].mxu1 }
0x1a69   : > { %v4032_v8 = vmul.f32 %v4030_v1, %v4030_v1  ;;  %v4031_v9 = vmax.f32 %v3982_v2, 0.0 }
0x1a6a   : > { %v4041_v10 = vmul.f32 %v4039_v5, %v4039_v5  ;;  %v4040_v11 = vmax.f32 %v4027_v6, 0.0 }
0x1a6b   : > { %v4033_v12 = vmul.f32 %v4031_v9, %v4031_v9  ;;  %v4034_v14 = vadd.f32 %v4032_v8, %v3905_v46 }
0x1a6c   : > { %v4042_v13 = vmul.f32 %v4040_v11, %v4040_v11  ;;  %v4043_v16 = vadd.f32 %v4041_v10, %v3914_v48 }
0x1a6d   : > { %v4035_v15 = vadd.f32 %v4033_v12, %v3906_v47 }
0x1a6e   : > { %v4044_v17 = vadd.f32 %v4042_v13, %v3915_v49 }
0x1a6f   : > { %v4036_v18 = vpack.c.bf16 %v4035_v15, %v4034_v14 }
0x1a70   : > { %v4045_v19 = vpack.c.bf16 %v4044_v17, %v4043_v16 }
0x1a71   : > { %4038 = vst.msk [vmem:[#allocation2] sm:$0xff] %vm4037_vm1, %v4036_v18 }
0x1a72   : > { %4046 = vst.msk [vmem:[#allocation2 + $0x8] sm:$0xff] %vm4037_vm1, %v4045_v19 }
0x1a78   : > { %v4047_v20 = vld [vmem:[#allocation2] sm:$0xff] }
0x1a79   : > { %5483 = vmatmul.mubr.msk.bf16.vlgmr.msra.gmra.mrb[116].mxu0 %vm366_vm2, %v4047_v20  ;;  %v4114_v21 = vld [vmem:[#allocation2 + $0x8] sm:$0xff] }
0x1a7a   : > { %5491 = vmatmul.mubr.msk.bf16.vlgmr.msra.gmra.mrb[116].mxu1 %vm366_vm2, %v4114_v21  ;;  %5498 = vmatprep.mubr.msk.bf16.mxu0 %vm5677_vm0, %v5676_v0  ;;  %v5629_v21 = vld [vmem:[%s6234_s5] sm:$0xff]  }
0x1a7b   : > { %5506 = vmatprep.mubr.msk.bf16.mxu1 %vm5677_vm0, %v5676_v0  ;;  %5495 = vmatpush3.bf16.msra.mxu0 %v5625_v22 }
0x1a7c   : > { %5503 = vmatpush3.bf16.msra.mxu1 %v5625_v22  ;;  %5496 = vmatprep.subr.bf16.mxu0 %v5676_v0  ;;  %v5630_v22 = vld [vmem:[%s6234_s5] sm:$0xff]  }
0x1a7d   : > { %5504 = vmatprep.subr.bf16.mxu1 %v5676_v0 }
0x1a7f   : > { %5497 = vmatpush3.bf16.msra.mxu0 %v5626_v23 }
0x1a80   : > { %5505 = vmatpush3.bf16.msra.mxu1 %v5626_v23  ;;  %5510 = vmatprep.subr.bf16.mxu0 %v5676_v0  ;;  %v5631_v23 = vld [vmem:[%s6234_s5 + $0x8] sm:$0xff]  }
0x1a81   : > { %5518 = vmatprep.subr.bf16.mxu1 %v5676_v0 }
0x1b4c   : > { %v4107_v25 = vpop.f32.mrb[116].mxu0 }
0x1b4d   : > { %v4108_v26 = vadd.f32 %v4797_v24, %v4107_v25  ;;  %v4152_v27 = vpop.f32.mrb[116].mxu1  ;;  %v5484_v28 = vpop.f32.mrb[117].mxu0  ;;  %v4807_v25 = vld [vmem:[%s6233_s4 + $0x1e] ss:$0 sm:$0xff] }
0x1b4e   : > { %v4153_v29 = vadd.f32 %v4797_v24, %v4152_v27  ;;  %v5492_v30 = vpop.f32.mrb[117].mxu1  ;;  %v4110_v31 = vpop.f32.mrb[118].mxu0 }
0x1b4f   : > { %v4159_v32 = vmax.f32 %v4108_v26, 0.0  ;;  %v4111_v33 = vadd.f32 %v4797_v24, %v4110_v31  ;;  %v4155_v34 = vpop.f32.mrb[118].mxu1  ;;  %v5485_v35 = vpop.f32.mrb[119].mxu0 }
0x1b50   : > { %v4168_v36 = vmax.f32 %v4153_v29, 0.0  ;;  %v4156_v37 = vadd.f32 %v4797_v24, %v4155_v34  ;;  %v5493_v38 = vpop.f32.mrb[119].mxu1  ;;  %v5632_v24 = vld [vmem:[%s6234_s5 + $0x8] sm:$0xff]  }
0x1b51   : > { %v4161_v39 = vmul.f32 %v4159_v32, %v4159_v32  ;;  %v4160_v40 = vmax.f32 %v4111_v33, 0.0 }
0x1b52   : > { %v4170_v41 = vmul.f32 %v4168_v36, %v4168_v36  ;;  %v4169_v42 = vmax.f32 %v4156_v37, 0.0 }
0x1b53   : > { %v4162_v43 = vmul.f32 %v4160_v40, %v4160_v40  ;;  %v4163_v45 = vadd.f32 %v4161_v39, %v4034_v14 }
0x1b54   : > { %v4171_v44 = vmul.f32 %v4169_v42, %v4169_v42  ;;  %v4172_v47 = vadd.f32 %v4170_v41, %v4043_v16 }
0x1b55   : > { %v4164_v46 = vadd.f32 %v4162_v43, %v4035_v15 }
0x1b56   : > { %v4173_v48 = vadd.f32 %v4171_v44, %v4044_v17 }
0x1b57   : > { %v4165_v49 = vpack.c.bf16 %v4164_v46, %v4163_v45 }
0x1b58   : > { %v4174_v50 = vpack.c.bf16 %v4173_v48, %v4172_v47 }
0x1b59   : > { %4167 = vst.msk [vmem:[#allocation2] sm:$0xff] %vm4166_vm3, %v4165_v49 }
0x1b5a   : > { %4175 = vst.msk [vmem:[#allocation2 + $0x8] sm:$0xff] %vm4166_vm3, %v4174_v50 }
0x1b60   : > { %v4176_v51 = vld [vmem:[#allocation2] sm:$0xff] }
0x1b61   : > { %5499 = vmatmul.mubr.msk.bf16.vlgmr.msra.gmra.mrb[120].mxu0 %vm366_vm2, %v4176_v51  ;;  %v4243_v52 = vld [vmem:[#allocation2 + $0x8] sm:$0xff]  ;;  %v4812_v51 = vld [vmem:[%s6235_s6] ss:$0 sm:$0xff] }
0x1b62   : > { %5507 = vmatmul.mubr.msk.bf16.vlgmr.msra.gmra.mrb[120].mxu1 %vm366_vm2, %v4243_v52  ;;  %5514 = vmatprep.mubr.msk.bf16.mxu0 %vm5677_vm0, %v5676_v0 }
0x1b63   : > { %5522 = vmatprep.mubr.msk.bf16.mxu1 %vm5677_vm0, %v5676_v0  ;;  %5511 = vmatpush3.bf16.msra.mxu0 %v5627_v53 }
0x1b64   : > { %5519 = vmatpush3.bf16.msra.mxu1 %v5627_v53  ;;  %5512 = vmatprep.subr.bf16.mxu0 %v5676_v0 }
0x1b65   : > { %5520 = vmatprep.subr.bf16.mxu1 %v5676_v0 }
0x1b67   : > { %5513 = vmatpush3.bf16.msra.mxu0 %v5628_v54 }
0x1b68   : > { %5521 = vmatpush3.bf16.msra.mxu1 %v5628_v54  ;;  %5526 = vmatprep.subr.bf16.mxu0 %v5676_v0 }
0x1b69   : > { %5534 = vmatprep.subr.bf16.mxu1 %v5676_v0 }
0x1c34   : > { %v4236_v56 = vpop.f32.mrb[120].mxu0 }
0x1c35   : > { %v4237_v57 = vadd.f32 %v4802_v55, %v4236_v56  ;;  %v4281_v58 = vpop.f32.mrb[120].mxu1  ;;  %v5500_v59 = vpop.f32.mrb[121].mxu0 }
0x1c36   : > { %v4282_v60 = vadd.f32 %v4802_v55, %v4281_v58  ;;  %v5508_v61 = vpop.f32.mrb[121].mxu1  ;;  %v4239_v62 = vpop.f32.mrb[122].mxu0 }
0x1c37   : > { %v4288_v63 = vmax.f32 %v4237_v57, 0.0  ;;  %v4240_v1 = vadd.f32 %v4802_v55, %v4239_v62  ;;  %v4284_v2 = vpop.f32.mrb[122].mxu1  ;;  %v5501_v3 = vpop.f32.mrb[123].mxu0 }
0x1c38   : > { %v4297_v4 = vmax.f32 %v4282_v60, 0.0  ;;  %v4285_v5 = vadd.f32 %v4802_v55, %v4284_v2  ;;  %v5509_v6 = vpop.f32.mrb[123].mxu1 }
0x1c39   : > { %v4290_v7 = vmul.f32 %v4288_v63, %v4288_v63  ;;  %v4289_v8 = vmax.f32 %v4240_v1, 0.0 }
0x1c3a   : > { %v4299_v9 = vmul.f32 %v4297_v4, %v4297_v4  ;;  %v4298_v10 = vmax.f32 %v4285_v5, 0.0 }
0x1c3b   : > { %v4291_v11 = vmul.f32 %v4289_v8, %v4289_v8  ;;  %v4292_v13 = vadd.f32 %v4290_v7, %v4163_v45 }
0x1c3c   : > { %v4300_v12 = vmul.f32 %v4298_v10, %v4298_v10  ;;  %v4301_v15 = vadd.f32 %v4299_v9, %v4172_v47 }
0x1c3d   : > { %v4293_v14 = vadd.f32 %v4291_v11, %v4164_v46 }
0x1c3e   : > { %v4302_v16 = vadd.f32 %v4300_v12, %v4173_v48 }
0x1c3f   : > { %v4294_v17 = vpack.c.bf16 %v4293_v14, %v4292_v13 }
0x1c40   : > { %v4303_v18 = vpack.c.bf16 %v4302_v16, %v4301_v15 }
0x1c41   : > { %4296 = vst.msk [vmem:[#allocation2] sm:$0xff] %vm4295_vm4, %v4294_v17 }
0x1c42   : > { %4304 = vst.msk [vmem:[#allocation2 + $0x8] sm:$0xff] %vm4295_vm4, %v4303_v18 }
0x1c48   : > { %v4305_v19 = vld [vmem:[#allocation2] sm:$0xff] }
0x1c49   : > { %5515 = vmatmul.mubr.msk.bf16.vlgmr.msra.gmra.mrb[124].mxu0 %vm366_vm2, %v4305_v19  ;;  %v4372_v20 = vld [vmem:[#allocation2 + $0x8] sm:$0xff] }
0x1c4a   : > { %5523 = vmatmul.mubr.msk.bf16.vlgmr.msra.gmra.mrb[124].mxu1 %vm366_vm2, %v4372_v20  ;;  %5530 = vmatprep.mubr.msk.bf16.mxu0 %vm5677_vm0, %v5676_v0 }
0x1c4b   : > { %5538 = vmatprep.mubr.msk.bf16.mxu1 %vm5677_vm0, %v5676_v0  ;;  %5527 = vmatpush3.bf16.msra.mxu0 %v5629_v21  ;;  %vm4424_vm0 = vcmask 261368  }
0x1c4c   : > { %5535 = vmatpush3.bf16.msra.mxu1 %v5630_v22  ;;  %5528 = vmatprep.subr.bf16.mxu0 %v5676_v0 }
0x1c4d   : > { %5536 = vmatprep.subr.bf16.mxu1 %v5676_v0 }
0x1c4f   : > { %5529 = vmatpush3.bf16.msra.mxu0 %v5631_v23 }
0x1c50   : > { %5537 = vmatpush3.bf16.msra.mxu1 %v5632_v24 }
0x1d1c   : > { %v4365_v26 = vpop.f32.mrb[124].mxu0 }
0x1d1d   : > { %v4366_v27 = vadd.f32 %v4807_v25, %v4365_v26  ;;  %v4410_v28 = vpop.f32.mrb[124].mxu1  ;;  %v5516_v29 = vpop.f32.mrb[125].mxu0 }
0x1d1e   : > { %v4411_v30 = vadd.f32 %v4807_v25, %v4410_v28  ;;  %v5524_v0 = vpop.f32.mrb[125].mxu1  ;;  %v4368_v31 = vpop.f32.mrb[126].mxu0 }
0x1d1f   : > { %v4417_v32 = vmax.f32 %v4366_v27, 0.0  ;;  %v4369_v33 = vadd.f32 %v4807_v25, %v4368_v31  ;;  %v4413_v34 = vpop.f32.mrb[126].mxu1  ;;  %v5517_v35 = vpop.f32.mrb[127].mxu0 }
0x1d20   : > { %v4426_v36 = vmax.f32 %v4411_v30, 0.0  ;;  %v4414_v37 = vadd.f32 %v4807_v25, %v4413_v34  ;;  %v5525_v38 = vpop.f32.mrb[127].mxu1 }
0x1d21   : > { %v4419_v39 = vmul.f32 %v4417_v32, %v4417_v32  ;;  %v4418_v40 = vmax.f32 %v4369_v33, 0.0 }
0x1d22   : > { %v4428_v41 = vmul.f32 %v4426_v36, %v4426_v36  ;;  %v4427_v42 = vmax.f32 %v4414_v37, 0.0 }
0x1d23   : > { %v4420_v43 = vmul.f32 %v4418_v40, %v4418_v40  ;;  %v4421_v45 = vadd.f32 %v4419_v39, %v4292_v13 }
0x1d24   : > { %v4429_v44 = vmul.f32 %v4427_v42, %v4427_v42  ;;  %v4430_v47 = vadd.f32 %v4428_v41, %v4301_v15 }
0x1d25   : > { %v4422_v46 = vadd.f32 %v4420_v43, %v4293_v14 }
0x1d26   : > { %v4431_v48 = vadd.f32 %v4429_v44, %v4302_v16 }
0x1d27   : > { %v4423_v49 = vpack.c.bf16 %v4422_v46, %v4421_v45 }
0x1d28   : > { %v4432_v50 = vpack.c.bf16 %v4431_v48, %v4430_v47 }
0x1d29   : > { %4425 = vst.msk [vmem:[#allocation2] sm:$0xff] %vm4424_vm0, %v4423_v49  ;;  %5531 = vmatmul.mubr.msk.bf16.vlgmr.msra.gmra.mrb[128].mxu0 %vm366_vm2, %v4423_v49 }
0x1d2a   : > { %4433 = vst.msk [vmem:[#allocation2 + $0x8] sm:$0xff] %vm4424_vm0, %v4432_v50  ;;  %5539 = vmatmul.mubr.msk.bf16.vlgmr.msra.gmra.mrb[128].mxu1 %vm366_vm2, %v4432_v50 }
0x1dfc   : > { %v4494_v52 = vpop.f32.mrb[128].mxu0 }
0x1dfd   : > { %v4495_v53 = vadd.f32 %v4812_v51, %v4494_v52  ;;  %v4563_v54 = vpop.f32.mrb[128].mxu1  ;;  %v5532_v55 = vpop.f32.mrb[129].mxu0 }
0x1dfe   : > { %v5540_v56 = vpop.f32.mrb[129].mxu1  ;;  %v4497_v57 = vpop.f32.mrb[130].mxu0  ;;  %v4564_v61 = vadd.f32 %v4812_v51, %v4563_v54 }
0x1dff   : > { %4501 = vst [vmem:[%s295_s26] sm:$0xff] %v4495_v53  ;;  %v4498_v58 = vadd.f32 %v4812_v51, %v4497_v57  ;;  %v4566_v59 = vpop.f32.mrb[130].mxu1  ;;  %v5533_v60 = vpop.f32.mrb[131].mxu0 }
0x1e00   : > { %v5541_v62 = vpop.f32.mrb[131].mxu1  ;;  %v4567_v63 = vadd.f32 %v4812_v51, %v4566_v59  ;;  %4570 = vst [vmem:[%s295_s26 + $0x10] sm:$0xff] %v4564_v61 }
0x1e01   : > { %4502 = vst [vmem:[%s295_s26 + $0x8] sm:$0xff] %v4498_v58 }
0x1e02   : > { %4571 = vst [vmem:[%s295_s26 + $0x18] sm:$0xff] %v4567_v63 }
0x1e03 PF: > { %s18_s24 = sadd.s32 1, %s5671_s24  }
0x1e04   : > { %p15_p3 = scmp.ge.s32.totalorder %s18_s24, 4  }
0x1e06   :  { %17 = sbr.rel (!%p15_p3) target bundleno = 1 (0x1), region = 113 }
0x1e0d   :  { %4594 = vsyncpa [#allocation4], 1 }
0x1e0e   :  { %4596 = vsyncpa [#allocation4 + $0x1], 1 }

</bundles_post_ra>
